<compile_context>
chip_gen: v7x
topology: tpu7x:2x2x1
jax: 0.10.0
libtpu: 0.0.40
codegen_flags: <defaults>
</compile_context>

<pallas_src>
import functools

import numpy as np
import jax
import jax.numpy as jnp
from jax.experimental import pallas as pl
from jax.experimental.pallas import tpu as pltpu


# ---------------------------------------------------------------------------
# Static 0/1 selector matrices for conv2 / pool2 / conv3 (built once, numpy)
# ---------------------------------------------------------------------------
def _build_selectors():
    # conv2: 16x16 -> 8x8 (k3, s2, p1):  S2[t*64 + oh*8+ow, ih*16+iw] = 1
    S2 = np.zeros((9, 64, 256), np.float32)
    for t in range(9):
        dh, dw = t // 3, t % 3
        for oh in range(8):
            for ow in range(8):
                ih, iw = 2 * oh - 1 + dh, 2 * ow - 1 + dw
                if 0 <= ih < 16 and 0 <= iw < 16:
                    S2[t, oh * 8 + ow, ih * 16 + iw] = 1.0
    # maxpool 8x8 -> 4x4:  P[t*16 + ph*4+pw, (2ph+dh)*8 + 2pw+dw] = 1
    P = np.zeros((4, 16, 64), np.float32)
    for t in range(4):
        dh, dw = t // 2, t % 2
        for ph in range(4):
            for pw in range(4):
                P[t, ph * 4 + pw, (2 * ph + dh) * 8 + (2 * pw + dw)] = 1.0
    # conv3: 4x4 -> 4x4 (k3, s1, p1):  S3[t*16 + h*4+w, ih*4+iw] = 1
    S3 = np.zeros((9, 16, 16), np.float32)
    for t in range(9):
        dh, dw = t // 3, t % 3
        for h in range(4):
            for w in range(4):
                ih, iw = h - 1 + dh, w - 1 + dw
                if 0 <= ih < 4 and 0 <= iw < 4:
                    S3[t, h * 4 + w, ih * 4 + iw] = 1.0
    return (jnp.asarray(S2.reshape(576, 256), jnp.bfloat16),
            jnp.asarray(P.reshape(64, 64), jnp.bfloat16),
            jnp.asarray(S3.reshape(144, 16), jnp.bfloat16))


# ---------------------------------------------------------------------------
# Pallas kernel 1: whole map CNN (conv1+pool1+conv2+pool2+conv3), one batch
# element per grid step, everything resident in VMEM, channels padded to 128.
# ---------------------------------------------------------------------------
def _map_cnn_kernel(x_ref, w1_ref, b1_ref, s2_ref, w2_ref, b2_ref,
                    p_ref, s3_ref, w3_ref, b3_ref, o_ref):
    f32, bf16 = jnp.float32, jnp.bfloat16
    w1 = w1_ref[...]
    b1 = b1_ref[...]

    # conv1 (5x5, s2, p2) + ReLU fused with 2x2 maxpool.  Host-side im2col
    # orders rows as (pool_tap, ph, pw); the maxpool is then an elementwise max
    # over the four contiguous 256-row tap blocks.
    pooled1 = None
    for t in range(4):
        yt = jnp.dot(x_ref[pl.ds(t * 256, 256), :], w1,
                     preferred_element_type=f32)
        yt = jnp.maximum(yt + b1, 0.0)
        pooled1 = yt if pooled1 is None else jnp.maximum(pooled1, yt)
    pooled1 = pooled1.astype(bf16)            # [256,128]: 16x16 spatial map

    # conv2 (3x3, s2, p1) + ReLU; im2col expressed as 0/1 selector matmuls.
    acc2 = jnp.zeros((64, 128), f32)
    for t in range(9):
        g = jnp.dot(s2_ref[pl.ds(t * 64, 64), :], pooled1,
                    preferred_element_type=f32).astype(bf16)
        acc2 = acc2 + jnp.dot(g, w2_ref[t], preferred_element_type=f32)
    y2 = jnp.maximum(acc2 + b2_ref[...], 0.0).astype(bf16)   # [64,128]: 8x8

    # 2x2 maxpool via one-hot row-gather matmul + max over the 4 tap blocks.
    gp = jnp.dot(p_ref[...], y2, preferred_element_type=f32)  # [64,128]
    pooled2 = jnp.maximum(jnp.maximum(gp[0:16], gp[16:32]),
                          jnp.maximum(gp[32:48], gp[48:64])).astype(bf16)

    # conv3 (3x3, s1, p1) + ReLU.  AdaptiveAvgPool2d(4,4) is the identity here.
    acc3 = jnp.zeros((16, 128), f32)
    for t in range(9):
        g = jnp.dot(s3_ref[pl.ds(t * 16, 16), :], pooled2,
                    preferred_element_type=f32).astype(bf16)
        acc3 = acc3 + jnp.dot(g, w3_ref[t], preferred_element_type=f32)
    y3 = jnp.maximum(acc3 + b3_ref[...], 0.0)
    o_ref[...] = y3.astype(o_ref.dtype)


def map_cnn(patches1, kp, batch):
    rows_in = patches1.shape[0] // batch      # 1024 rows per batch element
    k1 = patches1.shape[1]                    # 50
    return pl.pallas_call(
        _map_cnn_kernel,
        out_shape=jax.ShapeDtypeStruct((batch * 16, 128), jnp.bfloat16),
        grid=(batch,),
        in_specs=[
            pl.BlockSpec((rows_in, k1), lambda i: (i, 0)),
            pl.BlockSpec((k1, 128), lambda i: (0, 0)),
            pl.BlockSpec((1, 128), lambda i: (0, 0)),
            pl.BlockSpec((576, 256), lambda i: (0, 0)),
            pl.BlockSpec((9, 128, 128), lambda i: (0, 0, 0)),
            pl.BlockSpec((1, 128), lambda i: (0, 0)),
            pl.BlockSpec((64, 64), lambda i: (0, 0)),
            pl.BlockSpec((144, 16), lambda i: (0, 0)),
            pl.BlockSpec((9, 128, 128), lambda i: (0, 0, 0)),
            pl.BlockSpec((1, 128), lambda i: (0, 0)),
        ],
        out_specs=pl.BlockSpec((16, 128), lambda i: (i, 0)),
        compiler_params=pltpu.CompilerParams(
            dimension_semantics=("parallel",)),
    )(patches1, kp["w1"], kp["b1"], kp["S2"], kp["w2"], kp["b2"],
      kp["P"], kp["S3"], kp["w3"], kp["b3"])


# ---------------------------------------------------------------------------
# Pallas kernel 2: fused tail (job path + fusion + condition + horizon + heads)
# ---------------------------------------------------------------------------
def _head_kernel(mapf_ref, jobs_ref, r_ref, h_ref,
                 wemb_ref, bemb_ref, wenc_ref, benc_ref,
                 fwm_ref, fwj_ref, fb_ref, fg_ref, fbeta_ref,
                 cw_ref, cb_ref, cg_ref, cbeta_ref,
                 hw_ref, hb_ref,
                 w1_ref, b1_ref, wp2_ref, bp2_ref, wv2_ref, bv2_ref,
                 pi_ref, v_ref):
    f32, bf16 = jnp.float32, jnp.bfloat16

    def layernorm(x, g, beta):
        mu = jnp.mean(x, axis=-1, keepdims=True)
        var = jnp.mean((x - mu) ** 2, axis=-1, keepdims=True)
        return (x - mu) * jax.lax.rsqrt(var + 1e-5) * g + beta

    def sigmoid(x):
        return pl.reciprocal(1.0 + jnp.exp(-x), approx=True)

    # job path: block-diagonal embedding weight -> encoder + ReLU
    jemb = jnp.dot(jobs_ref[...], wemb_ref[...],
                   preferred_element_type=f32) + bemb_ref[...]
    jfeat = jnp.maximum(
        jnp.dot(jemb.astype(bf16), wenc_ref[...],
                preferred_element_type=f32) + benc_ref[...], 0.0)

    # feature_fusion (split weights: map part + job part, no concat) + LN
    s = (jnp.dot(mapf_ref[...], fwm_ref[...], preferred_element_type=f32)
         + jnp.dot(jfeat.astype(bf16), fwj_ref[...], preferred_element_type=f32)
         + fb_ref[...])
    s = layernorm(jnp.maximum(s, 0.0), fg_ref[...], fbeta_ref[...])

    # condition_encoder + LN
    c = jnp.dot(r_ref[...], cw_ref[...], preferred_element_type=f32) + cb_ref[...]
    c = layernorm(jnp.maximum(c, 0.0), cg_ref[...], cbeta_ref[...])

    # horizon_encoder: Linear(1,H) + Sigmoid (broadcast multiply)
    hz = sigmoid(h_ref[...] * hw_ref[...] + hb_ref[...])
    z = s * (c * hz)

    # pi / v first layers fused into one [H, 2H] matmul, then split
    h1 = jnp.maximum(
        jnp.dot(z.astype(bf16), w1_ref[...], preferred_element_type=f32)
        + b1_ref[...], 0.0)
    hid = wp2_ref.shape[0]
    p1 = h1[:, :hid]
    v1 = h1[:, hid:]
    pi = jnp.dot(p1.astype(bf16), wp2_ref[...],
                 preferred_element_type=f32) + bp2_ref[...]
    vv = jnp.dot(v1.astype(bf16), wv2_ref[...],
                 preferred_element_type=f32) + bv2_ref[...]
    pi_ref[...] = pi.astype(pi_ref.dtype)
    v_ref[...] = vv.astype(v_ref.dtype)


def pcn_head(kp, mapf, jobs2, r, h):
    B = mapf.shape[0]
    action_dim = kp["wp2"].shape[1]
    reward_dim = kp["wv2"].shape[1]
    args = (mapf, jobs2, r, h,
            kp["wemb"], kp["bemb"], kp["wenc"], kp["benc"],
            kp["fwm"], kp["fwj"], kp["fb"], kp["fg"], kp["fbeta"],
            kp["cw"], kp["cb"], kp["cg"], kp["cbeta"],
            kp["hw"], kp["hb"],
            kp["w1cat"], kp["b1cat"],
            kp["wp2"], kp["bp2"], kp["wv2"], kp["bv2"])
    out_shapes = (jax.ShapeDtypeStruct((B, action_dim), jnp.float32),
                  jax.ShapeDtypeStruct((B, reward_dim), jnp.float32))
    # Small single-block kernel: default full-array VMEM blocks, no grid.
    return pl.pallas_call(_head_kernel, out_shape=out_shapes)(*args)


# ---------------------------------------------------------------------------
# JAX glue: InputPreprocessor + conv1 im2col (pool-ordered rows)
# ---------------------------------------------------------------------------
def preprocess(x, n_premise, n_cloud, window):
    """InputPreprocessor: split observation into map stack + job features."""
    B = x.shape[0]
    premise_size = n_premise * window
    cloud_size = n_cloud * window
    map_total = premise_size + cloud_size
    premise = x[:, :premise_size].reshape(B, n_premise, window)
    cloud = x[:, premise_size:map_total].reshape(B, n_cloud, window)
    max_nodes = max(n_premise, n_cloud)
    if n_premise < max_nodes:
        premise = jnp.concatenate(
            [premise, jnp.zeros((B, max_nodes - n_premise, window), x.dtype)], axis=1)
    if n_cloud < max_nodes:
        cloud = jnp.concatenate(
            [cloud, jnp.zeros((B, max_nodes - n_cloud, window), x.dtype)], axis=1)
    maps_nchw = jnp.stack([premise, cloud], axis=1)            # [B, 2, max_nodes, window]
    jobs = x[:, map_total:].reshape(B, 5, 8)                   # [B, 5, 8]
    return maps_nchw, jobs


def _conv1_patches(maps_nhwc):
    """im2col for conv1 with rows ordered (b, pool_tap, ph, pw) so the 2x2
    maxpool becomes a max over contiguous 256-row blocks inside the kernel."""
    B = maps_nhwc.shape[0]
    xp = jnp.pad(maps_nhwc, ((0, 0), (2, 2), (2, 2), (0, 0)))
    cols = []
    for kh in range(5):
        for kw in range(5):
            cols.append(xp[:, kh:kh + 64:2, kw:kw + 64:2, :])   # [B,32,32,2]
    p = jnp.stack(cols, axis=-1)                # [B,32,32,2,25]
    p = p.reshape(B, 32, 32, 50)                # K index = c*25 + kh*5 + kw
    p = p.reshape(B, 16, 2, 16, 2, 50).transpose(0, 2, 4, 1, 3, 5)
    return p.reshape(B * 1024, 50)


# ---------------------------------------------------------------------------
# Full forward pass
# ---------------------------------------------------------------------------
def pcn_forward(kp, x, r, h, *, n_premise, n_cloud, window):
    B = x.shape[0]
    maps_nchw, jobs = preprocess(x, n_premise, n_cloud, window)
    # TODO(synk): only the 64x64 map configuration is implemented; for other
    # map sizes AdaptiveAvgPool2d would actually resample (here it is identity).
    assert maps_nchw.shape[2] == 64 and maps_nchw.shape[3] == 64
    maps_nhwc = jnp.transpose(maps_nchw, (0, 2, 3, 1))          # NCHW -> NHWC
    patches1 = _conv1_patches(maps_nhwc).astype(jnp.bfloat16)   # [B*1024, 50]
    conv_out = map_cnn(patches1, kp, B)                         # [B*16, 128] bf16
    mapf = conv_out.reshape(B, 16 * 128)        # NHWC-flattened, channel-padded
    jobs2 = jobs.reshape(B, 40).astype(jnp.bfloat16)
    return pcn_head(kp, mapf, jobs2, r, h)


# ---------------------------------------------------------------------------
# Parameter preparation: reshape / pad / reorder weights into kernel layout
# ---------------------------------------------------------------------------
def prepare_params(p):
    bf = jnp.bfloat16
    f32 = jnp.float32
    kp = {}

    # conv1: [16,2,5,5] -> [50,16] -> pad Cout to 128 lanes
    w1 = p["conv1_w"].reshape(16, 50).T
    kp["w1"] = jnp.zeros((50, 128), f32).at[:, :16].set(w1).astype(bf)
    kp["b1"] = jnp.zeros((1, 128), f32).at[0, :16].set(p["conv1_b"])

    # conv2 / conv3 per-tap weights, padded to [9,128,128]
    w2t = jnp.transpose(p["conv2_w"], (2, 3, 1, 0)).reshape(9, 16, 32)
    kp["w2"] = jnp.zeros((9, 128, 128), f32).at[:, :16, :32].set(w2t).astype(bf)
    kp["b2"] = jnp.zeros((1, 128), f32).at[0, :32].set(p["conv2_b"])
    w3t = jnp.transpose(p["conv3_w"], (2, 3, 1, 0)).reshape(9, 32, 64)
    kp["w3"] = jnp.zeros((9, 128, 128), f32).at[:, :32, :64].set(w3t).astype(bf)
    kp["b3"] = jnp.zeros((1, 128), f32).at[0, :64].set(p["conv3_b"])

    kp["S2"], kp["P"], kp["S3"] = _build_selectors()

    # job path: block-diagonal embedding weight (same Linear(8,32) per job)
    wbd = jnp.zeros((40, 160), f32)
    for j in range(5):
        wbd = wbd.at[j * 8:(j + 1) * 8, j * 32:(j + 1) * 32].set(p["jobemb_w"])
    kp["wemb"] = wbd.astype(bf)
    kp["bemb"] = jnp.tile(p["jobemb_b"], 5).reshape(1, 160)
    kp["wenc"] = p["jobenc_w"].astype(bf)
    kp["benc"] = p["jobenc_b"].reshape(1, -1)

    # feature_fusion: split into map part (reordered to NHWC + padded channels)
    # and job part; avoids any concat / transpose of activations.
    hidden = p["fuse_w"].shape[1]
    fwm = p["fuse_w"][:1024].reshape(64, 16, hidden)      # [c, r, :]
    fwm = jnp.transpose(fwm, (1, 0, 2))                   # [r, c, :]
    fwm = jnp.pad(fwm, ((0, 0), (0, 64), (0, 0)))         # pad channels to 128
    kp["fwm"] = fwm.reshape(2048, hidden).astype(bf)
    kp["fwj"] = p["fuse_w"][1024:].astype(bf)
    kp["fb"] = p["fuse_b"].reshape(1, -1)
    kp["fg"] = p["fuse_g"].reshape(1, -1)
    kp["fbeta"] = p["fuse_beta"].reshape(1, -1)

    kp["cw"] = p["cond_w"]                                 # tiny K=2 matmul, keep f32
    kp["cb"] = p["cond_b"].reshape(1, -1)
    kp["cg"] = p["cond_g"].reshape(1, -1)
    kp["cbeta"] = p["cond_beta"].reshape(1, -1)

    kp["hw"] = p["hor_w"].reshape(1, -1)
    kp["hb"] = p["hor_b"].reshape(1, -1)

    # pi/v first layers fused into a single [H, 2H] weight
    kp["w1cat"] = jnp.concatenate([p["pi1_w"], p["v1_w"]], axis=1).astype(bf)
    kp["b1cat"] = jnp.concatenate([p["pi1_b"], p["v1_b"]]).reshape(1, -1)
    kp["wp2"] = p["pi2_w"].astype(bf)
    kp["bp2"] = p["pi2_b"].reshape(1, -1)
    kp["wv2"] = p["v2_w"].astype(bf)
    kp["bv2"] = p["v2_b"].reshape(1, -1)
    return kp


# ---------------------------------------------------------------------------
# Deterministic parameter init (synthetic; shapes follow the PyTorch __init__)
# ---------------------------------------------------------------------------
def make_params(key, hidden=256, reward_dim=2, action_dim=2):
    keys = iter(jax.random.split(key, 48))

    def lin(fan_in, fan_out):
        w = jax.random.normal(next(keys), (fan_in, fan_out), jnp.float32) / jnp.sqrt(fan_in)
        b = 0.01 * jax.random.normal(next(keys), (fan_out,), jnp.float32)
        return w, b

    def conv(cout, cin, kh, kw):
        fan = cin * kh * kw
        w = jax.random.normal(next(keys), (cout, cin, kh, kw), jnp.float32) / jnp.sqrt(fan)
        b = 0.01 * jax.random.normal(next(keys), (cout,), jnp.float32)
        return w, b

    def ln(dim):
        g = 1.0 + 0.1 * jax.random.normal(next(keys), (dim,), jnp.float32)
        bt = 0.1 * jax.random.normal(next(keys), (dim,), jnp.float32)
        return g, bt

    p = {}
    p["conv1_w"], p["conv1_b"] = conv(16, 2, 5, 5)
    p["conv2_w"], p["conv2_b"] = conv(32, 16, 3, 3)
    p["conv3_w"], p["conv3_b"] = conv(64, 32, 3, 3)
    p["jobemb_w"], p["jobemb_b"] = lin(8, 32)
    p["jobenc_w"], p["jobenc_b"] = lin(32 * 5, 64)
    p["fuse_w"], p["fuse_b"] = lin(64 * 4 * 4 + 64, hidden)
    p["fuse_g"], p["fuse_beta"] = ln(hidden)
    p["cond_w"], p["cond_b"] = lin(reward_dim, hidden)
    p["cond_g"], p["cond_beta"] = ln(hidden)
    wh, bh = lin(1, hidden)
    p["hor_w"], p["hor_b"] = wh.reshape(1, hidden), bh
    p["pi1_w"], p["pi1_b"] = lin(hidden, hidden)
    p["pi2_w"], p["pi2_b"] = lin(hidden, action_dim)
    p["v1_w"], p["v1_b"] = lin(hidden, hidden)
    p["v2_w"], p["v2_b"] = lin(hidden, reward_dim)
    return p


# ---------------------------------------------------------------------------
# Pure-JAX/XLA reference (for a loose numerical cross-check)
# ---------------------------------------------------------------------------
def reference_forward(params, x, r, h, *, n_premise, n_cloud, window):
    B = x.shape[0]
    maps, jobs = preprocess(x, n_premise, n_cloud, window)     # NCHW

    def conv(a, w, b, stride, pad):
        y = jax.lax.conv_general_dilated(
            a, w, (stride, stride), [(pad, pad), (pad, pad)],
            dimension_numbers=("NCHW", "OIHW", "NCHW"))
        return jax.nn.relu(y + b[None, :, None, None])

    def maxpool(a):
        return jax.lax.reduce_window(a, -jnp.inf, jax.lax.max,
                                     (1, 1, 2, 2), (1, 1, 2, 2), "VALID")

    a = maxpool(conv(maps, params["conv1_w"], params["conv1_b"], 2, 2))
    a = maxpool(conv(a, params["conv2_w"], params["conv2_b"], 2, 1))
    a = conv(a, params["conv3_w"], params["conv3_b"], 1, 1)
    map_features = a.reshape(B, -1)                            # NCHW flatten

    emb = jobs.reshape(B * 5, 8) @ params["jobemb_w"] + params["jobemb_b"]
    jobf = jax.nn.relu(emb.reshape(B, 160) @ params["jobenc_w"] + params["jobenc_b"])
    comb = jnp.concatenate([map_features, jobf], axis=1)

    def ln(v, g, b):
        mu = v.mean(-1, keepdims=True)
        var = ((v - mu) ** 2).mean(-1, keepdims=True)
        return (v - mu) / jnp.sqrt(var + 1e-5) * g + b

    s = ln(jax.nn.relu(comb @ params["fuse_w"] + params["fuse_b"]),
           params["fuse_g"], params["fuse_beta"])
    c = ln(jax.nn.relu(r @ params["cond_w"] + params["cond_b"]),
           params["cond_g"], params["cond_beta"])
    hz = jax.nn.sigmoid(h @ params["hor_w"] + params["hor_b"])
    z = s * (c * hz)
    p1 = jax.nn.relu(z @ params["pi1_w"] + params["pi1_b"])
    pi = p1 @ params["pi2_w"] + params["pi2_b"]
    v1 = jax.nn.relu(z @ params["v1_w"] + params["v1_b"])
    v = v1 @ params["v2_w"] + params["v2_b"]
    return pi, v


# ---------------------------------------------------------------------------
if __name__ == "__main__":
    # Model configuration (CNN-valid: 64x64 map -> 4x4 after pools).
    N_PREMISE, N_CLOUD, WINDOW = 64, 32, 64
    HIDDEN, REWARD_DIM, ACTION_DIM = 256, 2, 2
    BATCH = 2
    OBS_DIM = N_PREMISE * WINDOW + N_CLOUD * WINDOW + 5 * 8    # 6184

    key = jax.random.PRNGKey(0)
    k_param, k_x, k_r, k_h = jax.random.split(key, 4)
    params = make_params(k_param, HIDDEN, REWARD_DIM, ACTION_DIM)
    kparams = prepare_params(params)

    x = jax.random.normal(k_x, (BATCH, OBS_DIM), jnp.float32)
    r = jax.random.normal(k_r, (BATCH, REWARD_DIM), jnp.float32)
    h = jax.random.uniform(k_h, (BATCH, 1), jnp.float32) * 10.0

    fwd = jax.jit(functools.partial(
        pcn_forward, n_premise=N_PREMISE, n_cloud=N_CLOUD, window=WINDOW))
    pi, v = jax.block_until_ready(fwd(kparams, x, r, h))

    assert pi.shape == (BATCH, ACTION_DIM), pi.shape
    assert v.shape == (BATCH, REWARD_DIM), v.shape
    assert bool(jnp.all(jnp.isfinite(pi))) and bool(jnp.all(jnp.isfinite(v)))

    # Loose cross-check against a pure-XLA reference (bf16 MXU operands in the
    # Pallas path -> generous tolerance; catches any structural/ordering bug).
    pi_ref, v_ref = reference_forward(
        params, x, r, h, n_premise=N_PREMISE, n_cloud=N_CLOUD, window=WINDOW)
    assert bool(jnp.allclose(pi, pi_ref, rtol=0.2, atol=0.2)), (pi, pi_ref)
    assert bool(jnp.allclose(v, v_ref, rtol=0.2, atol=0.2)), (v, v_ref)

    print("KERNEL_OK")
</pallas_src>

<mosaic_0001>
module attributes {stable_mosaic.version = 11 : i64} {
  func.func @_map_cnn_kernel(%arg0: i32, %arg1: memref<1024x50xbf16, #tpu.memory_space<vmem>>, %arg2: memref<50x128xbf16, #tpu.memory_space<vmem>>, %arg3: memref<1x128xf32, #tpu.memory_space<vmem>>, %arg4: memref<576x256xbf16, #tpu.memory_space<vmem>>, %arg5: memref<9x128x128xbf16, #tpu.memory_space<vmem>>, %arg6: memref<1x128xf32, #tpu.memory_space<vmem>>, %arg7: memref<64x64xbf16, #tpu.memory_space<vmem>>, %arg8: memref<144x16xbf16, #tpu.memory_space<vmem>>, %arg9: memref<9x128x128xbf16, #tpu.memory_space<vmem>>, %arg10: memref<1x128xf32, #tpu.memory_space<vmem>>, %arg11: memref<16x128xbf16, #tpu.memory_space<vmem>>) attributes {dimension_semantics = [#tpu.dimension_semantics<parallel>], iteration_bounds = array<i64: 2>, scalar_prefetch = 0 : i64, scratch_operands = 0 : i64, tpu.core_type = #tpu.core_type<tc>, window_params = [{transform_indices = @transform_0, window_bounds = array<i64: 1024, 50>}, {pipeline_mode = #tpu.pipeline_mode<synchronous>, transform_indices = @transform_1, window_bounds = array<i64: 50, 128>}, {pipeline_mode = #tpu.pipeline_mode<synchronous>, transform_indices = @transform_2, window_bounds = array<i64: 1, 128>}, {pipeline_mode = #tpu.pipeline_mode<synchronous>, transform_indices = @transform_3, window_bounds = array<i64: 576, 256>}, {pipeline_mode = #tpu.pipeline_mode<synchronous>, transform_indices = @transform_4, window_bounds = array<i64: 9, 128, 128>}, {pipeline_mode = #tpu.pipeline_mode<synchronous>, transform_indices = @transform_5, window_bounds = array<i64: 1, 128>}, {pipeline_mode = #tpu.pipeline_mode<synchronous>, transform_indices = @transform_6, window_bounds = array<i64: 64, 64>}, {pipeline_mode = #tpu.pipeline_mode<synchronous>, transform_indices = @transform_7, window_bounds = array<i64: 144, 16>}, {pipeline_mode = #tpu.pipeline_mode<synchronous>, transform_indices = @transform_8, window_bounds = array<i64: 9, 128, 128>}, {pipeline_mode = #tpu.pipeline_mode<synchronous>, transform_indices = @transform_9, window_bounds = array<i64: 1, 128>}, {transform_indices = @transform_10, window_bounds = array<i64: 16, 128>}]} {
    %c0 = arith.constant 0 : index
    %c0_0 = arith.constant 0 : index
    %0 = vector.load %arg2[%c0, %c0_0] : memref<50x128xbf16, #tpu.memory_space<vmem>>, vector<50x128xbf16>
    %c0_1 = arith.constant 0 : index
    %c0_2 = arith.constant 0 : index
    %1 = vector.load %arg3[%c0_1, %c0_2] : memref<1x128xf32, #tpu.memory_space<vmem>>, vector<1x128xf32>
    %c0_3 = arith.constant 0 : index
    %c0_4 = arith.constant 0 : index
    %2 = vector.load %arg1[%c0_3, %c0_4] : memref<1024x50xbf16, #tpu.memory_space<vmem>>, vector<256x50xbf16>
    %cst = arith.constant dense<0.000000e+00> : vector<256x128xf32>
    %3 = tpu.matmul %2, %0, %cst {dimension_numbers = #tpu.dot_dimension_numbers<[1], [0], [0], [1], [0, 0, 1, 1], [], []>} : vector<256x50xbf16>, vector<50x128xbf16>, vector<256x128xf32> -> vector<256x128xf32>
    %4 = vector.broadcast %1 : vector<1x128xf32> to vector<256x128xf32>
    %5 = arith.addf %3, %4 : vector<256x128xf32>
    %cst_5 = arith.constant 0.000000e+00 : f32
    %6 = vector.broadcast %cst_5 : f32 to vector<256x128xf32>
    %7 = arith.maximumf %5, %6 : vector<256x128xf32>
    %c256 = arith.constant 256 : index
    %c0_6 = arith.constant 0 : index
    %8 = vector.load %arg1[%c256, %c0_6] : memref<1024x50xbf16, #tpu.memory_space<vmem>>, vector<256x50xbf16>
    %cst_7 = arith.constant dense<0.000000e+00> : vector<256x128xf32>
    %9 = tpu.matmul %8, %0, %cst_7 {dimension_numbers = #tpu.dot_dimension_numbers<[1], [0], [0], [1], [0, 0, 1, 1], [], []>} : vector<256x50xbf16>, vector<50x128xbf16>, vector<256x128xf32> -> vector<256x128xf32>
    %10 = vector.broadcast %1 : vector<1x128xf32> to vector<256x128xf32>
    %11 = arith.addf %9, %10 : vector<256x128xf32>
    %cst_8 = arith.constant 0.000000e+00 : f32
    %12 = vector.broadcast %cst_8 : f32 to vector<256x128xf32>
    %13 = arith.maximumf %11, %12 : vector<256x128xf32>
    %14 = arith.maximumf %7, %13 : vector<256x128xf32>
    %c512 = arith.constant 512 : index
    %c0_9 = arith.constant 0 : index
    %15 = vector.load %arg1[%c512, %c0_9] : memref<1024x50xbf16, #tpu.memory_space<vmem>>, vector<256x50xbf16>
    %cst_10 = arith.constant dense<0.000000e+00> : vector<256x128xf32>
    %16 = tpu.matmul %15, %0, %cst_10 {dimension_numbers = #tpu.dot_dimension_numbers<[1], [0], [0], [1], [0, 0, 1, 1], [], []>} : vector<256x50xbf16>, vector<50x128xbf16>, vector<256x128xf32> -> vector<256x128xf32>
    %17 = vector.broadcast %1 : vector<1x128xf32> to vector<256x128xf32>
    %18 = arith.addf %16, %17 : vector<256x128xf32>
    %cst_11 = arith.constant 0.000000e+00 : f32
    %19 = vector.broadcast %cst_11 : f32 to vector<256x128xf32>
    %20 = arith.maximumf %18, %19 : vector<256x128xf32>
    %21 = arith.maximumf %14, %20 : vector<256x128xf32>
    %c768 = arith.constant 768 : index
    %c0_12 = arith.constant 0 : index
    %22 = vector.load %arg1[%c768, %c0_12] : memref<1024x50xbf16, #tpu.memory_space<vmem>>, vector<256x50xbf16>
    %cst_13 = arith.constant dense<0.000000e+00> : vector<256x128xf32>
    %23 = tpu.matmul %22, %0, %cst_13 {dimension_numbers = #tpu.dot_dimension_numbers<[1], [0], [0], [1], [0, 0, 1, 1], [], []>} : vector<256x50xbf16>, vector<50x128xbf16>, vector<256x128xf32> -> vector<256x128xf32>
    %24 = vector.broadcast %1 : vector<1x128xf32> to vector<256x128xf32>
    %25 = arith.addf %23, %24 : vector<256x128xf32>
    %cst_14 = arith.constant 0.000000e+00 : f32
    %26 = vector.broadcast %cst_14 : f32 to vector<256x128xf32>
    %27 = arith.maximumf %25, %26 : vector<256x128xf32>
    %28 = arith.maximumf %21, %27 : vector<256x128xf32>
    %29 = arith.truncf %28 : vector<256x128xf32> to vector<256x128xbf16>
    %cst_15 = arith.constant 0.000000e+00 : f32
    %30 = vector.broadcast %cst_15 : f32 to vector<64x128xf32>
    %c0_16 = arith.constant 0 : index
    %c0_17 = arith.constant 0 : index
    %31 = vector.load %arg4[%c0_16, %c0_17] : memref<576x256xbf16, #tpu.memory_space<vmem>>, vector<64x256xbf16>
    %cst_18 = arith.constant dense<0.000000e+00> : vector<64x128xf32>
    %32 = tpu.matmul %31, %29, %cst_18 {dimension_numbers = #tpu.dot_dimension_numbers<[1], [0], [0], [1], [0, 0, 1, 1], [], []>} : vector<64x256xbf16>, vector<256x128xbf16>, vector<64x128xf32> -> vector<64x128xf32>
    %33 = arith.truncf %32 : vector<64x128xf32> to vector<64x128xbf16>
    %c0_19 = arith.constant 0 : index
    %c0_20 = arith.constant 0 : index
    %c0_21 = arith.constant 0 : index
    %34 = vector.load %arg5[%c0_19, %c0_20, %c0_21] : memref<9x128x128xbf16, #tpu.memory_space<vmem>>, vector<1x128x128xbf16>
    %35 = vector.shape_cast %34 : vector<1x128x128xbf16> to vector<128x128xbf16>
    %cst_22 = arith.constant dense<0.000000e+00> : vector<64x128xf32>
    %36 = tpu.matmul %33, %35, %cst_22 {dimension_numbers = #tpu.dot_dimension_numbers<[1], [0], [0], [1], [0, 0, 1, 1], [], []>} : vector<64x128xbf16>, vector<128x128xbf16>, vector<64x128xf32> -> vector<64x128xf32>
    %37 = arith.addf %30, %36 : vector<64x128xf32>
    %c64 = arith.constant 64 : index
    %c0_23 = arith.constant 0 : index
    %38 = vector.load %arg4[%c64, %c0_23] : memref<576x256xbf16, #tpu.memory_space<vmem>>, vector<64x256xbf16>
    %cst_24 = arith.constant dense<0.000000e+00> : vector<64x128xf32>
    %39 = tpu.matmul %38, %29, %cst_24 {dimension_numbers = #tpu.dot_dimension_numbers<[1], [0], [0], [1], [0, 0, 1, 1], [], []>} : vector<64x256xbf16>, vector<256x128xbf16>, vector<64x128xf32> -> vector<64x128xf32>
    %40 = arith.truncf %39 : vector<64x128xf32> to vector<64x128xbf16>
    %c1 = arith.constant 1 : index
    %c0_25 = arith.constant 0 : index
    %c0_26 = arith.constant 0 : index
    %41 = vector.load %arg5[%c1, %c0_25, %c0_26] : memref<9x128x128xbf16, #tpu.memory_space<vmem>>, vector<1x128x128xbf16>
    %42 = vector.shape_cast %41 : vector<1x128x128xbf16> to vector<128x128xbf16>
    %cst_27 = arith.constant dense<0.000000e+00> : vector<64x128xf32>
    %43 = tpu.matmul %40, %42, %cst_27 {dimension_numbers = #tpu.dot_dimension_numbers<[1], [0], [0], [1], [0, 0, 1, 1], [], []>} : vector<64x128xbf16>, vector<128x128xbf16>, vector<64x128xf32> -> vector<64x128xf32>
    %44 = arith.addf %37, %43 : vector<64x128xf32>
    %c128 = arith.constant 128 : index
    %c0_28 = arith.constant 0 : index
    %45 = vector.load %arg4[%c128, %c0_28] : memref<576x256xbf16, #tpu.memory_space<vmem>>, vector<64x256xbf16>
    %cst_29 = arith.constant dense<0.000000e+00> : vector<64x128xf32>
    %46 = tpu.matmul %45, %29, %cst_29 {dimension_numbers = #tpu.dot_dimension_numbers<[1], [0], [0], [1], [0, 0, 1, 1], [], []>} : vector<64x256xbf16>, vector<256x128xbf16>, vector<64x128xf32> -> vector<64x128xf32>
    %47 = arith.truncf %46 : vector<64x128xf32> to vector<64x128xbf16>
    %c2 = arith.constant 2 : index
    %c0_30 = arith.constant 0 : index
    %c0_31 = arith.constant 0 : index
    %48 = vector.load %arg5[%c2, %c0_30, %c0_31] : memref<9x128x128xbf16, #tpu.memory_space<vmem>>, vector<1x128x128xbf16>
    %49 = vector.shape_cast %48 : vector<1x128x128xbf16> to vector<128x128xbf16>
    %cst_32 = arith.constant dense<0.000000e+00> : vector<64x128xf32>
    %50 = tpu.matmul %47, %49, %cst_32 {dimension_numbers = #tpu.dot_dimension_numbers<[1], [0], [0], [1], [0, 0, 1, 1], [], []>} : vector<64x128xbf16>, vector<128x128xbf16>, vector<64x128xf32> -> vector<64x128xf32>
    %51 = arith.addf %44, %50 : vector<64x128xf32>
    %c192 = arith.constant 192 : index
    %c0_33 = arith.constant 0 : index
    %52 = vector.load %arg4[%c192, %c0_33] : memref<576x256xbf16, #tpu.memory_space<vmem>>, vector<64x256xbf16>
    %cst_34 = arith.constant dense<0.000000e+00> : vector<64x128xf32>
    %53 = tpu.matmul %52, %29, %cst_34 {dimension_numbers = #tpu.dot_dimension_numbers<[1], [0], [0], [1], [0, 0, 1, 1], [], []>} : vector<64x256xbf16>, vector<256x128xbf16>, vector<64x128xf32> -> vector<64x128xf32>
    %54 = arith.truncf %53 : vector<64x128xf32> to vector<64x128xbf16>
    %c3 = arith.constant 3 : index
    %c0_35 = arith.constant 0 : index
    %c0_36 = arith.constant 0 : index
    %55 = vector.load %arg5[%c3, %c0_35, %c0_36] : memref<9x128x128xbf16, #tpu.memory_space<vmem>>, vector<1x128x128xbf16>
    %56 = vector.shape_cast %55 : vector<1x128x128xbf16> to vector<128x128xbf16>
    %cst_37 = arith.constant dense<0.000000e+00> : vector<64x128xf32>
    %57 = tpu.matmul %54, %56, %cst_37 {dimension_numbers = #tpu.dot_dimension_numbers<[1], [0], [0], [1], [0, 0, 1, 1], [], []>} : vector<64x128xbf16>, vector<128x128xbf16>, vector<64x128xf32> -> vector<64x128xf32>
    %58 = arith.addf %51, %57 : vector<64x128xf32>
    %c256_38 = arith.constant 256 : index
    %c0_39 = arith.constant 0 : index
    %59 = vector.load %arg4[%c256_38, %c0_39] : memref<576x256xbf16, #tpu.memory_space<vmem>>, vector<64x256xbf16>
    %cst_40 = arith.constant dense<0.000000e+00> : vector<64x128xf32>
    %60 = tpu.matmul %59, %29, %cst_40 {dimension_numbers = #tpu.dot_dimension_numbers<[1], [0], [0], [1], [0, 0, 1, 1], [], []>} : vector<64x256xbf16>, vector<256x128xbf16>, vector<64x128xf32> -> vector<64x128xf32>
    %61 = arith.truncf %60 : vector<64x128xf32> to vector<64x128xbf16>
    %c4 = arith.constant 4 : index
    %c0_41 = arith.constant 0 : index
    %c0_42 = arith.constant 0 : index
    %62 = vector.load %arg5[%c4, %c0_41, %c0_42] : memref<9x128x128xbf16, #tpu.memory_space<vmem>>, vector<1x128x128xbf16>
    %63 = vector.shape_cast %62 : vector<1x128x128xbf16> to vector<128x128xbf16>
    %cst_43 = arith.constant dense<0.000000e+00> : vector<64x128xf32>
    %64 = tpu.matmul %61, %63, %cst_43 {dimension_numbers = #tpu.dot_dimension_numbers<[1], [0], [0], [1], [0, 0, 1, 1], [], []>} : vector<64x128xbf16>, vector<128x128xbf16>, vector<64x128xf32> -> vector<64x128xf32>
    %65 = arith.addf %58, %64 : vector<64x128xf32>
    %c320 = arith.constant 320 : index
    %c0_44 = arith.constant 0 : index
    %66 = vector.load %arg4[%c320, %c0_44] : memref<576x256xbf16, #tpu.memory_space<vmem>>, vector<64x256xbf16>
    %cst_45 = arith.constant dense<0.000000e+00> : vector<64x128xf32>
    %67 = tpu.matmul %66, %29, %cst_45 {dimension_numbers = #tpu.dot_dimension_numbers<[1], [0], [0], [1], [0, 0, 1, 1], [], []>} : vector<64x256xbf16>, vector<256x128xbf16>, vector<64x128xf32> -> vector<64x128xf32>
    %68 = arith.truncf %67 : vector<64x128xf32> to vector<64x128xbf16>
    %c5 = arith.constant 5 : index
    %c0_46 = arith.constant 0 : index
    %c0_47 = arith.constant 0 : index
    %69 = vector.load %arg5[%c5, %c0_46, %c0_47] : memref<9x128x128xbf16, #tpu.memory_space<vmem>>, vector<1x128x128xbf16>
    %70 = vector.shape_cast %69 : vector<1x128x128xbf16> to vector<128x128xbf16>
    %cst_48 = arith.constant dense<0.000000e+00> : vector<64x128xf32>
    %71 = tpu.matmul %68, %70, %cst_48 {dimension_numbers = #tpu.dot_dimension_numbers<[1], [0], [0], [1], [0, 0, 1, 1], [], []>} : vector<64x128xbf16>, vector<128x128xbf16>, vector<64x128xf32> -> vector<64x128xf32>
    %72 = arith.addf %65, %71 : vector<64x128xf32>
    %c384 = arith.constant 384 : index
    %c0_49 = arith.constant 0 : index
    %73 = vector.load %arg4[%c384, %c0_49] : memref<576x256xbf16, #tpu.memory_space<vmem>>, vector<64x256xbf16>
    %cst_50 = arith.constant dense<0.000000e+00> : vector<64x128xf32>
    %74 = tpu.matmul %73, %29, %cst_50 {dimension_numbers = #tpu.dot_dimension_numbers<[1], [0], [0], [1], [0, 0, 1, 1], [], []>} : vector<64x256xbf16>, vector<256x128xbf16>, vector<64x128xf32> -> vector<64x128xf32>
    %75 = arith.truncf %74 : vector<64x128xf32> to vector<64x128xbf16>
    %c6 = arith.constant 6 : index
    %c0_51 = arith.constant 0 : index
    %c0_52 = arith.constant 0 : index
    %76 = vector.load %arg5[%c6, %c0_51, %c0_52] : memref<9x128x128xbf16, #tpu.memory_space<vmem>>, vector<1x128x128xbf16>
    %77 = vector.shape_cast %76 : vector<1x128x128xbf16> to vector<128x128xbf16>
    %cst_53 = arith.constant dense<0.000000e+00> : vector<64x128xf32>
    %78 = tpu.matmul %75, %77, %cst_53 {dimension_numbers = #tpu.dot_dimension_numbers<[1], [0], [0], [1], [0, 0, 1, 1], [], []>} : vector<64x128xbf16>, vector<128x128xbf16>, vector<64x128xf32> -> vector<64x128xf32>
    %79 = arith.addf %72, %78 : vector<64x128xf32>
    %c448 = arith.constant 448 : index
    %c0_54 = arith.constant 0 : index
    %80 = vector.load %arg4[%c448, %c0_54] : memref<576x256xbf16, #tpu.memory_space<vmem>>, vector<64x256xbf16>
    %cst_55 = arith.constant dense<0.000000e+00> : vector<64x128xf32>
    %81 = tpu.matmul %80, %29, %cst_55 {dimension_numbers = #tpu.dot_dimension_numbers<[1], [0], [0], [1], [0, 0, 1, 1], [], []>} : vector<64x256xbf16>, vector<256x128xbf16>, vector<64x128xf32> -> vector<64x128xf32>
    %82 = arith.truncf %81 : vector<64x128xf32> to vector<64x128xbf16>
    %c7 = arith.constant 7 : index
    %c0_56 = arith.constant 0 : index
    %c0_57 = arith.constant 0 : index
    %83 = vector.load %arg5[%c7, %c0_56, %c0_57] : memref<9x128x128xbf16, #tpu.memory_space<vmem>>, vector<1x128x128xbf16>
    %84 = vector.shape_cast %83 : vector<1x128x128xbf16> to vector<128x128xbf16>
    %cst_58 = arith.constant dense<0.000000e+00> : vector<64x128xf32>
    %85 = tpu.matmul %82, %84, %cst_58 {dimension_numbers = #tpu.dot_dimension_numbers<[1], [0], [0], [1], [0, 0, 1, 1], [], []>} : vector<64x128xbf16>, vector<128x128xbf16>, vector<64x128xf32> -> vector<64x128xf32>
    %86 = arith.addf %79, %85 : vector<64x128xf32>
    %c512_59 = arith.constant 512 : index
    %c0_60 = arith.constant 0 : index
    %87 = vector.load %arg4[%c512_59, %c0_60] : memref<576x256xbf16, #tpu.memory_space<vmem>>, vector<64x256xbf16>
    %cst_61 = arith.constant dense<0.000000e+00> : vector<64x128xf32>
    %88 = tpu.matmul %87, %29, %cst_61 {dimension_numbers = #tpu.dot_dimension_numbers<[1], [0], [0], [1], [0, 0, 1, 1], [], []>} : vector<64x256xbf16>, vector<256x128xbf16>, vector<64x128xf32> -> vector<64x128xf32>
    %89 = arith.truncf %88 : vector<64x128xf32> to vector<64x128xbf16>
    %c8 = arith.constant 8 : index
    %c0_62 = arith.constant 0 : index
    %c0_63 = arith.constant 0 : index
    %90 = vector.load %arg5[%c8, %c0_62, %c0_63] : memref<9x128x128xbf16, #tpu.memory_space<vmem>>, vector<1x128x128xbf16>
    %91 = vector.shape_cast %90 : vector<1x128x128xbf16> to vector<128x128xbf16>
    %cst_64 = arith.constant dense<0.000000e+00> : vector<64x128xf32>
    %92 = tpu.matmul %89, %91, %cst_64 {dimension_numbers = #tpu.dot_dimension_numbers<[1], [0], [0], [1], [0, 0, 1, 1], [], []>} : vector<64x128xbf16>, vector<128x128xbf16>, vector<64x128xf32> -> vector<64x128xf32>
    %93 = arith.addf %86, %92 : vector<64x128xf32>
    %c0_65 = arith.constant 0 : index
    %c0_66 = arith.constant 0 : index
    %94 = vector.load %arg6[%c0_65, %c0_66] : memref<1x128xf32, #tpu.memory_space<vmem>>, vector<1x128xf32>
    %95 = vector.broadcast %94 : vector<1x128xf32> to vector<64x128xf32>
    %96 = arith.addf %93, %95 : vector<64x128xf32>
    %cst_67 = arith.constant 0.000000e+00 : f32
    %97 = vector.broadcast %cst_67 : f32 to vector<64x128xf32>
    %98 = arith.maximumf %96, %97 : vector<64x128xf32>
    %99 = arith.truncf %98 : vector<64x128xf32> to vector<64x128xbf16>
    %c0_68 = arith.constant 0 : index
    %c0_69 = arith.constant 0 : index
    %100 = vector.load %arg7[%c0_68, %c0_69] : memref<64x64xbf16, #tpu.memory_space<vmem>>, vector<64x64xbf16>
    %cst_70 = arith.constant dense<0.000000e+00> : vector<64x128xf32>
    %101 = tpu.matmul %100, %99, %cst_70 {dimension_numbers = #tpu.dot_dimension_numbers<[1], [0], [0], [1], [0, 0, 1, 1], [], []>} : vector<64x64xbf16>, vector<64x128xbf16>, vector<64x128xf32> -> vector<64x128xf32>
    %102 = vector.extract_strided_slice %101 {offsets = [0, 0], sizes = [16, 128], strides = [1, 1]} : vector<64x128xf32> to vector<16x128xf32>
    %103 = vector.extract_strided_slice %101 {offsets = [16, 0], sizes = [16, 128], strides = [1, 1]} : vector<64x128xf32> to vector<16x128xf32>
    %104 = arith.maximumf %102, %103 : vector<16x128xf32>
    %105 = vector.extract_strided_slice %101 {offsets = [32, 0], sizes = [16, 128], strides = [1, 1]} : vector<64x128xf32> to vector<16x128xf32>
    %106 = vector.extract_strided_slice %101 {offsets = [48, 0], sizes = [16, 128], strides = [1, 1]} : vector<64x128xf32> to vector<16x128xf32>
    %107 = arith.maximumf %105, %106 : vector<16x128xf32>
    %108 = arith.maximumf %104, %107 : vector<16x128xf32>
    %109 = arith.truncf %108 : vector<16x128xf32> to vector<16x128xbf16>
    %cst_71 = arith.constant 0.000000e+00 : f32
    %110 = vector.broadcast %cst_71 : f32 to vector<16x128xf32>
    %c0_72 = arith.constant 0 : index
    %c0_73 = arith.constant 0 : index
    %111 = vector.load %arg8[%c0_72, %c0_73] : memref<144x16xbf16, #tpu.memory_space<vmem>>, vector<16x16xbf16>
    %cst_74 = arith.constant dense<0.000000e+00> : vector<16x128xf32>
    %112 = tpu.matmul %111, %109, %cst_74 {dimension_numbers = #tpu.dot_dimension_numbers<[1], [0], [0], [1], [0, 0, 1, 1], [], []>} : vector<16x16xbf16>, vector<16x128xbf16>, vector<16x128xf32> -> vector<16x128xf32>
    %113 = arith.truncf %112 : vector<16x128xf32> to vector<16x128xbf16>
    %c0_75 = arith.constant 0 : index
    %c0_76 = arith.constant 0 : index
    %c0_77 = arith.constant 0 : index
    %114 = vector.load %arg9[%c0_75, %c0_76, %c0_77] : memref<9x128x128xbf16, #tpu.memory_space<vmem>>, vector<1x128x128xbf16>
    %115 = vector.shape_cast %114 : vector<1x128x128xbf16> to vector<128x128xbf16>
    %cst_78 = arith.constant dense<0.000000e+00> : vector<16x128xf32>
    %116 = tpu.matmul %113, %115, %cst_78 {dimension_numbers = #tpu.dot_dimension_numbers<[1], [0], [0], [1], [0, 0, 1, 1], [], []>} : vector<16x128xbf16>, vector<128x128xbf16>, vector<16x128xf32> -> vector<16x128xf32>
    %117 = arith.addf %110, %116 : vector<16x128xf32>
    %c16 = arith.constant 16 : index
    %c0_79 = arith.constant 0 : index
    %118 = vector.load %arg8[%c16, %c0_79] : memref<144x16xbf16, #tpu.memory_space<vmem>>, vector<16x16xbf16>
    %cst_80 = arith.constant dense<0.000000e+00> : vector<16x128xf32>
    %119 = tpu.matmul %118, %109, %cst_80 {dimension_numbers = #tpu.dot_dimension_numbers<[1], [0], [0], [1], [0, 0, 1, 1], [], []>} : vector<16x16xbf16>, vector<16x128xbf16>, vector<16x128xf32> -> vector<16x128xf32>
    %120 = arith.truncf %119 : vector<16x128xf32> to vector<16x128xbf16>
    %c1_81 = arith.constant 1 : index
    %c0_82 = arith.constant 0 : index
    %c0_83 = arith.constant 0 : index
    %121 = vector.load %arg9[%c1_81, %c0_82, %c0_83] : memref<9x128x128xbf16, #tpu.memory_space<vmem>>, vector<1x128x128xbf16>
    %122 = vector.shape_cast %121 : vector<1x128x128xbf16> to vector<128x128xbf16>
    %cst_84 = arith.constant dense<0.000000e+00> : vector<16x128xf32>
    %123 = tpu.matmul %120, %122, %cst_84 {dimension_numbers = #tpu.dot_dimension_numbers<[1], [0], [0], [1], [0, 0, 1, 1], [], []>} : vector<16x128xbf16>, vector<128x128xbf16>, vector<16x128xf32> -> vector<16x128xf32>
    %124 = arith.addf %117, %123 : vector<16x128xf32>
    %c32 = arith.constant 32 : index
    %c0_85 = arith.constant 0 : index
    %125 = vector.load %arg8[%c32, %c0_85] : memref<144x16xbf16, #tpu.memory_space<vmem>>, vector<16x16xbf16>
    %cst_86 = arith.constant dense<0.000000e+00> : vector<16x128xf32>
    %126 = tpu.matmul %125, %109, %cst_86 {dimension_numbers = #tpu.dot_dimension_numbers<[1], [0], [0], [1], [0, 0, 1, 1], [], []>} : vector<16x16xbf16>, vector<16x128xbf16>, vector<16x128xf32> -> vector<16x128xf32>
    %127 = arith.truncf %126 : vector<16x128xf32> to vector<16x128xbf16>
    %c2_87 = arith.constant 2 : index
    %c0_88 = arith.constant 0 : index
    %c0_89 = arith.constant 0 : index
    %128 = vector.load %arg9[%c2_87, %c0_88, %c0_89] : memref<9x128x128xbf16, #tpu.memory_space<vmem>>, vector<1x128x128xbf16>
    %129 = vector.shape_cast %128 : vector<1x128x128xbf16> to vector<128x128xbf16>
    %cst_90 = arith.constant dense<0.000000e+00> : vector<16x128xf32>
    %130 = tpu.matmul %127, %129, %cst_90 {dimension_numbers = #tpu.dot_dimension_numbers<[1], [0], [0], [1], [0, 0, 1, 1], [], []>} : vector<16x128xbf16>, vector<128x128xbf16>, vector<16x128xf32> -> vector<16x128xf32>
    %131 = arith.addf %124, %130 : vector<16x128xf32>
    %c48 = arith.constant 48 : index
    %c0_91 = arith.constant 0 : index
    %132 = vector.load %arg8[%c48, %c0_91] : memref<144x16xbf16, #tpu.memory_space<vmem>>, vector<16x16xbf16>
    %cst_92 = arith.constant dense<0.000000e+00> : vector<16x128xf32>
    %133 = tpu.matmul %132, %109, %cst_92 {dimension_numbers = #tpu.dot_dimension_numbers<[1], [0], [0], [1], [0, 0, 1, 1], [], []>} : vector<16x16xbf16>, vector<16x128xbf16>, vector<16x128xf32> -> vector<16x128xf32>
    %134 = arith.truncf %133 : vector<16x128xf32> to vector<16x128xbf16>
    %c3_93 = arith.constant 3 : index
    %c0_94 = arith.constant 0 : index
    %c0_95 = arith.constant 0 : index
    %135 = vector.load %arg9[%c3_93, %c0_94, %c0_95] : memref<9x128x128xbf16, #tpu.memory_space<vmem>>, vector<1x128x128xbf16>
    %136 = vector.shape_cast %135 : vector<1x128x128xbf16> to vector<128x128xbf16>
    %cst_96 = arith.constant dense<0.000000e+00> : vector<16x128xf32>
    %137 = tpu.matmul %134, %136, %cst_96 {dimension_numbers = #tpu.dot_dimension_numbers<[1], [0], [0], [1], [0, 0, 1, 1], [], []>} : vector<16x128xbf16>, vector<128x128xbf16>, vector<16x128xf32> -> vector<16x128xf32>
    %138 = arith.addf %131, %137 : vector<16x128xf32>
    %c64_97 = arith.constant 64 : index
    %c0_98 = arith.constant 0 : index
    %139 = vector.load %arg8[%c64_97, %c0_98] : memref<144x16xbf16, #tpu.memory_space<vmem>>, vector<16x16xbf16>
    %cst_99 = arith.constant dense<0.000000e+00> : vector<16x128xf32>
    %140 = tpu.matmul %139, %109, %cst_99 {dimension_numbers = #tpu.dot_dimension_numbers<[1], [0], [0], [1], [0, 0, 1, 1], [], []>} : vector<16x16xbf16>, vector<16x128xbf16>, vector<16x128xf32> -> vector<16x128xf32>
    %141 = arith.truncf %140 : vector<16x128xf32> to vector<16x128xbf16>
    %c4_100 = arith.constant 4 : index
    %c0_101 = arith.constant 0 : index
    %c0_102 = arith.constant 0 : index
    %142 = vector.load %arg9[%c4_100, %c0_101, %c0_102] : memref<9x128x128xbf16, #tpu.memory_space<vmem>>, vector<1x128x128xbf16>
    %143 = vector.shape_cast %142 : vector<1x128x128xbf16> to vector<128x128xbf16>
    %cst_103 = arith.constant dense<0.000000e+00> : vector<16x128xf32>
    %144 = tpu.matmul %141, %143, %cst_103 {dimension_numbers = #tpu.dot_dimension_numbers<[1], [0], [0], [1], [0, 0, 1, 1], [], []>} : vector<16x128xbf16>, vector<128x128xbf16>, vector<16x128xf32> -> vector<16x128xf32>
    %145 = arith.addf %138, %144 : vector<16x128xf32>
    %c80 = arith.constant 80 : index
    %c0_104 = arith.constant 0 : index
    %146 = vector.load %arg8[%c80, %c0_104] : memref<144x16xbf16, #tpu.memory_space<vmem>>, vector<16x16xbf16>
    %cst_105 = arith.constant dense<0.000000e+00> : vector<16x128xf32>
    %147 = tpu.matmul %146, %109, %cst_105 {dimension_numbers = #tpu.dot_dimension_numbers<[1], [0], [0], [1], [0, 0, 1, 1], [], []>} : vector<16x16xbf16>, vector<16x128xbf16>, vector<16x128xf32> -> vector<16x128xf32>
    %148 = arith.truncf %147 : vector<16x128xf32> to vector<16x128xbf16>
    %c5_106 = arith.constant 5 : index
    %c0_107 = arith.constant 0 : index
    %c0_108 = arith.constant 0 : index
    %149 = vector.load %arg9[%c5_106, %c0_107, %c0_108] : memref<9x128x128xbf16, #tpu.memory_space<vmem>>, vector<1x128x128xbf16>
    %150 = vector.shape_cast %149 : vector<1x128x128xbf16> to vector<128x128xbf16>
    %cst_109 = arith.constant dense<0.000000e+00> : vector<16x128xf32>
    %151 = tpu.matmul %148, %150, %cst_109 {dimension_numbers = #tpu.dot_dimension_numbers<[1], [0], [0], [1], [0, 0, 1, 1], [], []>} : vector<16x128xbf16>, vector<128x128xbf16>, vector<16x128xf32> -> vector<16x128xf32>
    %152 = arith.addf %145, %151 : vector<16x128xf32>
    %c96 = arith.constant 96 : index
    %c0_110 = arith.constant 0 : index
    %153 = vector.load %arg8[%c96, %c0_110] : memref<144x16xbf16, #tpu.memory_space<vmem>>, vector<16x16xbf16>
    %cst_111 = arith.constant dense<0.000000e+00> : vector<16x128xf32>
    %154 = tpu.matmul %153, %109, %cst_111 {dimension_numbers = #tpu.dot_dimension_numbers<[1], [0], [0], [1], [0, 0, 1, 1], [], []>} : vector<16x16xbf16>, vector<16x128xbf16>, vector<16x128xf32> -> vector<16x128xf32>
    %155 = arith.truncf %154 : vector<16x128xf32> to vector<16x128xbf16>
    %c6_112 = arith.constant 6 : index
    %c0_113 = arith.constant 0 : index
    %c0_114 = arith.constant 0 : index
    %156 = vector.load %arg9[%c6_112, %c0_113, %c0_114] : memref<9x128x128xbf16, #tpu.memory_space<vmem>>, vector<1x128x128xbf16>
    %157 = vector.shape_cast %156 : vector<1x128x128xbf16> to vector<128x128xbf16>
    %cst_115 = arith.constant dense<0.000000e+00> : vector<16x128xf32>
    %158 = tpu.matmul %155, %157, %cst_115 {dimension_numbers = #tpu.dot_dimension_numbers<[1], [0], [0], [1], [0, 0, 1, 1], [], []>} : vector<16x128xbf16>, vector<128x128xbf16>, vector<16x128xf32> -> vector<16x128xf32>
    %159 = arith.addf %152, %158 : vector<16x128xf32>
    %c112 = arith.constant 112 : index
    %c0_116 = arith.constant 0 : index
    %160 = vector.load %arg8[%c112, %c0_116] : memref<144x16xbf16, #tpu.memory_space<vmem>>, vector<16x16xbf16>
    %cst_117 = arith.constant dense<0.000000e+00> : vector<16x128xf32>
    %161 = tpu.matmul %160, %109, %cst_117 {dimension_numbers = #tpu.dot_dimension_numbers<[1], [0], [0], [1], [0, 0, 1, 1], [], []>} : vector<16x16xbf16>, vector<16x128xbf16>, vector<16x128xf32> -> vector<16x128xf32>
    %162 = arith.truncf %161 : vector<16x128xf32> to vector<16x128xbf16>
    %c7_118 = arith.constant 7 : index
    %c0_119 = arith.constant 0 : index
    %c0_120 = arith.constant 0 : index
    %163 = vector.load %arg9[%c7_118, %c0_119, %c0_120] : memref<9x128x128xbf16, #tpu.memory_space<vmem>>, vector<1x128x128xbf16>
    %164 = vector.shape_cast %163 : vector<1x128x128xbf16> to vector<128x128xbf16>
    %cst_121 = arith.constant dense<0.000000e+00> : vector<16x128xf32>
    %165 = tpu.matmul %162, %164, %cst_121 {dimension_numbers = #tpu.dot_dimension_numbers<[1], [0], [0], [1], [0, 0, 1, 1], [], []>} : vector<16x128xbf16>, vector<128x128xbf16>, vector<16x128xf32> -> vector<16x128xf32>
    %166 = arith.addf %159, %165 : vector<16x128xf32>
    %c128_122 = arith.constant 128 : index
    %c0_123 = arith.constant 0 : index
    %167 = vector.load %arg8[%c128_122, %c0_123] : memref<144x16xbf16, #tpu.memory_space<vmem>>, vector<16x16xbf16>
    %cst_124 = arith.constant dense<0.000000e+00> : vector<16x128xf32>
    %168 = tpu.matmul %167, %109, %cst_124 {dimension_numbers = #tpu.dot_dimension_numbers<[1], [0], [0], [1], [0, 0, 1, 1], [], []>} : vector<16x16xbf16>, vector<16x128xbf16>, vector<16x128xf32> -> vector<16x128xf32>
    %169 = arith.truncf %168 : vector<16x128xf32> to vector<16x128xbf16>
    %c8_125 = arith.constant 8 : index
    %c0_126 = arith.constant 0 : index
    %c0_127 = arith.constant 0 : index
    %170 = vector.load %arg9[%c8_125, %c0_126, %c0_127] : memref<9x128x128xbf16, #tpu.memory_space<vmem>>, vector<1x128x128xbf16>
    %171 = vector.shape_cast %170 : vector<1x128x128xbf16> to vector<128x128xbf16>
    %cst_128 = arith.constant dense<0.000000e+00> : vector<16x128xf32>
    %172 = tpu.matmul %169, %171, %cst_128 {dimension_numbers = #tpu.dot_dimension_numbers<[1], [0], [0], [1], [0, 0, 1, 1], [], []>} : vector<16x128xbf16>, vector<128x128xbf16>, vector<16x128xf32> -> vector<16x128xf32>
    %173 = arith.addf %166, %172 : vector<16x128xf32>
    %c0_129 = arith.constant 0 : index
    %c0_130 = arith.constant 0 : index
    %174 = vector.load %arg10[%c0_129, %c0_130] : memref<1x128xf32, #tpu.memory_space<vmem>>, vector<1x128xf32>
    %175 = vector.broadcast %174 : vector<1x128xf32> to vector<16x128xf32>
    %176 = arith.addf %173, %175 : vector<16x128xf32>
    %cst_131 = arith.constant 0.000000e+00 : f32
    %177 = vector.broadcast %cst_131 : f32 to vector<16x128xf32>
    %178 = arith.maximumf %176, %177 : vector<16x128xf32>
    %179 = arith.truncf %178 : vector<16x128xf32> to vector<16x128xbf16>
    %c0_132 = arith.constant 0 : index
    %c0_133 = arith.constant 0 : index
    %180 = vector.load %arg11[%c0_132, %c0_133] : memref<16x128xbf16, #tpu.memory_space<vmem>>, vector<16x128xbf16>
    tpu.vector_store %arg11[%c0_132, %c0_133], %179 {strides = array<i32>} : memref<16x128xbf16, #tpu.memory_space<vmem>>, vector<16x128xbf16>,
    return
  }
  func.func @transform_0(%arg0: i32) -> (i32, i32) {
    %c0_i32 = arith.constant 0 : i32
    %c0_i32_0 = arith.constant 0 : i32
    return %arg0, %c0_i32 : i32, i32
  }
  func.func @transform_1(%arg0: i32) -> (i32, i32) {
    %c0_i32 = arith.constant 0 : i32
    %c0_i32_0 = arith.constant 0 : i32
    %c0_i32_1 = arith.constant 0 : i32
    return %c0_i32, %c0_i32_0 : i32, i32
  }
  func.func @transform_2(%arg0: i32) -> (i32, i32) {
    %c0_i32 = arith.constant 0 : i32
    %c0_i32_0 = arith.constant 0 : i32
    %c0_i32_1 = arith.constant 0 : i32
    return %c0_i32, %c0_i32_0 : i32, i32
  }
  func.func @transform_3(%arg0: i32) -> (i32, i32) {
    %c0_i32 = arith.constant 0 : i32
    %c0_i32_0 = arith.constant 0 : i32
    %c0_i32_1 = arith.constant 0 : i32
    return %c0_i32, %c0_i32_0 : i32, i32
  }
  func.func @transform_4(%arg0: i32) -> (i32, i32, i32) {
    %c0_i32 = arith.constant 0 : i32
    %c0_i32_0 = arith.constant 0 : i32
    %c0_i32_1 = arith.constant 0 : i32
    %c0_i32_2 = arith.constant 0 : i32
    return %c0_i32, %c0_i32_0, %c0_i32_1 : i32, i32, i32
  }
  func.func @transform_5(%arg0: i32) -> (i32, i32) {
    %c0_i32 = arith.constant 0 : i32
    %c0_i32_0 = arith.constant 0 : i32
    %c0_i32_1 = arith.constant 0 : i32
    return %c0_i32, %c0_i32_0 : i32, i32
  }
  func.func @transform_6(%arg0: i32) -> (i32, i32) {
    %c0_i32 = arith.constant 0 : i32
    %c0_i32_0 = arith.constant 0 : i32
    %c0_i32_1 = arith.constant 0 : i32
    return %c0_i32, %c0_i32_0 : i32, i32
  }
  func.func @transform_7(%arg0: i32) -> (i32, i32) {
    %c0_i32 = arith.constant 0 : i32
    %c0_i32_0 = arith.constant 0 : i32
    %c0_i32_1 = arith.constant 0 : i32
    return %c0_i32, %c0_i32_0 : i32, i32
  }
  func.func @transform_8(%arg0: i32) -> (i32, i32, i32) {
    %c0_i32 = arith.constant 0 : i32
    %c0_i32_0 = arith.constant 0 : i32
    %c0_i32_1 = arith.constant 0 : i32
    %c0_i32_2 = arith.constant 0 : i32
    return %c0_i32, %c0_i32_0, %c0_i32_1 : i32, i32, i32
  }
  func.func @transform_9(%arg0: i32) -> (i32, i32) {
    %c0_i32 = arith.constant 0 : i32
    %c0_i32_0 = arith.constant 0 : i32
    %c0_i32_1 = arith.constant 0 : i32
    return %c0_i32, %c0_i32_0 : i32, i32
  }
  func.func @transform_10(%arg0: i32) -> (i32, i32) {
    %c0_i32 = arith.constant 0 : i32
    %c0_i32_0 = arith.constant 0 : i32
    return %arg0, %c0_i32 : i32, i32
  }
}

module attributes {stable_mosaic.version = 11 : i64} {
  func.func @_head_kernel(%arg0: memref<2x2048xbf16, #tpu.memory_space<vmem>>, %arg1: memref<2x40xbf16, #tpu.memory_space<vmem>>, %arg2: memref<2x2xf32, #tpu.memory_space<vmem>>, %arg3: memref<2x1xf32, #tpu.memory_space<vmem>>, %arg4: memref<40x160xbf16, #tpu.memory_space<vmem>>, %arg5: memref<1x160xf32, #tpu.memory_space<vmem>>, %arg6: memref<160x64xbf16, #tpu.memory_space<vmem>>, %arg7: memref<1x64xf32, #tpu.memory_space<vmem>>, %arg8: memref<2048x256xbf16, #tpu.memory_space<vmem>>, %arg9: memref<64x256xbf16, #tpu.memory_space<vmem>>, %arg10: memref<1x256xf32, #tpu.memory_space<vmem>>, %arg11: memref<1x256xf32, #tpu.memory_space<vmem>>, %arg12: memref<1x256xf32, #tpu.memory_space<vmem>>, %arg13: memref<2x256xf32, #tpu.memory_space<vmem>>, %arg14: memref<1x256xf32, #tpu.memory_space<vmem>>, %arg15: memref<1x256xf32, #tpu.memory_space<vmem>>, %arg16: memref<1x256xf32, #tpu.memory_space<vmem>>, %arg17: memref<1x256xf32, #tpu.memory_space<vmem>>, %arg18: memref<1x256xf32, #tpu.memory_space<vmem>>, %arg19: memref<256x512xbf16, #tpu.memory_space<vmem>>, %arg20: memref<1x512xf32, #tpu.memory_space<vmem>>, %arg21: memref<256x2xbf16, #tpu.memory_space<vmem>>, %arg22: memref<1x2xf32, #tpu.memory_space<vmem>>, %arg23: memref<256x2xbf16, #tpu.memory_space<vmem>>, %arg24: memref<1x2xf32, #tpu.memory_space<vmem>>, %arg25: memref<2x2xf32, #tpu.memory_space<vmem>>, %arg26: memref<2x2xf32, #tpu.memory_space<vmem>>) attributes {dimension_semantics = [], scalar_prefetch = 0 : i64, scratch_operands = 0 : i64, tpu.core_type = #tpu.core_type<tc>} {
    %c0 = arith.constant 0 : index
    %c0_0 = arith.constant 0 : index
    %0 = vector.load %arg1[%c0, %c0_0] : memref<2x40xbf16, #tpu.memory_space<vmem>>, vector<2x40xbf16>
    %c0_1 = arith.constant 0 : index
    %c0_2 = arith.constant 0 : index
    %1 = vector.load %arg4[%c0_1, %c0_2] : memref<40x160xbf16, #tpu.memory_space<vmem>>, vector<40x160xbf16>
    %cst = arith.constant dense<0.000000e+00> : vector<2x160xf32>
    %2 = tpu.matmul %0, %1, %cst {dimension_numbers = #tpu.dot_dimension_numbers<[1], [0], [0], [1], [0, 0, 1, 1], [], []>} : vector<2x40xbf16>, vector<40x160xbf16>, vector<2x160xf32> -> vector<2x160xf32>
    %c0_3 = arith.constant 0 : index
    %c0_4 = arith.constant 0 : index
    %3 = vector.load %arg5[%c0_3, %c0_4] : memref<1x160xf32, #tpu.memory_space<vmem>>, vector<1x160xf32>
    %4 = vector.broadcast %3 : vector<1x160xf32> to vector<2x160xf32>
    %5 = arith.addf %2, %4 : vector<2x160xf32>
    %6 = arith.truncf %5 : vector<2x160xf32> to vector<2x160xbf16>
    %c0_5 = arith.constant 0 : index
    %c0_6 = arith.constant 0 : index
    %7 = vector.load %arg6[%c0_5, %c0_6] : memref<160x64xbf16, #tpu.memory_space<vmem>>, vector<160x64xbf16>
    %cst_7 = arith.constant dense<0.000000e+00> : vector<2x64xf32>
    %8 = tpu.matmul %6, %7, %cst_7 {dimension_numbers = #tpu.dot_dimension_numbers<[1], [0], [0], [1], [0, 0, 1, 1], [], []>} : vector<2x160xbf16>, vector<160x64xbf16>, vector<2x64xf32> -> vector<2x64xf32>
    %c0_8 = arith.constant 0 : index
    %c0_9 = arith.constant 0 : index
    %9 = vector.load %arg7[%c0_8, %c0_9] : memref<1x64xf32, #tpu.memory_space<vmem>>, vector<1x64xf32>
    %10 = vector.broadcast %9 : vector<1x64xf32> to vector<2x64xf32>
    %11 = arith.addf %8, %10 : vector<2x64xf32>
    %cst_10 = arith.constant 0.000000e+00 : f32
    %12 = vector.broadcast %cst_10 : f32 to vector<2x64xf32>
    %13 = arith.maximumf %11, %12 : vector<2x64xf32>
    %c0_11 = arith.constant 0 : index
    %c0_12 = arith.constant 0 : index
    %14 = vector.load %arg0[%c0_11, %c0_12] : memref<2x2048xbf16, #tpu.memory_space<vmem>>, vector<2x2048xbf16>
    %c0_13 = arith.constant 0 : index
    %c0_14 = arith.constant 0 : index
    %15 = vector.load %arg8[%c0_13, %c0_14] : memref<2048x256xbf16, #tpu.memory_space<vmem>>, vector<2048x256xbf16>
    %cst_15 = arith.constant dense<0.000000e+00> : vector<2x256xf32>
    %16 = tpu.matmul %14, %15, %cst_15 {dimension_numbers = #tpu.dot_dimension_numbers<[1], [0], [0], [1], [0, 0, 1, 1], [], []>} : vector<2x2048xbf16>, vector<2048x256xbf16>, vector<2x256xf32> -> vector<2x256xf32>
    %17 = arith.truncf %13 : vector<2x64xf32> to vector<2x64xbf16>
    %c0_16 = arith.constant 0 : index
    %c0_17 = arith.constant 0 : index
    %18 = vector.load %arg9[%c0_16, %c0_17] : memref<64x256xbf16, #tpu.memory_space<vmem>>, vector<64x256xbf16>
    %cst_18 = arith.constant dense<0.000000e+00> : vector<2x256xf32>
    %19 = tpu.matmul %17, %18, %cst_18 {dimension_numbers = #tpu.dot_dimension_numbers<[1], [0], [0], [1], [0, 0, 1, 1], [], []>} : vector<2x64xbf16>, vector<64x256xbf16>, vector<2x256xf32> -> vector<2x256xf32>
    %20 = arith.addf %16, %19 : vector<2x256xf32>
    %c0_19 = arith.constant 0 : index
    %c0_20 = arith.constant 0 : index
    %21 = vector.load %arg10[%c0_19, %c0_20] : memref<1x256xf32, #tpu.memory_space<vmem>>, vector<1x256xf32>
    %22 = vector.broadcast %21 : vector<1x256xf32> to vector<2x256xf32>
    %23 = arith.addf %20, %22 : vector<2x256xf32>
    %cst_21 = arith.constant 0.000000e+00 : f32
    %24 = vector.broadcast %cst_21 : f32 to vector<2x256xf32>
    %25 = arith.maximumf %23, %24 : vector<2x256xf32>
    %c0_22 = arith.constant 0 : index
    %c0_23 = arith.constant 0 : index
    %26 = vector.load %arg11[%c0_22, %c0_23] : memref<1x256xf32, #tpu.memory_space<vmem>>, vector<1x256xf32>
    %c0_24 = arith.constant 0 : index
    %c0_25 = arith.constant 0 : index
    %27 = vector.load %arg12[%c0_24, %c0_25] : memref<1x256xf32, #tpu.memory_space<vmem>>, vector<1x256xf32>
    %cst_26 = arith.constant dense<0.000000e+00> : vector<2xf32>
    %28 = vector.multi_reduction <add>, %25, %cst_26 [1] : vector<2x256xf32> to vector<2xf32>
    %29 = vector.shape_cast %28 : vector<2xf32> to vector<2x1xf32>
    %cst_27 = arith.constant 2.560000e+02 : f32
    %30 = vector.broadcast %cst_27 : f32 to vector<2x1xf32>
    %31 = arith.divf %29, %30 : vector<2x1xf32>
    %32 = vector.broadcast %31 : vector<2x1xf32> to vector<2x256xf32>
    %33 = arith.subf %25, %32 : vector<2x256xf32>
    %34 = arith.mulf %33, %33 : vector<2x256xf32>
    %cst_28 = arith.constant dense<0.000000e+00> : vector<2xf32>
    %35 = vector.multi_reduction <add>, %34, %cst_28 [1] : vector<2x256xf32> to vector<2xf32>
    %36 = vector.shape_cast %35 : vector<2xf32> to vector<2x1xf32>
    %cst_29 = arith.constant 2.560000e+02 : f32
    %37 = vector.broadcast %cst_29 : f32 to vector<2x1xf32>
    %38 = arith.divf %36, %37 : vector<2x1xf32>
    %39 = vector.broadcast %31 : vector<2x1xf32> to vector<2x256xf32>
    %40 = arith.subf %25, %39 : vector<2x256xf32>
    %cst_30 = arith.constant 9.99999974E-6 : f32
    %41 = vector.broadcast %cst_30 : f32 to vector<2x1xf32>
    %42 = arith.addf %38, %41 : vector<2x1xf32>
    %43 = math.rsqrt %42 : vector<2x1xf32>
    %44 = vector.broadcast %43 : vector<2x1xf32> to vector<2x256xf32>
    %45 = arith.mulf %40, %44 : vector<2x256xf32>
    %46 = vector.broadcast %26 : vector<1x256xf32> to vector<2x256xf32>
    %47 = arith.mulf %45, %46 : vector<2x256xf32>
    %48 = vector.broadcast %27 : vector<1x256xf32> to vector<2x256xf32>
    %49 = arith.addf %47, %48 : vector<2x256xf32>
    %c0_31 = arith.constant 0 : index
    %c0_32 = arith.constant 0 : index
    %50 = vector.load %arg2[%c0_31, %c0_32] : memref<2x2xf32, #tpu.memory_space<vmem>>, vector<2x2xf32>
    %c0_33 = arith.constant 0 : index
    %c0_34 = arith.constant 0 : index
    %51 = vector.load %arg13[%c0_33, %c0_34] : memref<2x256xf32, #tpu.memory_space<vmem>>, vector<2x256xf32>
    %cst_35 = arith.constant dense<0.000000e+00> : vector<2x256xf32>
    %52 = tpu.matmul %50, %51, %cst_35 {dimension_numbers = #tpu.dot_dimension_numbers<[1], [0], [0], [1], [0, 0, 1, 1], [], []>} : vector<2x2xf32>, vector<2x256xf32>, vector<2x256xf32> -> vector<2x256xf32>
    %c0_36 = arith.constant 0 : index
    %c0_37 = arith.constant 0 : index
    %53 = vector.load %arg14[%c0_36, %c0_37] : memref<1x256xf32, #tpu.memory_space<vmem>>, vector<1x256xf32>
    %54 = vector.broadcast %53 : vector<1x256xf32> to vector<2x256xf32>
    %55 = arith.addf %52, %54 : vector<2x256xf32>
    %cst_38 = arith.constant 0.000000e+00 : f32
    %56 = vector.broadcast %cst_38 : f32 to vector<2x256xf32>
    %57 = arith.maximumf %55, %56 : vector<2x256xf32>
    %c0_39 = arith.constant 0 : index
    %c0_40 = arith.constant 0 : index
    %58 = vector.load %arg15[%c0_39, %c0_40] : memref<1x256xf32, #tpu.memory_space<vmem>>, vector<1x256xf32>
    %c0_41 = arith.constant 0 : index
    %c0_42 = arith.constant 0 : index
    %59 = vector.load %arg16[%c0_41, %c0_42] : memref<1x256xf32, #tpu.memory_space<vmem>>, vector<1x256xf32>
    %cst_43 = arith.constant dense<0.000000e+00> : vector<2xf32>
    %60 = vector.multi_reduction <add>, %57, %cst_43 [1] : vector<2x256xf32> to vector<2xf32>
    %61 = vector.shape_cast %60 : vector<2xf32> to vector<2x1xf32>
    %cst_44 = arith.constant 2.560000e+02 : f32
    %62 = vector.broadcast %cst_44 : f32 to vector<2x1xf32>
    %63 = arith.divf %61, %62 : vector<2x1xf32>
    %64 = vector.broadcast %63 : vector<2x1xf32> to vector<2x256xf32>
    %65 = arith.subf %57, %64 : vector<2x256xf32>
    %66 = arith.mulf %65, %65 : vector<2x256xf32>
    %cst_45 = arith.constant dense<0.000000e+00> : vector<2xf32>
    %67 = vector.multi_reduction <add>, %66, %cst_45 [1] : vector<2x256xf32> to vector<2xf32>
    %68 = vector.shape_cast %67 : vector<2xf32> to vector<2x1xf32>
    %cst_46 = arith.constant 2.560000e+02 : f32
    %69 = vector.broadcast %cst_46 : f32 to vector<2x1xf32>
    %70 = arith.divf %68, %69 : vector<2x1xf32>
    %71 = vector.broadcast %63 : vector<2x1xf32> to vector<2x256xf32>
    %72 = arith.subf %57, %71 : vector<2x256xf32>
    %cst_47 = arith.constant 9.99999974E-6 : f32
    %73 = vector.broadcast %cst_47 : f32 to vector<2x1xf32>
    %74 = arith.addf %70, %73 : vector<2x1xf32>
    %75 = math.rsqrt %74 : vector<2x1xf32>
    %76 = vector.broadcast %75 : vector<2x1xf32> to vector<2x256xf32>
    %77 = arith.mulf %72, %76 : vector<2x256xf32>
    %78 = vector.broadcast %58 : vector<1x256xf32> to vector<2x256xf32>
    %79 = arith.mulf %77, %78 : vector<2x256xf32>
    %80 = vector.broadcast %59 : vector<1x256xf32> to vector<2x256xf32>
    %81 = arith.addf %79, %80 : vector<2x256xf32>
    %c0_48 = arith.constant 0 : index
    %c0_49 = arith.constant 0 : index
    %82 = vector.load %arg3[%c0_48, %c0_49] : memref<2x1xf32, #tpu.memory_space<vmem>>, vector<2x1xf32>
    %c0_50 = arith.constant 0 : index
    %c0_51 = arith.constant 0 : index
    %83 = vector.load %arg17[%c0_50, %c0_51] : memref<1x256xf32, #tpu.memory_space<vmem>>, vector<1x256xf32>
    %84 = vector.broadcast %82 : vector<2x1xf32> to vector<2x256xf32>
    %85 = vector.broadcast %83 : vector<1x256xf32> to vector<2x256xf32>
    %86 = arith.mulf %84, %85 : vector<2x256xf32>
    %c0_52 = arith.constant 0 : index
    %c0_53 = arith.constant 0 : index
    %87 = vector.load %arg18[%c0_52, %c0_53] : memref<1x256xf32, #tpu.memory_space<vmem>>, vector<1x256xf32>
    %88 = vector.broadcast %87 : vector<1x256xf32> to vector<2x256xf32>
    %89 = arith.addf %86, %88 : vector<2x256xf32>
    %cst_54 = arith.constant 0.000000e+00 : f32
    %90 = vector.broadcast %cst_54 : f32 to vector<2x256xf32>
    %91 = arith.subf %90, %89 : vector<2x256xf32>
    %92 = math.exp %91 : vector<2x256xf32>
    %cst_55 = arith.constant 1.000000e+00 : f32
    %93 = vector.broadcast %cst_55 : f32 to vector<2x256xf32>
    %94 = arith.addf %93, %92 : vector<2x256xf32>
    %95 = tpu.reciprocal %94 {approx = true} : vector<2x256xf32> -> vector<2x256xf32>
    %96 = arith.mulf %81, %95 : vector<2x256xf32>
    %97 = arith.mulf %49, %96 : vector<2x256xf32>
    %98 = arith.truncf %97 : vector<2x256xf32> to vector<2x256xbf16>
    %c0_56 = arith.constant 0 : index
    %c0_57 = arith.constant 0 : index
    %99 = vector.load %arg19[%c0_56, %c0_57] : memref<256x512xbf16, #tpu.memory_space<vmem>>, vector<256x512xbf16>
    %cst_58 = arith.constant dense<0.000000e+00> : vector<2x512xf32>
    %100 = tpu.matmul %98, %99, %cst_58 {dimension_numbers = #tpu.dot_dimension_numbers<[1], [0], [0], [1], [0, 0, 1, 1], [], []>} : vector<2x256xbf16>, vector<256x512xbf16>, vector<2x512xf32> -> vector<2x512xf32>
    %c0_59 = arith.constant 0 : index
    %c0_60 = arith.constant 0 : index
    %101 = vector.load %arg20[%c0_59, %c0_60] : memref<1x512xf32, #tpu.memory_space<vmem>>, vector<1x512xf32>
    %102 = vector.broadcast %101 : vector<1x512xf32> to vector<2x512xf32>
    %103 = arith.addf %100, %102 : vector<2x512xf32>
    %cst_61 = arith.constant 0.000000e+00 : f32
    %104 = vector.broadcast %cst_61 : f32 to vector<2x512xf32>
    %105 = arith.maximumf %103, %104 : vector<2x512xf32>
    %106 = vector.extract_strided_slice %105 {offsets = [0, 0], sizes = [2, 256], strides = [1, 1]} : vector<2x512xf32> to vector<2x256xf32>
    %107 = vector.extract_strided_slice %105 {offsets = [0, 256], sizes = [2, 256], strides = [1, 1]} : vector<2x512xf32> to vector<2x256xf32>
    %108 = arith.truncf %106 : vector<2x256xf32> to vector<2x256xbf16>
    %c0_62 = arith.constant 0 : index
    %c0_63 = arith.constant 0 : index
    %109 = vector.load %arg21[%c0_62, %c0_63] : memref<256x2xbf16, #tpu.memory_space<vmem>>, vector<256x2xbf16>
    %cst_64 = arith.constant dense<0.000000e+00> : vector<2x2xf32>
    %110 = tpu.matmul %108, %109, %cst_64 {dimension_numbers = #tpu.dot_dimension_numbers<[1], [0], [0], [1], [0, 0, 1, 1], [], []>} : vector<2x256xbf16>, vector<256x2xbf16>, vector<2x2xf32> -> vector<2x2xf32>
    %c0_65 = arith.constant 0 : index
    %c0_66 = arith.constant 0 : index
    %111 = vector.load %arg22[%c0_65, %c0_66] : memref<1x2xf32, #tpu.memory_space<vmem>>, vector<1x2xf32>
    %112 = vector.broadcast %111 : vector<1x2xf32> to vector<2x2xf32>
    %113 = arith.addf %110, %112 : vector<2x2xf32>
    %114 = arith.truncf %107 : vector<2x256xf32> to vector<2x256xbf16>
    %c0_67 = arith.constant 0 : index
    %c0_68 = arith.constant 0 : index
    %115 = vector.load %arg23[%c0_67, %c0_68] : memref<256x2xbf16, #tpu.memory_space<vmem>>, vector<256x2xbf16>
    %cst_69 = arith.constant dense<0.000000e+00> : vector<2x2xf32>
    %116 = tpu.matmul %114, %115, %cst_69 {dimension_numbers = #tpu.dot_dimension_numbers<[1], [0], [0], [1], [0, 0, 1, 1], [], []>} : vector<2x256xbf16>, vector<256x2xbf16>, vector<2x2xf32> -> vector<2x2xf32>
    %c0_70 = arith.constant 0 : index
    %c0_71 = arith.constant 0 : index
    %117 = vector.load %arg24[%c0_70, %c0_71] : memref<1x2xf32, #tpu.memory_space<vmem>>, vector<1x2xf32>
    %118 = vector.broadcast %117 : vector<1x2xf32> to vector<2x2xf32>
    %119 = arith.addf %116, %118 : vector<2x2xf32>
    %c0_72 = arith.constant 0 : index
    %c0_73 = arith.constant 0 : index
    %120 = vector.load %arg25[%c0_72, %c0_73] : memref<2x2xf32, #tpu.memory_space<vmem>>, vector<2x2xf32>
    tpu.vector_store %arg25[%c0_72, %c0_73], %113 {strides = array<i32>} : memref<2x2xf32, #tpu.memory_space<vmem>>, vector<2x2xf32>,
    %c0_74 = arith.constant 0 : index
    %c0_75 = arith.constant 0 : index
    %121 = vector.load %arg26[%c0_74, %c0_75] : memref<2x2xf32, #tpu.memory_space<vmem>>, vector<2x2xf32>
    tpu.vector_store %arg26[%c0_74, %c0_75], %119 {strides = array<i32>} : memref<2x2xf32, #tpu.memory_space<vmem>>, vector<2x2xf32>,
    return
  }
}

</mosaic_0001>

<bundles_post_ra>
// kernel: pcn_forward.3
= control target key start
LH: loop header
LB: loop body
LE: loop exit
PB: predicated region body
PF: predicated region fallthrough
CT: control target
= control target key end

     0   :  { %s6088_s0 = inlined_call_operand.vmem [shape: bf16[2,2048], index: 0, kind: input, shape index: {}]   ;;  %s6089_s1 = inlined_call_operand.vmem [shape: bf16[2,40], index: 1, kind: input, shape index: {}]   ;;  %s6090_s2 = inlined_call_operand.vmem [shape: f32[2,2], index: 2, kind: input, shape index: {}]   ;;  %s6091_s3 = inlined_call_operand.vmem [shape: f32[2,1], index: 3, kind: input, shape index: {}]   ;;  %s6092_s4 = inlined_call_operand.vmem [shape: bf16[40,160], index: 4, kind: input, shape index: {}]   ;;  %s6093_s5 = inlined_call_operand.vmem [shape: f32[1,160], index: 5, kind: input, shape index: {}]   ;;  %s6094_s6 = inlined_call_operand.vmem [shape: bf16[160,64], index: 6, kind: input, shape index: {}]   ;;  %s6095_s7 = inlined_call_operand.vmem [shape: f32[1,64], index: 7, kind: input, shape index: {}]   ;;  %s6096_s8 = inlined_call_operand.vmem [shape: bf16[2048,256], index: 8, kind: input, shape index: {}]   ;;  %s6097_s9 = inlined_call_operand.vmem [shape: bf16[64,256], index: 9, kind: input, shape index: {}]   ;;  %s6098_s10 = inlined_call_operand.vmem [shape: f32[1,256], index: 10, kind: input, shape index: {}]   ;;  %s6099_s11 = inlined_call_operand.vmem [shape: f32[1,256], index: 11, kind: input, shape index: {}]   ;;  %s6100_s12 = inlined_call_operand.vmem [shape: f32[1,256], index: 12, kind: input, shape index: {}]   ;;  %s6101_s13 = inlined_call_operand.vmem [shape: f32[2,256], index: 13, kind: input, shape index: {}]   ;;  %s6102_s14 = inlined_call_operand.vmem [shape: f32[1,256], index: 14, kind: input, shape index: {}]   ;;  %s6103_s15 = inlined_call_operand.vmem [shape: f32[1,256], index: 15, kind: input, shape index: {}]   ;;  %s6104_s16 = inlined_call_operand.vmem [shape: f32[1,256], index: 16, kind: input, shape index: {}]   ;;  %s6105_s17 = inlined_call_operand.vmem [shape: f32[1,256], index: 17, kind: input, shape index: {}]   ;;  %s6106_s18 = inlined_call_operand.vmem [shape: f32[1,256], index: 18, kind: input, shape index: {}]   ;;  %s6107_s19 = inlined_call_operand.vmem [shape: bf16[256,512], index: 19, kind: input, shape index: {}]   ;;  %s6108_s20 = inlined_call_operand.vmem [shape: f32[1,512], index: 20, kind: input, shape index: {}]   ;;  %s6109_s21 = inlined_call_operand.vmem [shape: bf16[256,2], index: 21, kind: input, shape index: {}]   ;;  %s6110_s22 = inlined_call_operand.vmem [shape: f32[1,2], index: 22, kind: input, shape index: {}]   ;;  %s6111_s23 = inlined_call_operand.vmem [shape: bf16[256,2], index: 23, kind: input, shape index: {}]   ;;  %s6112_s24 = inlined_call_operand.vmem [shape: f32[1,2], index: 24, kind: input, shape index: {}]   ;;  %s6113_s25 = inlined_call_operand.hbm [shape: f32[2,2], index: 25, kind: output, shape index: {0}]   ;;  %s6114_s26 = inlined_call_operand.hbm [shape: f32[2,2], index: 26, kind: output, shape index: {1}]  }
   0x1   :  { %6120 = sst [smem:[#allocation8_spill]] %s6088_s0 }
   0x2   :  { %6121 = sst [smem:[#allocation9_spill]] %s6089_s1 }
   0x3   :  { %6122 = sst [smem:[#allocation10_spill]] %s6090_s2 }
   0x4   :  { %6123 = sst [smem:[#allocation11_spill]] %s6091_s3 }
   0x5   :  { %6124 = sst [smem:[#allocation12_spill]] %s6092_s4 }
   0x6   :  { %6125 = sst [smem:[#allocation13_spill]] %s6093_s5 }
   0x7   :  { %6126 = sst [smem:[#allocation14_spill]] %s6094_s6 }
   0x8   :  { %6127 = sst [smem:[#allocation15_spill]] %s6095_s7 }
   0x9   :  { %6128 = sst [smem:[#allocation16_spill]] %s6096_s8 }
   0xa   :  { %6129 = sst [smem:[#allocation17_spill]] %s6097_s9 }
   0xb   :  { %6130 = sst [smem:[#allocation18_spill]] %s6098_s10 }
   0xc   :  { %32 = vsyncpa [#allocation3], 0  ;;  %s6131_s7 = sld [smem:[#allocation12_spill]]  ;;  %v4577_v2 = vmov 0   ;;  %s6132_s6 = sld [smem:[#allocation14_spill]]  ;;  %vm132_vm0 = vcmask 1043456  }
   0xd   :  { %171 = vmatprep.mubr.bf16.mxu0 %v4577_v2  ;;  %273 = vmatprep.subr.bf16.mxu1 %v4577_v2  ;;  %s6133_s4 = sld [smem:[#allocation9_spill]]  ;;  %vm128_vm1 = vcmask 326656  }
   0xe   :  { %3971 = vset.pattern.permute.xlu1 %v4577_v2  ;;  %3972 = vset.pattern.permute.xlu0 %v4577_v2  ;;  %s6134_s9 = sld [smem:[#allocation17_spill]] }
  0x12   :  { %v3973_v0 = vld [vmem:[%s6131_s7 + $0x4] ss:$8 sps:$4 sm:$0xff]   ;;  %v3975_v1 = vld [vmem:[%s6131_s7] ss:$8 sps:$4 sm:$0xff]   ;;  %v3976_v3 = vld [vmem:[%s6131_s7 + $0x14] ss:$8 sps:$4 sm:$0xff]  }
  0x13   :  { %139 = vmatprep.subr.bf16.mxu0 %v3973_v0  ;;  %v90_v4 = vld [vmem:[%s6131_s7 + $0x20] sm:$0xff]  ;;  %v3978_v5 = vld [vmem:[%s6131_s7 + $0x10] ss:$8 sps:$4 sm:$0xff]   ;;  %v3982_v9 = vld [vmem:[%s6132_s6 + $0x8] sm:$0xff]  }
  0x14   :  { %140 = vmatpush1.bf16.msra.mxu0 %v3975_v1  ;;  %v3540_v6 = vcombine.high %v90_v4, %v90_v4  ;;  %v3539_v7 = vcombine.low %v90_v4, %v90_v4  ;;  %v3981_v8 = vld [vmem:[%s6132_s6] sm:$0xff]   ;;  %v3983_v11 = vld [vmem:[%s6132_s6 + $0x10] sm:$0xff]   ;;  %v3984_v13 = vld [vmem:[%s6132_s6 + $0x18] sm:$0xff]  }
  0x15   :  { %141 = vmatprep.subr.bf16.mxu0 %v3976_v3  ;;  %274 = vmatpush1.bf16.msra.mxu1 %v3981_v8  ;;  %v85_v12 = vld [vmem:[%s6133_s4] sm:$0x1]  ;;  %v3986_v15 = vld [vmem:[%s6132_s6 + $0x28] sm:$0xff]   ;;  %v3987_v16 = vld [vmem:[%s6132_s6 + $0x30] sm:$0xff]  }
  0x16   :  { %275 = vmatprep.subr.bf16.mxu1 %v4577_v2  ;;  %v134_v10 = vsel %vm132_vm0, %v3539_v7, 0  ;;  %v3985_v14 = vld [vmem:[%s6132_s6 + $0x20] sm:$0xff]   ;;  %v3988_v17 = vld [vmem:[%s6132_s6 + $0x38] sm:$0xff]   ;;  %v3990_v19 = vld [vmem:[%s6132_s6 + $0x48] sm:$0xff]  }
  0x17   :  { %v3989_v18 = vld [vmem:[%s6132_s6 + $0x40] sm:$0xff]   ;;  %v3994_v22 = vld [vmem:[%s6134_s9 + $0x10] ss:$8 sps:$4 sm:$0xff]   ;;  %v3996_v23 = vld [vmem:[%s6134_s9 + $0x14] ss:$8 sps:$4 sm:$0xff]  }
  0x18   :  { %142 = vmatpush1.bf16.msra.mxu0 %v3978_v5  ;;  %v3991_v20 = vld [vmem:[%s6134_s9] ss:$8 sps:$4 sm:$0xff]   ;;  %v3993_v21 = vld [vmem:[%s6134_s9 + $0x4] ss:$8 sps:$4 sm:$0xff]  }
  0x19   :  { %3541 = vmatprep.subr.msk.bf16.mxu0 %vm132_vm0, %v3540_v6  ;;  %276 = vmatpush1.bf16.msra.mxu1 %v3982_v9  ;;  %v3999_v24 = vld [vmem:[%s6134_s9 + $0x24] ss:$8 sps:$4 sm:$0xff]   ;;  %v3997_v25 = vld [vmem:[%s6134_s9 + $0x20] ss:$8 sps:$4 sm:$0xff]  }
  0x1a   :  { %277 = vmatprep.subr.bf16.mxu1 %v4577_v2 }
  0x1c   :  { %144 = vmatpush1.bf16.msra.mxu0 %v134_v10 }
  0x1d   :  { %278 = vmatpush1.bf16.msra.mxu1 %v3983_v11  ;;  %625 = vmatprep.subr.bf16.mxu0 %v3993_v21 }
  0x1e   :  { %279 = vmatprep.subr.bf16.mxu1 %v4577_v2 }
  0x1f   :  { %3542 = vmatmul.mubr.msk.bf16.vlgmr.msra.gmra.mrb[0].mxu0 %vm128_vm1, %v85_v12 }
  0x20   :  { %657 = vmatprep.mubr.bf16.mxu0 %v4577_v2  ;;  %626 = vmatpush1.bf16.msra.mxu0 %v3991_v20 }
  0x21   :  { %280 = vmatpush1.bf16.msra.mxu1 %v3984_v13  ;;  %627 = vmatprep.subr.bf16.mxu0 %v3996_v23 }
  0x22   :  { %281 = vmatprep.subr.bf16.mxu1 %v4577_v2 }
  0x24   :  { %628 = vmatpush1.bf16.msra.mxu0 %v3994_v22 }
  0x25   :  { %282 = vmatpush1.bf16.msra.mxu1 %v3985_v14  ;;  %629 = vmatprep.subr.bf16.mxu0 %v3999_v24 }
  0x26   :  { %283 = vmatprep.subr.bf16.mxu1 %v4577_v2 }
  0x28   :  { %630 = vmatpush1.bf16.msra.mxu0 %v3997_v25 }
  0x29   :  { %284 = vmatpush1.bf16.msra.mxu1 %v3986_v15 }
  0x2a   :  { %285 = vmatprep.subr.bf16.mxu1 %v4577_v2 }
  0x2d   :  { %286 = vmatpush1.bf16.msra.mxu1 %v3987_v16 }
  0x2e   :  { %287 = vmatprep.subr.bf16.mxu1 %v4577_v2 }
  0x31   :  { %288 = vmatpush1.bf16.msra.mxu1 %v3988_v17 }
  0x32   :  { %289 = vmatprep.subr.bf16.mxu1 %v4577_v2 }
  0x35   :  { %290 = vmatpush1.bf16.msra.mxu1 %v3989_v18 }
  0x36   :  { %291 = vmatprep.subr.bf16.mxu1 %v4577_v2 }
  0x39   :  { %292 = vmatpush1.bf16.msra.mxu1 %v3990_v19 }
  0x3a   :  { %33 = vsyncpa [#allocation5], 0  ;;  %v93_v26 = vlaneseq  ;;  %s6135_s29 = sld [smem:[#allocation13_spill]]  ;;  %vm269_vm2 = vcmask 261120   ;;  %v4002_v41 = vld [vmem:[%s6134_s9 + $0x34] ss:$8 sps:$4 sm:$0xff]  }
  0x3b   :  { %v4000_v42 = vld [vmem:[%s6134_s9 + $0x30] ss:$8 sps:$4 sm:$0xff]   ;;  %631 = vmatprep.subr.bf16.mxu0 %v4002_v41  ;;  %s6136_s27 = sld [smem:[#allocation16_spill]]  ;;  %v4578_v6 = vmov 1966171168   ;;  %s6138_s28 = sld [smem:[#allocation15_spill]] }
  0x3c   :  { %v4783_v27 = vshrl.u32 %v93_v26, 7  ;;  %632 = vmatpush1.bf16.msra.mxu0 %v4000_v42  ;;  %v670_v7 = vunpack.c.l.s4 %v4578_v6  ;;  %s6137_s8 = sld [smem:[#allocation8_spill]]  ;;  %vm621_vm3 = vcmask 523264   ;;  %vm2408_vm4 = vcmask 1041408   ;;  %s6140_s9 = sld [smem:[#allocation11_spill]] }
  0x3d   :  { %vm2479_vm5 = vcmask 15360   ;;  %s4580_s30 = smov [#allocation2]   ;;  %vm3504_vm6 = vcmask 9216  }
  0x3e   :  { %v4786_v28 = vsub.s32 0, %v4783_v27  ;;  %v4792_v30 = vsub.s32 1, %v4783_v27  ;;  %v671_v10 = vunpack.c.0.s8 %v670_v7 }
  0x40   :  { %v91_v29 = vld [vmem:[%s6135_s29] sm:$0x3]  ;;  %v4890_v11 = vsub.s32 %v671_v10, %v4783_v27 }
  0x41   :  { %v96_v31 = vrot.slane %v91_v29, %v4786_v28  ;;  %v100_v32 = vrot.slane %v91_v29, %v4792_v30  ;;  %v4005_v43 = vld [vmem:[%s6136_s27 + $0x4] ss:$8 sps:$4 sm:$0xff]   ;;  %v4006_v45 = vld [vmem:[%s6136_s27 + $0x100] ss:$8 sps:$4 sm:$0xff]   ;;  %v4014_v46 = vld [vmem:[%s6136_s27 + $0x114] ss:$8 sps:$4 sm:$0xff]  }
  0x42   :  { %2062 = vmatprep.subr.bf16.mxu0 %v4005_v43  ;;  %v4008_v44 = vld [vmem:[%s6136_s27 + $0x104] ss:$8 sps:$4 sm:$0xff]   ;;  %v4012_v47 = vld [vmem:[%s6136_s27 + $0x110] ss:$8 sps:$4 sm:$0xff]   ;;  %v4018_v49 = vld [vmem:[%s6136_s27 + $0x120] ss:$8 sps:$4 sm:$0xff]  }
  0x43   :  { %2103 = vmatprep.subr.bf16.mxu1 %v4008_v44  ;;  %v4020_v48 = vld [vmem:[%s6136_s27 + $0x124] ss:$8 sps:$4 sm:$0xff]   ;;  %v4026_v50 = vld [vmem:[%s6136_s27 + $0x134] ss:$8 sps:$4 sm:$0xff]   ;;  %v4024_v51 = vld [vmem:[%s6136_s27 + $0x130] ss:$8 sps:$4 sm:$0xff]  }
  0x44   :  { %v4032_v52 = vld [vmem:[%s6136_s27 + $0x144] ss:$8 sps:$4 sm:$0xff]   ;;  %v4030_v53 = vld [vmem:[%s6136_s27 + $0x140] ss:$8 sps:$4 sm:$0xff]   ;;  %v4038_v54 = vld [vmem:[%s6136_s27 + $0x154] ss:$8 sps:$4 sm:$0xff]  }
  0x45   :  { %v4036_v55 = vld [vmem:[%s6136_s27 + $0x150] ss:$8 sps:$4 sm:$0xff]   ;;  %v4044_v56 = vld [vmem:[%s6136_s27 + $0x164] ss:$8 sps:$4 sm:$0xff]   ;;  %v4042_v57 = vld [vmem:[%s6136_s27 + $0x160] ss:$8 sps:$4 sm:$0xff]  }
  0x46   :  { %v4050_v58 = vld [vmem:[%s6136_s27 + $0x174] ss:$8 sps:$4 sm:$0xff]   ;;  %v4048_v59 = vld [vmem:[%s6136_s27 + $0x170] ss:$8 sps:$4 sm:$0xff]   ;;  %v4056_v60 = vld [vmem:[%s6136_s27 + $0x184] ss:$8 sps:$4 sm:$0xff]  }
  0x47   :  { %v4054_v61 = vld [vmem:[%s6136_s27 + $0x180] ss:$8 sps:$4 sm:$0xff]   ;;  %v4062_v62 = vld [vmem:[%s6136_s27 + $0x194] ss:$8 sps:$4 sm:$0xff]   ;;  %v4060_v63 = vld [vmem:[%s6136_s27 + $0x190] ss:$8 sps:$4 sm:$0xff]  }
  0x48   :  { %v4068_v0 = vld [vmem:[%s6136_s27 + $0x1a4] ss:$8 sps:$4 sm:$0xff]   ;;  %v4066_v1 = vld [vmem:[%s6136_s27 + $0x1a0] ss:$8 sps:$4 sm:$0xff]   ;;  %v4074_v2 = vld [vmem:[%s6136_s27 + $0x1b4] ss:$8 sps:$4 sm:$0xff]  }
  0x49   :  { %v4072_v3 = vld [vmem:[%s6136_s27 + $0x1b0] ss:$8 sps:$4 sm:$0xff]   ;;  %v4080_v4 = vld [vmem:[%s6136_s27 + $0x1c4] ss:$8 sps:$4 sm:$0xff]   ;;  %v4078_v5 = vld [vmem:[%s6136_s27 + $0x1c0] ss:$8 sps:$4 sm:$0xff]  }
  0x4a   :  { %v4086_v8 = vld [vmem:[%s6136_s27 + $0x1d4] ss:$8 sps:$4 sm:$0xff]   ;;  %v4084_v9 = vld [vmem:[%s6136_s27 + $0x1d0] ss:$8 sps:$4 sm:$0xff]   ;;  %v4092_v12 = vld [vmem:[%s6136_s27 + $0x1e4] ss:$8 sps:$4 sm:$0xff]  }
  0x4b   :  { %v4898_v13 = vld [vmem:[%s6137_s8] sm:$0xff]  ;;  %v4098_v17 = vld [vmem:[%s6136_s27 + $0x1f4] ss:$8 sps:$4 sm:$0xff]   ;;  %v4096_v18 = vld [vmem:[%s6136_s27 + $0x1f0] ss:$8 sps:$4 sm:$0xff]  }
  0x4c   :  { %v4090_v14 = vld [vmem:[%s6136_s27 + $0x1e0] ss:$8 sps:$4 sm:$0xff]   ;;  %v675_v15 = vrot.slane %v4898_v13, %v4890_v11  ;;  %v4104_v23 = vld [vmem:[%s6136_s27 + $0x304] ss:$8 sps:$4 sm:$0xff]   ;;  %v4110_v25 = vld [vmem:[%s6136_s27 + $0x314] ss:$8 sps:$4 sm:$0xff]  }
  0x4d   :  { %v4102_v24 = vld [vmem:[%s6136_s27 + $0x300] ss:$8 sps:$4 sm:$0xff]   ;;  %v4108_v26 = vld [vmem:[%s6136_s27 + $0x310] ss:$8 sps:$4 sm:$0xff]   ;;  %v4116_v29 = vld [vmem:[%s6136_s27 + $0x324] ss:$8 sps:$4 sm:$0xff]  }
  0x4e   :  { %v683_v16 = vcombine.high %v675_v15, %v675_v15  ;;  %v4915_v20 = vrot.slane %v675_v15, %v4890_v11  ;;  %v4144_v41 = vld [vmem:[%s6136_s27 + $0x370] ss:$8 sps:$4 sm:$0xff]   ;;  %v4152_v42 = vld [vmem:[%s6136_s27 + $0x384] ss:$8 sps:$4 sm:$0xff]   ;;  %v4150_v43 = vld [vmem:[%s6136_s27 + $0x380] ss:$8 sps:$4 sm:$0xff]  }
  0x4f   :  { %v4158_v44 = vld [vmem:[%s6136_s27 + $0x394] ss:$8 sps:$4 sm:$0xff]   ;;  %v4017_v15 = vld [vmem:[%s6136_s27 + $0x24] ss:$8 sps:$4 sm:$0xff]  }
  0x50   :  { %v4912_v19 = vrot.slane %v683_v16, %v4890_v11  ;;  %v713_v22 = vcombine.high %v4915_v20, %v4915_v20  ;;  %v4207_v16 = vld [vmem:[%s6136_s27 + $0x514] ss:$8 sps:$4 sm:$0xff]  }
  0x52   :  { %v715_v21 = vcombine.high %v4912_v19, %v4912_v19 }
  0xf2   :  { %v173_v33 = vpop.f32.mrb[0].mxu0 }
  0xf3   :  { %v174_v34 = vadd.f32 %v173_v33, %v96_v31  ;;  %v175_v35 = vpop.f32.mrb[1].mxu0  ;;  %v4114_v31 = vld [vmem:[%s6136_s27 + $0x320] ss:$8 sps:$4 sm:$0xff]   ;;  %v4120_v33 = vld [vmem:[%s6136_s27 + $0x330] ss:$8 sps:$4 sm:$0xff]  }
  0xf4   :  { %v176_v36 = vadd.f32 %v175_v35, %v100_v32  ;;  %v177_v37 = vpop.f32.mrb[2].mxu0  ;;  %v4122_v32 = vld [vmem:[%s6136_s27 + $0x334] ss:$8 sps:$4 sm:$0xff]   ;;  %v4126_v35 = vld [vmem:[%s6136_s27 + $0x340] ss:$8 sps:$4 sm:$0xff]  }
  0xf5   :  { %v178_v38 = vpop.f32.mrb[3].mxu0  ;;  %v180_v40 = vpack.c.bf16 %v174_v34, %v174_v34  ;;  %v4128_v34 = vld [vmem:[%s6136_s27 + $0x344] ss:$8 sps:$4 sm:$0xff]   ;;  %v4132_v37 = vld [vmem:[%s6136_s27 + $0x350] ss:$8 sps:$4 sm:$0xff]  }
  0xf6   :  { %v181_v39 = vpack.c.bf16 %v176_v36, %v176_v36  ;;  %v4134_v36 = vld [vmem:[%s6136_s27 + $0x354] ss:$8 sps:$4 sm:$0xff]   ;;  %v4140_v38 = vld [vmem:[%s6136_s27 + $0x364] ss:$8 sps:$4 sm:$0xff]  }
  0xf8   :  { %3554 = vmatprep.mubr.msk.bf16.mxu1 %vm269_vm2, %v181_v39  ;;  %v4138_v39 = vld [vmem:[%s6136_s27 + $0x360] ss:$8 sps:$4 sm:$0xff]  }
  0xf9   :  { %306 = vmatmul.mubr.bf16.vlgmr.msra.gmra.mrb[0].mxu1 %v180_v40  ;;  %v4146_v40 = vld [vmem:[%s6136_s27 + $0x374] ss:$8 sps:$4 sm:$0xff]  }
  0xfa   :  { %2104 = vmatpush1.bf16.msra.mxu1 %v4006_v45  ;;  %2135 = vmatprep.mubr.bf16.mxu1 %v715_v21  ;;  %v4156_v45 = vld [vmem:[%s6136_s27 + $0x390] ss:$8 sps:$4 sm:$0xff]   ;;  %v4213_v21 = vld [vmem:[%s6136_s27 + $0x524] ss:$8 sps:$4 sm:$0xff]  }
  0xfb   :  { %2105 = vmatprep.subr.bf16.mxu1 %v4014_v46  ;;  %v4164_v46 = vld [vmem:[%s6136_s27 + $0x3a4] ss:$8 sps:$4 sm:$0xff]  }
  0xfe   :  { %2106 = vmatpush1.bf16.msra.mxu1 %v4012_v47  ;;  %v4162_v47 = vld [vmem:[%s6136_s27 + $0x3a0] ss:$8 sps:$4 sm:$0xff]  }
  0xff   :  { %2107 = vmatprep.subr.bf16.mxu1 %v4020_v48  ;;  %v4170_v48 = vld [vmem:[%s6136_s27 + $0x3b4] ss:$8 sps:$4 sm:$0xff]  }
 0x102   :  { %2108 = vmatpush1.bf16.msra.mxu1 %v4018_v49  ;;  %v4168_v49 = vld [vmem:[%s6136_s27 + $0x3b0] ss:$8 sps:$4 sm:$0xff]  }
 0x103   :  { %2109 = vmatprep.subr.bf16.mxu1 %v4026_v50  ;;  %v4176_v50 = vld [vmem:[%s6136_s27 + $0x3c4] ss:$8 sps:$4 sm:$0xff]  }
 0x106   :  { %2110 = vmatpush1.bf16.msra.mxu1 %v4024_v51  ;;  %v4174_v51 = vld [vmem:[%s6136_s27 + $0x3c0] ss:$8 sps:$4 sm:$0xff]  }
 0x107   :  { %2111 = vmatprep.subr.bf16.mxu1 %v4032_v52  ;;  %v4182_v52 = vld [vmem:[%s6136_s27 + $0x3d4] ss:$8 sps:$4 sm:$0xff]  }
 0x10a   :  { %2112 = vmatpush1.bf16.msra.mxu1 %v4030_v53  ;;  %v4180_v53 = vld [vmem:[%s6136_s27 + $0x3d0] ss:$8 sps:$4 sm:$0xff]  }
 0x10b   :  { %2113 = vmatprep.subr.bf16.mxu1 %v4038_v54  ;;  %v3543_v54 = vld [vmem:[%s6138_s28] ss:$0 sm:$0xff] }
 0x10e   :  { %2114 = vmatpush1.bf16.msra.mxu1 %v4036_v55  ;;  %v668_v55 = vcombine.high %v4898_v13, %v4898_v13  ;;  %v4009_v13 = vld [vmem:[%s6136_s27 + $0x10] ss:$8 sps:$4 sm:$0xff]  }
 0x10f   :  { %2115 = vmatprep.subr.bf16.mxu1 %v4044_v56  ;;  %v4188_v56 = vld [vmem:[%s6136_s27 + $0x3e4] ss:$8 sps:$4 sm:$0xff]  }
 0x112   :  { %2116 = vmatpush1.bf16.msra.mxu1 %v4042_v57 }
 0x113   :  { %2117 = vmatprep.subr.bf16.mxu1 %v4050_v58  ;;  %v4186_v58 = vld [vmem:[%s6136_s27 + $0x3e0] ss:$8 sps:$4 sm:$0xff]  }
 0x116   :  { %2118 = vmatpush1.bf16.msra.mxu1 %v4048_v59  ;;  %v682_v59 = vrot.slane %v668_v55, %v4890_v11  ;;  %v4071_v55 = vld [vmem:[%s6136_s27 + $0xb4] ss:$8 sps:$4 sm:$0xff]  }
 0x117   :  { %2119 = vmatprep.subr.bf16.mxu1 %v4056_v60 }
 0x118   :  { %v5030_v6 = vrot.slane %v682_v59, %v4890_v11 }
 0x11a   :  { %2120 = vmatpush1.bf16.msra.mxu1 %v4054_v61  ;;  %v714_v10 = vcombine.high %v5030_v6, %v5030_v6 }
 0x11b   :  { %2121 = vmatprep.subr.bf16.mxu1 %v4062_v62 }
 0x11e   :  { %2122 = vmatpush1.bf16.msra.mxu1 %v4060_v63  ;;  %v684_v63 = vcombine.high %v682_v59, %v682_v59  ;;  %v4077_v59 = vld [vmem:[%s6136_s27 + $0xc4] ss:$8 sps:$4 sm:$0xff]  }
 0x11f   :  { %2123 = vmatprep.subr.bf16.mxu1 %v4068_v0 }
 0x122   :  { %2124 = vmatpush1.bf16.msra.mxu1 %v4066_v1 }
 0x123   :  { %2125 = vmatprep.subr.bf16.mxu1 %v4074_v2  ;;  %v4194_v2 = vld [vmem:[%s6136_s27 + $0x3f4] ss:$8 sps:$4 sm:$0xff]  }
 0x126   :  { %2126 = vmatpush1.bf16.msra.mxu1 %v4072_v3  ;;  %v4003_v3 = vld [vmem:[%s6136_s27] ss:$8 sps:$4 sm:$0xff]  }
 0x127   :  { %2127 = vmatprep.subr.bf16.mxu1 %v4080_v4  ;;  %v4192_v4 = vld [vmem:[%s6136_s27 + $0x3f0] ss:$8 sps:$4 sm:$0xff]  }
 0x12a   :  { %2128 = vmatpush1.bf16.msra.mxu1 %v4078_v5  ;;  %v5027_v5 = vrot.slane %v684_v63, %v4890_v11  ;;  %v4083_v63 = vld [vmem:[%s6136_s27 + $0xd4] ss:$8 sps:$4 sm:$0xff]  }
 0x12b   :  { %2129 = vmatprep.subr.bf16.mxu1 %v4086_v8  ;;  %v4011_v8 = vld [vmem:[%s6136_s27 + $0x14] ss:$8 sps:$4 sm:$0xff]  }
 0x12e   :  { %2130 = vmatpush1.bf16.msra.mxu1 %v4084_v9  ;;  %v716_v9 = vcombine.high %v5027_v5, %v5027_v5 }
 0x12f   :  { %2131 = vmatprep.subr.bf16.mxu1 %v4092_v12  ;;  %v4201_v12 = vld [vmem:[%s6136_s27 + $0x504] ss:$8 sps:$4 sm:$0xff]  }
 0x132   :  { %2132 = vmatpush1.bf16.msra.mxu1 %v4090_v14  ;;  %v4199_v14 = vld [vmem:[%s6136_s27 + $0x500] ss:$8 sps:$4 sm:$0xff]  }
 0x133   :  { %2133 = vmatprep.subr.bf16.mxu1 %v4098_v17  ;;  %v4015_v17 = vld [vmem:[%s6136_s27 + $0x20] ss:$8 sps:$4 sm:$0xff]  }
 0x136   :  { %2134 = vmatpush1.bf16.msra.mxu1 %v4096_v18  ;;  %v4205_v18 = vld [vmem:[%s6136_s27 + $0x510] ss:$8 sps:$4 sm:$0xff]  }
 0x137   :  { %2185 = vmatprep.subr.bf16.mxu1 %v4104_v23  ;;  %v4211_v23 = vld [vmem:[%s6136_s27 + $0x520] ss:$8 sps:$4 sm:$0xff]  }
 0x139   :  { %2136 = vmatmul.mubr.bf16.vlgmr.msra.gmra.mrb[4].mxu1 %v713_v22  ;;  %v4021_v22 = vld [vmem:[%s6136_s27 + $0x30] ss:$8 sps:$4 sm:$0xff]  }
 0x13a   :  { %2186 = vmatpush1.bf16.msra.mxu1 %v4102_v24  ;;  %2217 = vmatprep.mubr.bf16.mxu1 %v716_v9  ;;  %v4029_v24 = vld [vmem:[%s6136_s27 + $0x44] ss:$8 sps:$4 sm:$0xff]   ;;  %v4095_v9 = vld [vmem:[%s6136_s27 + $0xf4] ss:$8 sps:$4 sm:$0xff]  }
 0x13b   :  { %2187 = vmatprep.subr.bf16.mxu1 %v4110_v25  ;;  %v4219_v25 = vld [vmem:[%s6136_s27 + $0x534] ss:$8 sps:$4 sm:$0xff]  }
 0x13e   :  { %2188 = vmatpush1.bf16.msra.mxu1 %v4108_v26  ;;  %v4027_v26 = vld [vmem:[%s6136_s27 + $0x40] ss:$8 sps:$4 sm:$0xff]  }
 0x13f   :  { %2189 = vmatprep.subr.bf16.mxu1 %v4116_v29  ;;  %v4217_v29 = vld [vmem:[%s6136_s27 + $0x530] ss:$8 sps:$4 sm:$0xff]  }
 0x142   :  { %2190 = vmatpush1.bf16.msra.mxu1 %v4114_v31  ;;  %v4035_v31 = vld [vmem:[%s6136_s27 + $0x54] ss:$8 sps:$4 sm:$0xff]  }
 0x143   :  { %2191 = vmatprep.subr.bf16.mxu1 %v4122_v32  ;;  %v4225_v32 = vld [vmem:[%s6136_s27 + $0x544] ss:$8 sps:$4 sm:$0xff]  }
 0x146   :  { %2192 = vmatpush1.bf16.msra.mxu1 %v4120_v33  ;;  %v4033_v33 = vld [vmem:[%s6136_s27 + $0x50] ss:$8 sps:$4 sm:$0xff]  }
 0x147   :  { %2193 = vmatprep.subr.bf16.mxu1 %v4128_v34  ;;  %v4223_v34 = vld [vmem:[%s6136_s27 + $0x540] ss:$8 sps:$4 sm:$0xff]  }
 0x14a   :  { %2194 = vmatpush1.bf16.msra.mxu1 %v4126_v35  ;;  %v4041_v35 = vld [vmem:[%s6136_s27 + $0x64] ss:$8 sps:$4 sm:$0xff]  }
 0x14b   :  { %2195 = vmatprep.subr.bf16.mxu1 %v4134_v36  ;;  %v4231_v36 = vld [vmem:[%s6136_s27 + $0x554] ss:$8 sps:$4 sm:$0xff]  }
 0x14e   :  { %2196 = vmatpush1.bf16.msra.mxu1 %v4132_v37  ;;  %v4039_v37 = vld [vmem:[%s6136_s27 + $0x60] ss:$8 sps:$4 sm:$0xff]  }
 0x14f   :  { %2197 = vmatprep.subr.bf16.mxu1 %v4140_v38  ;;  %v4229_v38 = vld [vmem:[%s6136_s27 + $0x550] ss:$8 sps:$4 sm:$0xff]  }
 0x152   :  { %2198 = vmatpush1.bf16.msra.mxu1 %v4138_v39  ;;  %v4047_v39 = vld [vmem:[%s6136_s27 + $0x74] ss:$8 sps:$4 sm:$0xff]  }
 0x153   :  { %2199 = vmatprep.subr.bf16.mxu1 %v4146_v40  ;;  %v4237_v40 = vld [vmem:[%s6136_s27 + $0x564] ss:$8 sps:$4 sm:$0xff]  }
 0x156   :  { %2200 = vmatpush1.bf16.msra.mxu1 %v4144_v41  ;;  %v4045_v41 = vld [vmem:[%s6136_s27 + $0x70] ss:$8 sps:$4 sm:$0xff]  }
 0x157   :  { %2201 = vmatprep.subr.bf16.mxu1 %v4152_v42  ;;  %v4235_v42 = vld [vmem:[%s6136_s27 + $0x560] ss:$8 sps:$4 sm:$0xff]  }
 0x15a   :  { %2202 = vmatpush1.bf16.msra.mxu1 %v4150_v43  ;;  %v4053_v43 = vld [vmem:[%s6136_s27 + $0x84] ss:$8 sps:$4 sm:$0xff]  }
 0x15b   :  { %2203 = vmatprep.subr.bf16.mxu1 %v4158_v44  ;;  %v4243_v44 = vld [vmem:[%s6136_s27 + $0x574] ss:$8 sps:$4 sm:$0xff]  }
 0x15e   :  { %2204 = vmatpush1.bf16.msra.mxu1 %v4156_v45  ;;  %v4051_v45 = vld [vmem:[%s6136_s27 + $0x80] ss:$8 sps:$4 sm:$0xff]  }
 0x15f   :  { %2205 = vmatprep.subr.bf16.mxu1 %v4164_v46  ;;  %v4241_v46 = vld [vmem:[%s6136_s27 + $0x570] ss:$8 sps:$4 sm:$0xff]  }
 0x162   :  { %2206 = vmatpush1.bf16.msra.mxu1 %v4162_v47  ;;  %v4059_v47 = vld [vmem:[%s6136_s27 + $0x94] ss:$8 sps:$4 sm:$0xff]  }
 0x163   :  { %2207 = vmatprep.subr.bf16.mxu1 %v4170_v48  ;;  %v4249_v48 = vld [vmem:[%s6136_s27 + $0x584] ss:$8 sps:$4 sm:$0xff]  }
 0x166   :  { %2208 = vmatpush1.bf16.msra.mxu1 %v4168_v49  ;;  %v4057_v49 = vld [vmem:[%s6136_s27 + $0x90] ss:$8 sps:$4 sm:$0xff]  }
 0x167   :  { %2209 = vmatprep.subr.bf16.mxu1 %v4176_v50  ;;  %v4247_v50 = vld [vmem:[%s6136_s27 + $0x580] ss:$8 sps:$4 sm:$0xff]  }
 0x16a   :  { %2210 = vmatpush1.bf16.msra.mxu1 %v4174_v51  ;;  %v4065_v51 = vld [vmem:[%s6136_s27 + $0xa4] ss:$8 sps:$4 sm:$0xff]  }
 0x16b   :  { %2211 = vmatprep.subr.bf16.mxu1 %v4182_v52  ;;  %v4255_v52 = vld [vmem:[%s6136_s27 + $0x594] ss:$8 sps:$4 sm:$0xff]  }
 0x16e   :  { %2212 = vmatpush1.bf16.msra.mxu1 %v4180_v53  ;;  %v4063_v53 = vld [vmem:[%s6136_s27 + $0xa0] ss:$8 sps:$4 sm:$0xff]  }
 0x16f   :  { %2213 = vmatprep.subr.bf16.mxu1 %v4188_v56  ;;  %v4261_v56 = vld [vmem:[%s6136_s27 + $0x5a4] ss:$8 sps:$4 sm:$0xff]  }
 0x172   :  { %2214 = vmatpush1.bf16.msra.mxu1 %v4186_v58  ;;  %v4259_v58 = vld [vmem:[%s6136_s27 + $0x5a0] ss:$8 sps:$4 sm:$0xff]  }
 0x173   :  { %2215 = vmatprep.subr.bf16.mxu1 %v4194_v2  ;;  %v4271_v2 = vld [vmem:[%s6136_s27 + $0x5c0] ss:$8 sps:$4 sm:$0xff]  }
 0x176   :  { %2216 = vmatpush1.bf16.msra.mxu1 %v4192_v4  ;;  %v4279_v4 = vld [vmem:[%s6136_s27 + $0x5d4] ss:$8 sps:$4 sm:$0xff]  }
 0x177   :  { %2267 = vmatprep.subr.bf16.mxu1 %v4201_v12  ;;  %v5214_v12 = vld [vmem:[%s6137_s8 + $0x8] sm:$0xff]  ;;  %s6141_s8 = sld [smem:[#allocation18_spill]] }
 0x179   :  { %2218 = vmatmul.mubr.bf16.vlgmr.msra.gmra.mrb[8].mxu1 %v714_v10  ;;  %v4285_v10 = vld [vmem:[%s6136_s27 + $0x5e4] ss:$8 sps:$4 sm:$0xff]  }
 0x17a   :  { %2268 = vmatpush1.bf16.msra.mxu1 %v4199_v14  ;;  %v4283_v14 = vld [vmem:[%s6136_s27 + $0x5e0] ss:$8 sps:$4 sm:$0xff]  }
 0x17b   :  { %2269 = vmatprep.subr.bf16.mxu1 %v4207_v16  ;;  %v4101_v16 = vld [vmem:[%s6136_s27 + $0x204] ss:$8 sps:$4 sm:$0xff]  }
 0x17e   :  { %2270 = vmatpush1.bf16.msra.mxu1 %v4205_v18  ;;  %v4291_v18 = vld [vmem:[%s6136_s27 + $0x5f4] ss:$8 sps:$4 sm:$0xff]  }
 0x17f   :  { %2271 = vmatprep.subr.bf16.mxu1 %v4213_v21  ;;  %v4289_v21 = vld [vmem:[%s6136_s27 + $0x5f0] ss:$8 sps:$4 sm:$0xff]  }
 0x182   :  { %2272 = vmatpush1.bf16.msra.mxu1 %v4211_v23 }
 0x183   :  { %2273 = vmatprep.subr.bf16.mxu1 %v4219_v25 }
 0x186   :  { %2274 = vmatpush1.bf16.msra.mxu1 %v4217_v29  ;;  %v4297_v29 = vld [vmem:[%s6136_s27 + $0x704] ss:$8 sps:$4 sm:$0xff]  }
 0x187   :  { %2275 = vmatprep.subr.bf16.mxu1 %v4225_v32  ;;  %v4295_v32 = vld [vmem:[%s6136_s27 + $0x700] ss:$8 sps:$4 sm:$0xff]  }
 0x18a   :  { %2276 = vmatpush1.bf16.msra.mxu1 %v4223_v34  ;;  %v4301_v34 = vld [vmem:[%s6136_s27 + $0x710] ss:$8 sps:$4 sm:$0xff]  }
 0x18b   :  { %2277 = vmatprep.subr.bf16.mxu1 %v4231_v36  ;;  %v4309_v36 = vld [vmem:[%s6136_s27 + $0x724] ss:$8 sps:$4 sm:$0xff]  }
 0x18e   :  { %2278 = vmatpush1.bf16.msra.mxu1 %v4229_v38  ;;  %v4307_v38 = vld [vmem:[%s6136_s27 + $0x720] ss:$8 sps:$4 sm:$0xff]  }
 0x18f   :  { %2279 = vmatprep.subr.bf16.mxu1 %v4237_v40  ;;  %v4315_v40 = vld [vmem:[%s6136_s27 + $0x734] ss:$8 sps:$4 sm:$0xff]  }
 0x192   :  { %2280 = vmatpush1.bf16.msra.mxu1 %v4235_v42  ;;  %v4313_v42 = vld [vmem:[%s6136_s27 + $0x730] ss:$8 sps:$4 sm:$0xff]  }
 0x193   :  { %2281 = vmatprep.subr.bf16.mxu1 %v4243_v44  ;;  %v4321_v44 = vld [vmem:[%s6136_s27 + $0x744] ss:$8 sps:$4 sm:$0xff]  }
 0x196   :  { %2282 = vmatpush1.bf16.msra.mxu1 %v4241_v46  ;;  %v4319_v46 = vld [vmem:[%s6136_s27 + $0x740] ss:$8 sps:$4 sm:$0xff]  }
 0x197   :  { %2283 = vmatprep.subr.bf16.mxu1 %v4249_v48  ;;  %v4327_v48 = vld [vmem:[%s6136_s27 + $0x754] ss:$8 sps:$4 sm:$0xff]  }
 0x19a   :  { %2284 = vmatpush1.bf16.msra.mxu1 %v4247_v50  ;;  %v4325_v50 = vld [vmem:[%s6136_s27 + $0x750] ss:$8 sps:$4 sm:$0xff]  }
 0x19b   :  { %2285 = vmatprep.subr.bf16.mxu1 %v4255_v52  ;;  %v4333_v52 = vld [vmem:[%s6136_s27 + $0x764] ss:$8 sps:$4 sm:$0xff]  }
 0x1cc   :  { %v307_v57 = vpop.f32.mrb[0].mxu1 }
 0x1cd   :  { %v308_v60 = vadd.f32 %v3543_v54, %v307_v57  ;;  %v309_v61 = vpop.f32.mrb[1].mxu1  ;;  %v4253_v54 = vld [vmem:[%s6136_s27 + $0x590] ss:$8 sps:$4 sm:$0xff]  }
 0x1ce   :  { %v310_v62 = vpop.f32.mrb[2].mxu1  ;;  %2286 = vmatpush1.bf16.msra.mxu1 %v4253_v54  ;;  %v4069_v57 = vld [vmem:[%s6136_s27 + $0xb0] ss:$8 sps:$4 sm:$0xff]   ;;  %v4075_v61 = vld [vmem:[%s6136_s27 + $0xc0] ss:$8 sps:$4 sm:$0xff]  }
 0x1cf   :  { %v313_v0 = vmax.f32 %v308_v60, 0.0  ;;  %v311_v1 = vpop.f32.mrb[3].mxu1  ;;  %2287 = vmatprep.subr.bf16.mxu1 %v4261_v56  ;;  %v4267_v60 = vld [vmem:[%s6136_s27 + $0x5b4] ss:$8 sps:$4 sm:$0xff]   ;;  %v4265_v62 = vld [vmem:[%s6136_s27 + $0x5b0] ss:$8 sps:$4 sm:$0xff]  }
 0x1d0   :  { %v4081_v1 = vld [vmem:[%s6136_s27 + $0xd0] ss:$8 sps:$4 sm:$0xff]   ;;  %v4331_v54 = vld [vmem:[%s6136_s27 + $0x760] ss:$8 sps:$4 sm:$0xff]   ;;  %v4339_v56 = vld [vmem:[%s6136_s27 + $0x774] ss:$8 sps:$4 sm:$0xff]  }
 0x1d1   :  { %v572_v7 = vpack.c.bf16 %v313_v0, %v313_v0  ;;  %v4273_v0 = vld [vmem:[%s6136_s27 + $0x5c4] ss:$8 sps:$4 sm:$0xff]  }
 0x1d2   :  { %2288 = vmatpush1.bf16.msra.mxu1 %v4259_v58  ;;  %v4337_v58 = vld [vmem:[%s6136_s27 + $0x770] ss:$8 sps:$4 sm:$0xff]  }
 0x1d3   :  { %3563 = vmatmul.mubr.msk.bf16.vlgmr.msra.gmra.mrb[4].mxu0 %vm621_vm3, %v572_v7  ;;  %2289 = vmatprep.subr.bf16.mxu1 %v4267_v60  ;;  %v4087_v7 = vld [vmem:[%s6136_s27 + $0xe0] ss:$8 sps:$4 sm:$0xff]   ;;  %v4345_v60 = vld [vmem:[%s6136_s27 + $0x784] ss:$8 sps:$4 sm:$0xff]  }
 0x1d4   :  { %2063 = vmatpush1.bf16.msra.mxu0 %v4003_v3  ;;  %2094 = vmatprep.mubr.bf16.mxu0 %v4912_v19  ;;  %v4023_v19 = vld [vmem:[%s6136_s27 + $0x34] ss:$8 sps:$4 sm:$0xff]   ;;  %v4089_v3 = vld [vmem:[%s6136_s27 + $0xe4] ss:$8 sps:$4 sm:$0xff]  }
 0x1d5   :  { %2064 = vmatprep.subr.bf16.mxu0 %v4011_v8  ;;  %v4277_v8 = vld [vmem:[%s6136_s27 + $0x5d0] ss:$8 sps:$4 sm:$0xff]  }
 0x1d6   :  { %2290 = vmatpush1.bf16.msra.mxu1 %v4265_v62  ;;  %v4343_v62 = vld [vmem:[%s6136_s27 + $0x780] ss:$8 sps:$4 sm:$0xff]  }
 0x1d7   :  { %2291 = vmatprep.subr.bf16.mxu1 %v4273_v0  ;;  %v4351_v0 = vld [vmem:[%s6136_s27 + $0x794] ss:$8 sps:$4 sm:$0xff]  }
 0x1d8   :  { %2065 = vmatpush1.bf16.msra.mxu0 %v4009_v13  ;;  %v4093_v13 = vld [vmem:[%s6136_s27 + $0xf0] ss:$8 sps:$4 sm:$0xff]  }
 0x1d9   :  { %2066 = vmatprep.subr.bf16.mxu0 %v4017_v15  ;;  %v724_v15 = vrot.slane %v5214_v12, %v4890_v11 }
 0x1da   :  { %2292 = vmatpush1.bf16.msra.mxu1 %v4271_v2  ;;  %v4349_v2 = vld [vmem:[%s6136_s27 + $0x790] ss:$8 sps:$4 sm:$0xff]  }
 0x1db   :  { %2293 = vmatprep.subr.bf16.mxu1 %v4279_v4  ;;  %v5240_v23 = vrot.slane %v724_v15, %v4890_v11  ;;  %v4357_v4 = vld [vmem:[%s6136_s27 + $0x7a4] ss:$8 sps:$4 sm:$0xff]  }
 0x1dc   :  { %2067 = vmatpush1.bf16.msra.mxu0 %v4015_v17  ;;  %v732_v17 = vcombine.high %v724_v15, %v724_v15  ;;  %v4179_v15 = vld [vmem:[%s6136_s27 + $0x2d4] ss:$8 sps:$4 sm:$0xff]  }
 0x1dd   :  { %2068 = vmatprep.subr.bf16.mxu0 %v4023_v19  ;;  %v4099_v19 = vld [vmem:[%s6136_s27 + $0x200] ss:$8 sps:$4 sm:$0xff]  }
 0x1de   :  { %2294 = vmatpush1.bf16.msra.mxu1 %v4277_v8  ;;  %v4355_v8 = vld [vmem:[%s6136_s27 + $0x7a0] ss:$8 sps:$4 sm:$0xff]  }
 0x1df   :  { %2295 = vmatprep.subr.bf16.mxu1 %v4285_v10  ;;  %v4363_v10 = vld [vmem:[%s6136_s27 + $0x7b4] ss:$8 sps:$4 sm:$0xff]  }
 0x1e0   :  { %2069 = vmatpush1.bf16.msra.mxu0 %v4021_v22  ;;  %v5237_v22 = vrot.slane %v732_v17, %v4890_v11  ;;  %v4177_v17 = vld [vmem:[%s6136_s27 + $0x2d0] ss:$8 sps:$4 sm:$0xff]  }
 0x1e1   :  { %2070 = vmatprep.subr.bf16.mxu0 %v4029_v24  ;;  %v4107_v24 = vld [vmem:[%s6136_s27 + $0x214] ss:$8 sps:$4 sm:$0xff]  }
 0x1e2   :  { %2296 = vmatpush1.bf16.msra.mxu1 %v4283_v14  ;;  %v764_v25 = vcombine.high %v5237_v22, %v5237_v22  ;;  %v4361_v14 = vld [vmem:[%s6136_s27 + $0x7b0] ss:$8 sps:$4 sm:$0xff]  }
 0x1e3   :  { %2297 = vmatprep.subr.bf16.mxu1 %v4291_v18  ;;  %v4367_v18 = vld [vmem:[%s6136_s27 + $0x7c0] ss:$8 sps:$4 sm:$0xff]  }
 0x1e4   :  { %2071 = vmatpush1.bf16.msra.mxu0 %v4027_v26  ;;  %v762_v26 = vcombine.high %v5240_v23, %v5240_v23  ;;  %2299 = vmatprep.mubr.bf16.mxu1 %v764_v25  ;;  %v4373_v25 = vld [vmem:[%s6136_s27 + $0x7d0] ss:$8 sps:$4 sm:$0xff]  }
 0x1e5   :  { %2072 = vmatprep.subr.bf16.mxu0 %v4035_v31  ;;  %v4105_v31 = vld [vmem:[%s6136_s27 + $0x210] ss:$8 sps:$4 sm:$0xff]  }
 0x1e6   :  { %2298 = vmatpush1.bf16.msra.mxu1 %v4289_v21  ;;  %v4375_v21 = vld [vmem:[%s6136_s27 + $0x7d4] ss:$8 sps:$4 sm:$0xff]  }
 0x1e7   :  { %2349 = vmatprep.subr.bf16.mxu1 %v4297_v29  ;;  %v717_v29 = vcombine.high %v5214_v12, %v5214_v12  ;;  %v4198_v12 = vld [vmem:[%s6136_s27 + $0x404] ss:$8 sps:$4 sm:$0xff]  }
 0x1e8   :  { %2073 = vmatpush1.bf16.msra.mxu0 %v4033_v33  ;;  %v4303_v33 = vld [vmem:[%s6136_s27 + $0x714] ss:$8 sps:$4 sm:$0xff]  }
 0x1e9   :  { %2074 = vmatprep.subr.bf16.mxu0 %v4041_v35  ;;  %2300 = vmatmul.mubr.bf16.vlgmr.msra.gmra.mrb[12].mxu1 %v762_v26  ;;  %v4119_v35 = vld [vmem:[%s6136_s27 + $0x234] ss:$8 sps:$4 sm:$0xff]  }
 0x1ea   :  { %2350 = vmatpush1.bf16.msra.mxu1 %v4295_v32  ;;  %v4191_v26 = vld [vmem:[%s6136_s27 + $0x2f4] ss:$8 sps:$4 sm:$0xff]   ;;  %v4189_v32 = vld [vmem:[%s6136_s27 + $0x2f0] ss:$8 sps:$4 sm:$0xff]  }
 0x1eb   :  { %2351 = vmatprep.subr.bf16.mxu1 %v4303_v33  ;;  %v731_v33 = vrot.slane %v717_v29, %v4890_v11 }
 0x1ec   :  { %2075 = vmatpush1.bf16.msra.mxu0 %v4039_v37  ;;  %v4117_v37 = vld [vmem:[%s6136_s27 + $0x230] ss:$8 sps:$4 sm:$0xff]  }
 0x1ed   :  { %2076 = vmatprep.subr.bf16.mxu0 %v4047_v39  ;;  %v4125_v39 = vld [vmem:[%s6136_s27 + $0x244] ss:$8 sps:$4 sm:$0xff]  }
 0x1ee   :  { %2352 = vmatpush1.bf16.msra.mxu1 %v4301_v34  ;;  %v4387_v34 = vld [vmem:[%s6136_s27 + $0x7f4] ss:$8 sps:$4 sm:$0xff]  }
 0x1ef   :  { %2353 = vmatprep.subr.bf16.mxu1 %v4309_v36  ;;  %v4385_v36 = vld [vmem:[%s6136_s27 + $0x7f0] ss:$8 sps:$4 sm:$0xff]  }
 0x1f0   :  { %2077 = vmatpush1.bf16.msra.mxu0 %v4045_v41  ;;  %v4123_v41 = vld [vmem:[%s6136_s27 + $0x240] ss:$8 sps:$4 sm:$0xff]  }
 0x1f1   :  { %2078 = vmatprep.subr.bf16.mxu0 %v4053_v43  ;;  %v4131_v43 = vld [vmem:[%s6136_s27 + $0x254] ss:$8 sps:$4 sm:$0xff]  }
 0x1f2   :  { %2354 = vmatpush1.bf16.msra.mxu1 %v4307_v38  ;;  %v5447_v38 = vrot.slane %v731_v33, %v4890_v11 }
 0x1f3   :  { %2355 = vmatprep.subr.bf16.mxu1 %v4315_v40 }
 0x1f4   :  { %2079 = vmatpush1.bf16.msra.mxu0 %v4051_v45  ;;  %v4129_v45 = vld [vmem:[%s6136_s27 + $0x250] ss:$8 sps:$4 sm:$0xff]  }
 0x1f5   :  { %2080 = vmatprep.subr.bf16.mxu0 %v4059_v47  ;;  %v4137_v47 = vld [vmem:[%s6136_s27 + $0x264] ss:$8 sps:$4 sm:$0xff]  }
 0x1f6   :  { %2356 = vmatpush1.bf16.msra.mxu1 %v4313_v42  ;;  %v4210_v42 = vld [vmem:[%s6136_s27 + $0x424] ss:$8 sps:$4 sm:$0xff]  }
 0x1f7   :  { %2357 = vmatprep.subr.bf16.mxu1 %v4321_v44  ;;  %v4222_v44 = vld [vmem:[%s6136_s27 + $0x444] ss:$8 sps:$4 sm:$0xff]  }
 0x1f8   :  { %2081 = vmatpush1.bf16.msra.mxu0 %v4057_v49  ;;  %v4135_v49 = vld [vmem:[%s6136_s27 + $0x260] ss:$8 sps:$4 sm:$0xff]  }
 0x1f9   :  { %2082 = vmatprep.subr.bf16.mxu0 %v4065_v51  ;;  %v4143_v51 = vld [vmem:[%s6136_s27 + $0x274] ss:$8 sps:$4 sm:$0xff]  }
 0x1fa   :  { %2358 = vmatpush1.bf16.msra.mxu1 %v4319_v46  ;;  %v4228_v46 = vld [vmem:[%s6136_s27 + $0x454] ss:$8 sps:$4 sm:$0xff]  }
 0x1fb   :  { %2359 = vmatprep.subr.bf16.mxu1 %v4327_v48  ;;  %v4234_v48 = vld [vmem:[%s6136_s27 + $0x464] ss:$8 sps:$4 sm:$0xff]  }
 0x1fc   :  { %2083 = vmatpush1.bf16.msra.mxu0 %v4063_v53  ;;  %v4141_v53 = vld [vmem:[%s6136_s27 + $0x270] ss:$8 sps:$4 sm:$0xff]  }
 0x1fd   :  { %2084 = vmatprep.subr.bf16.mxu0 %v4071_v55  ;;  %v4149_v55 = vld [vmem:[%s6136_s27 + $0x284] ss:$8 sps:$4 sm:$0xff]  }
 0x1fe   :  { %2360 = vmatpush1.bf16.msra.mxu1 %v4325_v50 }
 0x1ff   :  { %2361 = vmatprep.subr.bf16.mxu1 %v4333_v52 }
 0x200   :  { %2085 = vmatpush1.bf16.msra.mxu0 %v4069_v57  ;;  %v4147_v57 = vld [vmem:[%s6136_s27 + $0x280] ss:$8 sps:$4 sm:$0xff]  }
 0x201   :  { %2086 = vmatprep.subr.bf16.mxu0 %v4077_v59  ;;  %v4155_v59 = vld [vmem:[%s6136_s27 + $0x294] ss:$8 sps:$4 sm:$0xff]  }
 0x202   :  { %2362 = vmatpush1.bf16.msra.mxu1 %v4331_v54 }
 0x203   :  { %2363 = vmatprep.subr.bf16.mxu1 %v4339_v56  ;;  %v4246_v56 = vld [vmem:[%s6136_s27 + $0x484] ss:$8 sps:$4 sm:$0xff]  }
 0x204   :  { %2087 = vmatpush1.bf16.msra.mxu0 %v4075_v61  ;;  %v4153_v61 = vld [vmem:[%s6136_s27 + $0x290] ss:$8 sps:$4 sm:$0xff]  }
 0x205   :  { %2088 = vmatprep.subr.bf16.mxu0 %v4083_v63  ;;  %v4161_v63 = vld [vmem:[%s6136_s27 + $0x2a4] ss:$8 sps:$4 sm:$0xff]  }
 0x206   :  { %2364 = vmatpush1.bf16.msra.mxu1 %v4337_v58  ;;  %v4252_v58 = vld [vmem:[%s6136_s27 + $0x494] ss:$8 sps:$4 sm:$0xff]  }
 0x207   :  { %2365 = vmatprep.subr.bf16.mxu1 %v4345_v60  ;;  %v4258_v60 = vld [vmem:[%s6136_s27 + $0x4a4] ss:$8 sps:$4 sm:$0xff]  }
 0x208   :  { %2089 = vmatpush1.bf16.msra.mxu0 %v4081_v1  ;;  %v4159_v1 = vld [vmem:[%s6136_s27 + $0x2a0] ss:$8 sps:$4 sm:$0xff]  }
 0x209   :  { %2090 = vmatprep.subr.bf16.mxu0 %v4089_v3  ;;  %v4167_v3 = vld [vmem:[%s6136_s27 + $0x2b4] ss:$8 sps:$4 sm:$0xff]  }
 0x20a   :  { %2366 = vmatpush1.bf16.msra.mxu1 %v4343_v62  ;;  %v4264_v62 = vld [vmem:[%s6136_s27 + $0x4b4] ss:$8 sps:$4 sm:$0xff]  }
 0x20b   :  { %2367 = vmatprep.subr.bf16.mxu1 %v4351_v0  ;;  %v4270_v0 = vld [vmem:[%s6136_s27 + $0x4c4] ss:$8 sps:$4 sm:$0xff]  }
 0x20c   :  { %2091 = vmatpush1.bf16.msra.mxu0 %v4087_v7  ;;  %v4165_v7 = vld [vmem:[%s6136_s27 + $0x2b0] ss:$8 sps:$4 sm:$0xff]   ;;  %v5491_v50 = vpop.f32.mrb[4].mxu1 }
 0x20d   :  { %2092 = vmatprep.subr.bf16.mxu0 %v4095_v9  ;;  %v4173_v9 = vld [vmem:[%s6136_s27 + $0x2c4] ss:$8 sps:$4 sm:$0xff]   ;;  %v5496_v52 = vpop.f32.mrb[5].mxu1 }
 0x20e   :  { %2368 = vmatpush1.bf16.msra.mxu1 %v4349_v2  ;;  %v4276_v2 = vld [vmem:[%s6136_s27 + $0x4d4] ss:$8 sps:$4 sm:$0xff]  }
 0x20f   :  { %2369 = vmatprep.subr.bf16.mxu1 %v4357_v4  ;;  %v4282_v4 = vld [vmem:[%s6136_s27 + $0x4e4] ss:$8 sps:$4 sm:$0xff]  }
 0x210   :  { %2093 = vmatpush1.bf16.msra.mxu0 %v4093_v13  ;;  %v4171_v13 = vld [vmem:[%s6136_s27 + $0x2c0] ss:$8 sps:$4 sm:$0xff]  }
 0x211   :  { %2144 = vmatprep.subr.bf16.mxu0 %v4101_v16  ;;  %v4369_v16 = vld [vmem:[%s6136_s27 + $0x7c4] ss:$8 sps:$4 sm:$0xff]  }
 0x212   :  { %2370 = vmatpush1.bf16.msra.mxu1 %v4355_v8  ;;  %v4288_v8 = vld [vmem:[%s6136_s27 + $0x4f4] ss:$8 sps:$4 sm:$0xff]  }
 0x213   :  { %2095 = vmatmul.mubr.bf16.vlgmr.msra.gmra.mrb[8].mxu0 %v4915_v20  ;;  %v4113_v20 = vld [vmem:[%s6136_s27 + $0x224] ss:$8 sps:$4 sm:$0xff]   ;;  %2371 = vmatprep.subr.bf16.mxu1 %v4363_v10 }
 0x214   :  { %2145 = vmatpush1.bf16.msra.mxu0 %v4099_v19  ;;  %2176 = vmatprep.mubr.bf16.mxu0 %v5027_v5  ;;  %v4111_v5 = vld [vmem:[%s6136_s27 + $0x220] ss:$8 sps:$4 sm:$0xff]   ;;  %v4185_v19 = vld [vmem:[%s6136_s27 + $0x2e4] ss:$8 sps:$4 sm:$0xff]  }
 0x215   :  { %2146 = vmatprep.subr.bf16.mxu0 %v4107_v24  ;;  %v4183_v24 = vld [vmem:[%s6136_s27 + $0x2e0] ss:$8 sps:$4 sm:$0xff]   ;;  %v4294_v10 = vld [vmem:[%s6136_s27 + $0x604] ss:$8 sps:$4 sm:$0xff]  }
 0x216   :  { %2372 = vmatpush1.bf16.msra.mxu1 %v4361_v14  ;;  %v4300_v14 = vld [vmem:[%s6136_s27 + $0x614] ss:$8 sps:$4 sm:$0xff]  }
 0x217   :  { %2373 = vmatprep.subr.bf16.mxu1 %v4369_v16  ;;  %v4306_v16 = vld [vmem:[%s6136_s27 + $0x624] ss:$8 sps:$4 sm:$0xff]  }
 0x218   :  { %2147 = vmatpush1.bf16.msra.mxu0 %v4105_v31  ;;  %v4381_v31 = vld [vmem:[%s6136_s27 + $0x7e4] ss:$8 sps:$4 sm:$0xff]  }
 0x219   :  { %2148 = vmatprep.subr.bf16.mxu0 %v4113_v20  ;;  %v4379_v20 = vld [vmem:[%s6136_s27 + $0x7e0] ss:$8 sps:$4 sm:$0xff]  }
 0x21a   :  { %2374 = vmatpush1.bf16.msra.mxu1 %v4367_v18  ;;  %v4310_v18 = vld [vmem:[%s6136_s27 + $0x630] ss:$8 sps:$4 sm:$0xff]  }
 0x21b   :  { %2375 = vmatprep.subr.bf16.mxu1 %v4375_v21  ;;  %v4316_v21 = vld [vmem:[%s6136_s27 + $0x640] ss:$8 sps:$4 sm:$0xff]  }
 0x21c   :  { %2149 = vmatpush1.bf16.msra.mxu0 %v4111_v5  ;;  %v733_v5 = vcombine.high %v731_v33, %v731_v33 }
 0x21d   :  { %2150 = vmatprep.subr.bf16.mxu0 %v4119_v35  ;;  %v4196_v35 = vld [vmem:[%s6136_s27 + $0x400] ss:$8 sps:$4 sm:$0xff]  }
 0x21e   :  { %2376 = vmatpush1.bf16.msra.mxu1 %v4373_v25  ;;  %v4322_v25 = vld [vmem:[%s6136_s27 + $0x650] ss:$8 sps:$4 sm:$0xff]  }
 0x21f   :  { %2377 = vmatprep.subr.bf16.mxu1 %v4381_v31 }
 0x220   :  { %2151 = vmatpush1.bf16.msra.mxu0 %v4117_v37  ;;  %v5444_v37 = vrot.slane %v733_v5, %v4890_v11  ;;  %v4202_v11 = vld [vmem:[%s6136_s27 + $0x410] ss:$8 sps:$4 sm:$0xff]  }
 0x221   :  { %2152 = vmatprep.subr.bf16.mxu0 %v4125_v39  ;;  %v4204_v39 = vld [vmem:[%s6136_s27 + $0x414] ss:$8 sps:$4 sm:$0xff]  }
 0x222   :  { %2378 = vmatpush1.bf16.msra.mxu1 %v4379_v20  ;;  %v765_v40 = vcombine.high %v5444_v37, %v5444_v37  ;;  %v4328_v20 = vld [vmem:[%s6136_s27 + $0x660] ss:$8 sps:$4 sm:$0xff]  }
 0x223   :  { %2379 = vmatprep.subr.bf16.mxu1 %v4387_v34 }
 0x224   :  { %2153 = vmatpush1.bf16.msra.mxu0 %v4123_v41  ;;  %v763_v41 = vcombine.high %v5447_v38, %v5447_v38  ;;  %2381 = vmatprep.mubr.bf16.mxu1 %v765_v40  ;;  %v4340_v40 = vld [vmem:[%s6136_s27 + $0x680] ss:$8 sps:$4 sm:$0xff]  }
 0x225   :  { %2154 = vmatprep.subr.bf16.mxu0 %v4131_v43  ;;  %v4216_v43 = vld [vmem:[%s6136_s27 + $0x434] ss:$8 sps:$4 sm:$0xff]  }
 0x226   :  { %2380 = vmatpush1.bf16.msra.mxu1 %v4385_v36  ;;  %v4334_v36 = vld [vmem:[%s6136_s27 + $0x670] ss:$8 sps:$4 sm:$0xff]  }
 0x228   :  { %2155 = vmatpush1.bf16.msra.mxu0 %v4129_v45  ;;  %v4220_v45 = vld [vmem:[%s6136_s27 + $0x440] ss:$8 sps:$4 sm:$0xff]  }
 0x229   :  { %2156 = vmatprep.subr.bf16.mxu0 %v4137_v47  ;;  %2382 = vmatmul.mubr.bf16.vlgmr.msra.gmra.mrb[16].mxu1 %v763_v41  ;;  %v4226_v47 = vld [vmem:[%s6136_s27 + $0x450] ss:$8 sps:$4 sm:$0xff]   ;;  %v4348_v41 = vld [vmem:[%s6136_s27 + $0x694] ss:$8 sps:$4 sm:$0xff]  }
 0x22c   :  { %2157 = vmatpush1.bf16.msra.mxu0 %v4135_v49  ;;  %v4232_v49 = vld [vmem:[%s6136_s27 + $0x460] ss:$8 sps:$4 sm:$0xff]  }
 0x22d   :  { %2158 = vmatprep.subr.bf16.mxu0 %v4143_v51  ;;  %v4240_v51 = vld [vmem:[%s6136_s27 + $0x474] ss:$8 sps:$4 sm:$0xff]  }
 0x230   :  { %2159 = vmatpush1.bf16.msra.mxu0 %v4141_v53  ;;  %v2141_v53 = vpop.f32.mrb[6].mxu1 }
 0x231   :  { %2160 = vmatprep.subr.bf16.mxu0 %v4149_v55  ;;  %v2142_v54 = vpop.f32.mrb[7].mxu1  ;;  %v4238_v55 = vld [vmem:[%s6136_s27 + $0x470] ss:$8 sps:$4 sm:$0xff]  }
 0x232   :  { %v3820_v53 = vld.sshfl [vmem:[%s6101_s13] sm:$0x33 pattern:$0x76325410]  ;;  %v4382_v54 = vld [vmem:[%s6136_s27 + $0x6f0] ss:$8 sps:$4 sm:$0xff]  }
 0x233   :  { %s6139_s13 = sld [smem:[#allocation10_spill]] }
 0x234   :  { %2161 = vmatpush1.bf16.msra.mxu0 %v4147_v57  ;;  %v4244_v57 = vld [vmem:[%s6136_s27 + $0x480] ss:$8 sps:$4 sm:$0xff]  }
 0x235   :  { %2162 = vmatprep.subr.bf16.mxu0 %v4155_v59  ;;  %v4250_v59 = vld [vmem:[%s6136_s27 + $0x490] ss:$8 sps:$4 sm:$0xff]  }
 0x238   :  { %2163 = vmatpush1.bf16.msra.mxu0 %v4153_v61  ;;  %v4256_v61 = vld [vmem:[%s6136_s27 + $0x4a0] ss:$8 sps:$4 sm:$0xff]  }
 0x239   :  { %2164 = vmatprep.subr.bf16.mxu0 %v4161_v63  ;;  %v4262_v63 = vld [vmem:[%s6136_s27 + $0x4b0] ss:$8 sps:$4 sm:$0xff]  }
 0x23c   :  { %2165 = vmatpush1.bf16.msra.mxu0 %v4159_v1  ;;  %v4268_v1 = vld [vmem:[%s6136_s27 + $0x4c0] ss:$8 sps:$4 sm:$0xff]  }
 0x23d   :  { %2166 = vmatprep.subr.bf16.mxu0 %v4167_v3  ;;  %v4274_v3 = vld [vmem:[%s6136_s27 + $0x4d0] ss:$8 sps:$4 sm:$0xff]  }
 0x240   :  { %2167 = vmatpush1.bf16.msra.mxu0 %v4165_v7  ;;  %v4280_v7 = vld [vmem:[%s6136_s27 + $0x4e0] ss:$8 sps:$4 sm:$0xff]  }
 0x241   :  { %2168 = vmatprep.subr.bf16.mxu0 %v4173_v9  ;;  %v4286_v9 = vld [vmem:[%s6136_s27 + $0x4f0] ss:$8 sps:$4 sm:$0xff]  }
 0x244   :  { %2169 = vmatpush1.bf16.msra.mxu0 %v4171_v13  ;;  %v4292_v13 = vld [vmem:[%s6136_s27 + $0x600] ss:$8 sps:$4 sm:$0xff]  }
 0x245   :  { %2170 = vmatprep.subr.bf16.mxu0 %v4179_v15  ;;  %v4298_v15 = vld [vmem:[%s6136_s27 + $0x610] ss:$8 sps:$4 sm:$0xff]  }
 0x248   :  { %2171 = vmatpush1.bf16.msra.mxu0 %v4177_v17  ;;  %v4304_v17 = vld [vmem:[%s6136_s27 + $0x620] ss:$8 sps:$4 sm:$0xff]  }
 0x249   :  { %2172 = vmatprep.subr.bf16.mxu0 %v4185_v19  ;;  %v4318_v19 = vld [vmem:[%s6136_s27 + $0x644] ss:$8 sps:$4 sm:$0xff]  }
 0x24c   :  { %2173 = vmatpush1.bf16.msra.mxu0 %v4183_v24  ;;  %v4324_v24 = vld [vmem:[%s6136_s27 + $0x654] ss:$8 sps:$4 sm:$0xff]   ;;  %v5596_v5 = vpop.f32.mrb[8].mxu1 }
 0x24d   :  { %2174 = vmatprep.subr.bf16.mxu0 %v4191_v26  ;;  %v4330_v26 = vld [vmem:[%s6136_s27 + $0x664] ss:$8 sps:$4 sm:$0xff]   ;;  %v5598_v34 = vpop.f32.mrb[9].mxu1 }
 0x250   :  { %2175 = vmatpush1.bf16.msra.mxu0 %v4189_v32 }
 0x251   :  { %2226 = vmatprep.subr.bf16.mxu0 %v4198_v12  ;;  %v4336_v12 = vld [vmem:[%s6136_s27 + $0x674] ss:$8 sps:$4 sm:$0xff]  }
 0x253   :  { %2177 = vmatmul.mubr.bf16.vlgmr.msra.gmra.mrb[12].mxu0 %v5030_v6  ;;  %v4208_v6 = vld [vmem:[%s6136_s27 + $0x420] ss:$8 sps:$4 sm:$0xff]  }
 0x254   :  { %2227 = vmatpush1.bf16.msra.mxu0 %v4196_v35  ;;  %2258 = vmatprep.mubr.bf16.mxu0 %v5237_v22  ;;  %v4214_v22 = vld [vmem:[%s6136_s27 + $0x430] ss:$8 sps:$4 sm:$0xff]   ;;  %v2223_v35 = vpop.f32.mrb[10].mxu1 }
 0x255   :  { %2228 = vmatprep.subr.bf16.mxu0 %v4204_v39  ;;  %v4342_v39 = vld [vmem:[%s6136_s27 + $0x684] ss:$8 sps:$4 sm:$0xff]  }
 0x258   :  { %2229 = vmatpush1.bf16.msra.mxu0 %v4202_v11  ;;  %v4346_v11 = vld [vmem:[%s6136_s27 + $0x690] ss:$8 sps:$4 sm:$0xff]  }
 0x259   :  { %2230 = vmatprep.subr.bf16.mxu0 %v4210_v42  ;;  %v4354_v42 = vld [vmem:[%s6136_s27 + $0x6a4] ss:$8 sps:$4 sm:$0xff]  }
 0x25c   :  { %2231 = vmatpush1.bf16.msra.mxu0 %v4208_v6  ;;  %v4352_v6 = vld [vmem:[%s6136_s27 + $0x6a0] ss:$8 sps:$4 sm:$0xff]  }
 0x25d   :  { %2232 = vmatprep.subr.bf16.mxu0 %v4216_v43  ;;  %v4360_v43 = vld [vmem:[%s6136_s27 + $0x6b4] ss:$8 sps:$4 sm:$0xff]  }
 0x260   :  { %2233 = vmatpush1.bf16.msra.mxu0 %v4214_v22  ;;  %v4358_v22 = vld [vmem:[%s6136_s27 + $0x6b0] ss:$8 sps:$4 sm:$0xff]  }
 0x261   :  { %2234 = vmatprep.subr.bf16.mxu0 %v4222_v44  ;;  %v4366_v44 = vld [vmem:[%s6136_s27 + $0x6c4] ss:$8 sps:$4 sm:$0xff]  }
 0x264   :  { %2235 = vmatpush1.bf16.msra.mxu0 %v4220_v45  ;;  %v4364_v45 = vld [vmem:[%s6136_s27 + $0x6c0] ss:$8 sps:$4 sm:$0xff]  }
 0x265   :  { %2236 = vmatprep.subr.bf16.mxu0 %v4228_v46  ;;  %v4372_v46 = vld [vmem:[%s6136_s27 + $0x6d4] ss:$8 sps:$4 sm:$0xff]  }
 0x268   :  { %2237 = vmatpush1.bf16.msra.mxu0 %v4226_v47  ;;  %v4370_v47 = vld [vmem:[%s6136_s27 + $0x6d0] ss:$8 sps:$4 sm:$0xff]  }
 0x269   :  { %2238 = vmatprep.subr.bf16.mxu0 %v4234_v48  ;;  %v4378_v48 = vld [vmem:[%s6136_s27 + $0x6e4] ss:$8 sps:$4 sm:$0xff]  }
 0x26c   :  { %2239 = vmatpush1.bf16.msra.mxu0 %v4232_v49  ;;  %v4376_v49 = vld [vmem:[%s6136_s27 + $0x6e0] ss:$8 sps:$4 sm:$0xff]  }
 0x26d   :  { %2240 = vmatprep.subr.bf16.mxu0 %v4240_v51  ;;  %v4384_v51 = vld [vmem:[%s6136_s27 + $0x6f4] ss:$8 sps:$4 sm:$0xff]  }
 0x270   :  { %2241 = vmatpush1.bf16.msra.mxu0 %v4238_v55  ;;  %v2478_v55 = vcombine.high %v3820_v53, %v3820_v53 }
 0x271   :  { %2242 = vmatprep.subr.bf16.mxu0 %v4246_v56  ;;  %v4579_v56 = vmov 0.0  }
 0x274   :  { %2243 = vmatpush1.bf16.msra.mxu0 %v4244_v57  ;;  %v2456_v57 = vld [vmem:[%s6139_s13] sm:$0x3] }
 0x275   :  { %2244 = vmatprep.subr.bf16.mxu0 %v4252_v58 }
 0x278   :  { %2245 = vmatpush1.bf16.msra.mxu0 %v4250_v59 }
 0x279   :  { %2246 = vmatprep.subr.bf16.mxu0 %v4258_v60 }
 0x27c   :  { %2247 = vmatpush1.bf16.msra.mxu0 %v4256_v61 }
 0x27d   :  { %2248 = vmatprep.subr.bf16.mxu0 %v4264_v62 }
 0x280   :  { %2249 = vmatpush1.bf16.msra.mxu0 %v4262_v63 }
 0x281   :  { %2250 = vmatprep.subr.bf16.mxu0 %v4270_v0 }
 0x284   :  { %2251 = vmatpush1.bf16.msra.mxu0 %v4268_v1 }
 0x285   :  { %2252 = vmatprep.subr.bf16.mxu0 %v4276_v2 }
 0x288   :  { %2253 = vmatpush1.bf16.msra.mxu0 %v4274_v3 }
 0x289   :  { %2254 = vmatprep.subr.bf16.mxu0 %v4282_v4 }
 0x28c   :  { %2255 = vmatpush1.bf16.msra.mxu0 %v4280_v7 }
 0x28d   :  { %2256 = vmatprep.subr.bf16.mxu0 %v4288_v8 }
 0x290   :  { %2257 = vmatpush1.bf16.msra.mxu0 %v4286_v9 }
 0x291   :  { %2308 = vmatprep.subr.bf16.mxu0 %v4294_v10 }
 0x293   :  { %2259 = vmatmul.mubr.bf16.vlgmr.msra.gmra.mrb[16].mxu0 %v5240_v23  ;;  %v4312_v23 = vld [vmem:[%s6136_s27 + $0x634] ss:$8 sps:$4 sm:$0xff]  }
 0x294   :  { %2309 = vmatpush1.bf16.msra.mxu0 %v4292_v13  ;;  %2340 = vmatprep.mubr.bf16.mxu0 %v5444_v37  ;;  %v2224_v37 = vpop.f32.mrb[11].mxu1 }
 0x295   :  { %2310 = vmatprep.subr.bf16.mxu0 %v4300_v14 }
 0x298   :  { %2311 = vmatpush1.bf16.msra.mxu0 %v4298_v15 }
 0x299   :  { %2312 = vmatprep.subr.bf16.mxu0 %v4306_v16 }
 0x29c   :  { %2313 = vmatpush1.bf16.msra.mxu0 %v4304_v17 }
 0x29d   :  { %2314 = vmatprep.subr.bf16.mxu0 %v4312_v23 }
 0x2a0   :  { %2315 = vmatpush1.bf16.msra.mxu0 %v4310_v18 }
 0x2a1   :  { %2316 = vmatprep.subr.bf16.mxu0 %v4318_v19 }
 0x2a4   :  { %2317 = vmatpush1.bf16.msra.mxu0 %v4316_v21 }
 0x2a5   :  { %2318 = vmatprep.subr.bf16.mxu0 %v4324_v24 }
 0x2a6   :  { %v659_v29 = vpop.f32.mrb[4].mxu0 }
 0x2a7   :  { %v661_v31 = vpop.f32.mrb[5].mxu0 }
 0x2a8   :  { %2319 = vmatpush1.bf16.msra.mxu0 %v4322_v25  ;;  %v663_v32 = vpop.f32.mrb[6].mxu0 }
 0x2a9   :  { %v664_v33 = vpop.f32.mrb[7].mxu0  ;;  %2320 = vmatprep.subr.bf16.mxu0 %v4330_v26 }
 0x2ac   :  { %2321 = vmatpush1.bf16.msra.mxu0 %v4328_v20 }
 0x2ad   :  { %2322 = vmatprep.subr.bf16.mxu0 %v4336_v12 }
 0x2b0   :  { %2323 = vmatpush1.bf16.msra.mxu0 %v4334_v36  ;;  %v2458_v36 = vld [vmem:[%s6102_s14] sm:$0x3] }
 0x2b1   :  { %2324 = vmatprep.subr.bf16.mxu0 %v4342_v39 }
 0x2b4   :  { %2325 = vmatpush1.bf16.msra.mxu0 %v4340_v40 }
 0x2b5   :  { %2326 = vmatprep.subr.bf16.mxu0 %v4348_v41 }
 0x2b8   :  { %2327 = vmatpush1.bf16.msra.mxu0 %v4346_v11 }
 0x2b9   :  { %2328 = vmatprep.subr.bf16.mxu0 %v4354_v42  ;;  %v2463_v42 = vrot.slane %v2458_v36, %v4786_v28 }
 0x2bc   :  { %2329 = vmatpush1.bf16.msra.mxu0 %v4352_v6  ;;  %v2301_v1 = vpop.f32.mrb[12].mxu1  ;;  %v2467_v6 = vrot.slane %v2458_v36, %v4792_v30 }
 0x2bd   :  { %2330 = vmatprep.subr.bf16.mxu0 %v4360_v43  ;;  %v2303_v2 = vpop.f32.mrb[13].mxu1 }
 0x2be   :  { %v2305_v3 = vpop.f32.mrb[14].mxu1 }
 0x2bf   :  { %v2306_v4 = vpop.f32.mrb[15].mxu1  ;;  %v4403_v3 = vld [vmem:[%s6107_s19 + $0x44] ss:$16 sps:$4 sm:$0xff]  }
 0x2c0   :  { %2331 = vmatpush1.bf16.msra.mxu0 %v4358_v22  ;;  %v4406_v4 = vld [vmem:[%s6107_s19 + $0x4c] ss:$16 sps:$4 sm:$0xff]  }
 0x2c1   :  { %2332 = vmatprep.subr.bf16.mxu0 %v4366_v44 }
 0x2c4   :  { %2333 = vmatpush1.bf16.msra.mxu0 %v4364_v45 }
 0x2c5   :  { %2334 = vmatprep.subr.bf16.mxu0 %v4372_v46 }
 0x2c8   :  { %2335 = vmatpush1.bf16.msra.mxu0 %v4370_v47 }
 0x2c9   :  { %2336 = vmatprep.subr.bf16.mxu0 %v4378_v48 }
 0x2cc   :  { %2337 = vmatpush1.bf16.msra.mxu0 %v4376_v49 }
 0x2cd   :  { %2338 = vmatprep.subr.bf16.mxu0 %v4384_v51 }
 0x2d0   :  { %2339 = vmatpush1.bf16.msra.mxu0 %v4382_v54 }
 0x2d1   :  { %3821 = vmatprep.subr.msk.mxu0 %vm2408_vm4, %v2478_v55 }
 0x2d3   :  { %2341 = vmatmul.mubr.bf16.vlgmr.msra.gmra.mrb[20].mxu0 %v5447_v38 }
 0x2d4   :  { %3822 = vmatpush1.msk.msra.mxu0 %vm2408_vm4, %v3820_v53  ;;  %2551 = vmatprep.mubr.f32.mxu0 %v4579_v56 }
 0x2db   :  { %3823 = vmatmul.mubr.msk.f32.vlgmr.msra.gmra.mrb[24].mxu0 %vm2479_vm5, %v2456_v57 }
 0x2e6   :  { %v2096_v58 = vpop.f32.mrb[8].mxu0 }
 0x2e7   :  { %v2097_v59 = vadd.f32 %v2096_v58, %v659_v29  ;;  %v2098_v60 = vpop.f32.mrb[9].mxu0 }
 0x2e8   :  { %v2099_v61 = vadd.f32 %v2098_v60, %v661_v31  ;;  %v2100_v62 = vpop.f32.mrb[10].mxu0  ;;  %v4389_v60 = vld [vmem:[%s6107_s19] ss:$16 sps:$4 sm:$0xff]  }
 0x2e9   :  { %v2138_v63 = vadd.f32 %v5491_v50, %v2097_v59  ;;  %v2101_v0 = vpop.f32.mrb[11].mxu0  ;;  %v4392_v62 = vld [vmem:[%s6107_s19 + $0x8] ss:$16 sps:$4 sm:$0xff]  }
 0x2ea   :  { %v2140_v38 = vadd.f32 %v5496_v52, %v2099_v61  ;;  %v2608_v52 = vld [vmem:[%s6140_s9] sm:$0x3]  ;;  %v4391_v61 = vld [vmem:[%s6107_s19 + $0x4] ss:$16 sps:$4 sm:$0xff]  }
 0x2eb   :  { %2612 = vperm.xlu1 %3971, %v2608_v52   ;;  %v4397_v0 = vld [vmem:[%s6107_s19 + $0x24] ss:$16 sps:$4 sm:$0xff]   ;;  %3064 = vmatprep.subr.bf16.mxu0 %v4391_v61  ;;  %v4419_v52 = vld [vmem:[%s6107_s19 + $0xa0] ss:$16 sps:$4 sm:$0xff]  }
 0x2ec   :  { %3065 = vmatpush1.bf16.msra.mxu0 %v4389_v60  ;;  %v4452_v60 = vld [vmem:[%s6107_s19 + $0x148] ss:$16 sps:$4 sm:$0xff]   ;;  %v4457_v61 = vld [vmem:[%s6107_s19 + $0x164] ss:$16 sps:$4 sm:$0xff]  }
 0x2ed   :  { %3066 = vmatprep.subr.bf16.mxu0 %v4397_v0  ;;  %v4458_v0 = vld [vmem:[%s6107_s19 + $0x168] ss:$16 sps:$4 sm:$0xff]  }
 0x2fc   :  { %v2383_v16 = vpop.f32.mrb[16].mxu1 }
 0x2fd   :  { %v2385_v23 = vpop.f32.mrb[17].mxu1 }
 0x2fe   :  { %v2387_v50 = vpop.f32.mrb[18].mxu1 }
 0x2ff   :  { %v2388_v18 = vpop.f32.mrb[19].mxu1  ;;  %v4421_v50 = vld [vmem:[%s6107_s19 + $0xa4] ss:$16 sps:$4 sm:$0xff]  }
 0x300   :  { %v4424_v18 = vld [vmem:[%s6107_s19 + $0xac] ss:$16 sps:$4 sm:$0xff]  }
 0x326   :  { %v2178_v7 = vpop.f32.mrb[12].mxu0 }
 0x327   :  { %v2179_v8 = vadd.f32 %v2178_v7, %v2138_v63  ;;  %v2180_v9 = vpop.f32.mrb[13].mxu0  ;;  %v4394_v63 = vld [vmem:[%s6107_s19 + $0xc] ss:$16 sps:$4 sm:$0xff]   ;;  %v4401_v7 = vld [vmem:[%s6107_s19 + $0x40] ss:$16 sps:$4 sm:$0xff]  }
 0x328   :  { %v2181_v10 = vadd.f32 %v2180_v9, %v2140_v38  ;;  %v2182_v13 = vpop.f32.mrb[14].mxu0  ;;  %3105 = vmatprep.subr.bf16.mxu1 %v4394_v63  ;;  %v4395_v38 = vld [vmem:[%s6107_s19 + $0x20] ss:$16 sps:$4 sm:$0xff]   ;;  %v4409_v9 = vld [vmem:[%s6107_s19 + $0x64] ss:$16 sps:$4 sm:$0xff]  }
 0x329   :  { %v2220_v14 = vadd.f32 %v5596_v5, %v2179_v8  ;;  %v2183_v15 = vpop.f32.mrb[15].mxu0  ;;  %v2390_v5 = vld [vmem:[%s6141_s8] sm:$0x3]  ;;  %3106 = vmatpush1.bf16.msra.mxu1 %v4392_v62  ;;  %3067 = vmatpush1.bf16.msra.mxu0 %v4395_v38  ;;  %v4404_v8 = vld [vmem:[%s6107_s19 + $0x48] ss:$16 sps:$4 sm:$0xff]  }
 0x32a   :  { %v2222_v17 = vadd.f32 %v5598_v34, %v2181_v10  ;;  %v2395_v40 = vrot.slane %v2390_v5, %v4786_v28  ;;  %v2399_v11 = vrot.slane %v2390_v5, %v4792_v30  ;;  %3068 = vmatprep.subr.bf16.mxu0 %v4403_v3  ;;  %v4412_v10 = vld [vmem:[%s6107_s19 + $0x6c] ss:$16 sps:$4 sm:$0xff]   ;;  %v4407_v13 = vld [vmem:[%s6107_s19 + $0x60] ss:$16 sps:$4 sm:$0xff]   ;;  %v4415_v15 = vld [vmem:[%s6107_s19 + $0x84] ss:$16 sps:$4 sm:$0xff]  }
 0x32b   :  { %v4437_v5 = vld [vmem:[%s6107_s19 + $0x100] ss:$16 sps:$4 sm:$0xff]   ;;  %v4460_v62 = vld [vmem:[%s6107_s19 + $0x16c] ss:$16 sps:$4 sm:$0xff]   ;;  %v4464_v3 = vld [vmem:[%s6107_s19 + $0x188] ss:$16 sps:$4 sm:$0xff]  }
 0x32c   :  { %v4455_v63 = vld [vmem:[%s6107_s19 + $0x160] ss:$16 sps:$4 sm:$0xff]   ;;  %v4466_v38 = vld [vmem:[%s6107_s19 + $0x18c] ss:$16 sps:$4 sm:$0xff]  }
 0x32d   :  { %3069 = vmatpush1.bf16.msra.mxu0 %v4401_v7  ;;  %v4472_v7 = vld [vmem:[%s6107_s19 + $0x1ac] ss:$16 sps:$4 sm:$0xff]  }
 0x32e   :  { %3070 = vmatprep.subr.bf16.mxu0 %v4409_v9  ;;  %v4470_v9 = vld [vmem:[%s6107_s19 + $0x1a8] ss:$16 sps:$4 sm:$0xff]  }
 0x331   :  { %3071 = vmatpush1.bf16.msra.mxu0 %v4407_v13  ;;  %v4475_v13 = vld [vmem:[%s6107_s19 + $0x1c4] ss:$16 sps:$4 sm:$0xff]  }
 0x332   :  { %3072 = vmatprep.subr.bf16.mxu0 %v4415_v15  ;;  %v4478_v15 = vld [vmem:[%s6107_s19 + $0x1cc] ss:$16 sps:$4 sm:$0xff]  }
 0x366   :  { %v2260_v19 = vpop.f32.mrb[16].mxu0 }
 0x367   :  { %v2261_v21 = vadd.f32 %v2260_v19, %v2220_v14  ;;  %v2262_v24 = vpop.f32.mrb[17].mxu0  ;;  %v4410_v14 = vld [vmem:[%s6107_s19 + $0x68] ss:$16 sps:$4 sm:$0xff]  }
 0x368   :  { %v2263_v25 = vadd.f32 %v2262_v24, %v2222_v17  ;;  %v2264_v26 = vpop.f32.mrb[18].mxu0  ;;  %v4413_v17 = vld [vmem:[%s6107_s19 + $0x80] ss:$16 sps:$4 sm:$0xff]   ;;  %v4422_v19 = vld [vmem:[%s6107_s19 + $0xa8] ss:$16 sps:$4 sm:$0xff]  }
 0x369   :  { %v2302_v29 = vadd.f32 %v2301_v1, %v2261_v21  ;;  %v2265_v31 = vpop.f32.mrb[19].mxu0  ;;  %v4400_v1 = vld [vmem:[%s6107_s19 + $0x2c] ss:$16 sps:$4 sm:$0xff]   ;;  %3073 = vmatpush1.bf16.msra.mxu0 %v4413_v17  ;;  %v4427_v21 = vld [vmem:[%s6107_s19 + $0xc4] ss:$16 sps:$4 sm:$0xff]  }
 0x36a   :  { %v2304_v32 = vadd.f32 %v2303_v2, %v2263_v25  ;;  %v4398_v2 = vld [vmem:[%s6107_s19 + $0x28] ss:$16 sps:$4 sm:$0xff]   ;;  %3107 = vmatprep.subr.bf16.mxu1 %v4400_v1  ;;  %3074 = vmatprep.subr.bf16.mxu0 %v4421_v50  ;;  %v4430_v24 = vld [vmem:[%s6107_s19 + $0xcc] ss:$16 sps:$4 sm:$0xff]   ;;  %v4425_v25 = vld [vmem:[%s6107_s19 + $0xc0] ss:$16 sps:$4 sm:$0xff]  }
 0x36b   :  { %3108 = vmatpush1.bf16.msra.mxu1 %v4398_v2  ;;  %v4428_v26 = vld [vmem:[%s6107_s19 + $0xc8] ss:$16 sps:$4 sm:$0xff]   ;;  %v4436_v31 = vld [vmem:[%s6107_s19 + $0xec] ss:$16 sps:$4 sm:$0xff]   ;;  %v4463_v1 = vld [vmem:[%s6107_s19 + $0x184] ss:$16 sps:$4 sm:$0xff]  }
 0x36c   :  { %3109 = vmatprep.subr.bf16.mxu1 %v4406_v4  ;;  %v4461_v2 = vld [vmem:[%s6107_s19 + $0x180] ss:$16 sps:$4 sm:$0xff]   ;;  %v4469_v4 = vld [vmem:[%s6107_s19 + $0x1a4] ss:$16 sps:$4 sm:$0xff]   ;;  %v4484_v17 = vld [vmem:[%s6107_s19 + $0x1ec] ss:$16 sps:$4 sm:$0xff]  }
 0x36d   :  { %3075 = vmatpush1.bf16.msra.mxu0 %v4419_v52  ;;  %v4482_v50 = vld [vmem:[%s6107_s19 + $0x1e8] ss:$16 sps:$4 sm:$0xff]   ;;  %v4486_v52 = vld [vmem:[%s6111_s23 + $0x40] sm:$0xff]  }
 0x36e   :  { %3076 = vmatprep.subr.bf16.mxu0 %v4427_v21 }
 0x36f   :  { %3110 = vmatpush1.bf16.msra.mxu1 %v4404_v8  ;;  %v4467_v8 = vld [vmem:[%s6107_s19 + $0x1a0] ss:$16 sps:$4 sm:$0xff]  }
 0x370   :  { %3111 = vmatprep.subr.bf16.mxu1 %v4412_v10  ;;  %v4473_v10 = vld [vmem:[%s6107_s19 + $0x1c0] ss:$16 sps:$4 sm:$0xff]  }
 0x371   :  { %3077 = vmatpush1.bf16.msra.mxu0 %v4425_v25  ;;  %v2613_v25 = vpop.permute.xlu1 %2612 }
 0x373   :  { %3112 = vmatpush1.bf16.msra.mxu1 %v4410_v14  ;;  %v4476_v14 = vld [vmem:[%s6107_s19 + $0x1c8] ss:$16 sps:$4 sm:$0xff]  }
 0x3a6   :  { %v2342_v20 = vpop.f32.mrb[20].mxu0 }
 0x3a7   :  { %v2343_v33 = vadd.f32 %v2342_v20, %v2302_v29  ;;  %v2344_v12 = vpop.f32.mrb[21].mxu0  ;;  %v4433_v29 = vld [vmem:[%s6107_s19 + $0xe4] ss:$16 sps:$4 sm:$0xff]   ;;  %v4434_v20 = vld [vmem:[%s6107_s19 + $0xe8] ss:$16 sps:$4 sm:$0xff]  }
 0x3a8   :  { %v2345_v34 = vadd.f32 %v2344_v12, %v2304_v32  ;;  %v2346_v35 = vpop.f32.mrb[22].mxu0  ;;  %v4431_v32 = vld [vmem:[%s6107_s19 + $0xe0] ss:$16 sps:$4 sm:$0xff]   ;;  %3078 = vmatprep.subr.bf16.mxu0 %v4433_v29  ;;  %v4442_v12 = vld [vmem:[%s6107_s19 + $0x10c] ss:$16 sps:$4 sm:$0xff]  }
 0x3a9   :  { %v2384_v37 = vadd.f32 %v2383_v16, %v2343_v33  ;;  %v2347_v39 = vpop.f32.mrb[23].mxu0  ;;  %v4418_v16 = vld [vmem:[%s6107_s19 + $0x8c] ss:$16 sps:$4 sm:$0xff]   ;;  %v4439_v33 = vld [vmem:[%s6107_s19 + $0x104] ss:$16 sps:$4 sm:$0xff]   ;;  %3079 = vmatpush1.bf16.msra.mxu0 %v4431_v32 }
 0x3aa   :  { %v2386_v41 = vadd.f32 %v2385_v23, %v2345_v34  ;;  %v4416_v23 = vld [vmem:[%s6107_s19 + $0x88] ss:$16 sps:$4 sm:$0xff]   ;;  %3113 = vmatprep.subr.bf16.mxu1 %v4418_v16  ;;  %3080 = vmatprep.subr.bf16.mxu0 %v4439_v33  ;;  %v4481_v16 = vld [vmem:[%s6107_s19 + $0x1e4] ss:$16 sps:$4 sm:$0xff]  }
 0x3ab   :  { %v5677_v43 = vadd.f32 %v2395_v40, %v2384_v37  ;;  %3114 = vmatpush1.bf16.msra.mxu1 %v4416_v23  ;;  %v4440_v34 = vld [vmem:[%s6107_s19 + $0x108] ss:$16 sps:$4 sm:$0xff]   ;;  %v4479_v23 = vld [vmem:[%s6107_s19 + $0x1e0] ss:$16 sps:$4 sm:$0xff]  }
 0x3ac   :  { %v5679_v22 = vadd.f32 %v2399_v11, %v2386_v41  ;;  %3115 = vmatprep.subr.bf16.mxu1 %v4424_v18  ;;  %v4485_v18 = vld [vmem:[%s6109_s21 + $0x40] sm:$0xff]  }
 0x3ad   :  { %v2404_v49 = vmax.f32 %v5677_v43, 0.0  ;;  %3081 = vmatpush1.bf16.msra.mxu0 %v4437_v5 }
 0x3ae   :  { %v2553_v44 = vpop.f32.mrb[24].mxu0  ;;  %v2405_v51 = vmax.f32 %v5679_v22, 0.0  ;;  %v4445_v22 = vld [vmem:[%s6107_s19 + $0x124] ss:$16 sps:$4 sm:$0xff]  }
 0x3af   :  { %v5681_v45 = vadd.f32 %v2553_v44, %v2463_v42  ;;  %v2555_v46 = vpop.f32.mrb[25].mxu0  ;;  %v2409_v57 = vsel %vm2408_vm4, %v2404_v49, 0.0  ;;  %3116 = vmatpush1.bf16.msra.mxu1 %v4422_v19  ;;  %3082 = vmatprep.subr.bf16.mxu0 %v4445_v22  ;;  %v2609_v19 = vld [vmem:[%s6105_s17] sm:$0x3]  ;;  %s3513_s17 = sshll.u32 %s4580_s30, 4  ;;  %s3514_s17 = int_to_ptr.vmem [resolvable:$true] %s3513_s17 }
 0x3b0   :  { %v5683_v47 = vadd.f32 %v2555_v46, %v2467_v6  ;;  %v2410_v58 = vsel %vm2408_vm4, %v2405_v51, 0.0  ;;  %3117 = vmatprep.subr.bf16.mxu1 %v4430_v24  ;;  %v2619_v21 = vrot.slane %v2609_v19, %v4786_v28  ;;  %v2628_v24 = vld [vmem:[%s6106_s18] sm:$0x3]  ;;  %s4581_s18 = smov [#allocation4]   ;;  %p4534_p1 = scmp.lt.s32.totalorder %s3514_s17, %s3514_s17 }
 0x3b1   :  { %v2558_v48 = vmax.f32 %v5681_v45, 0.0  ;;  %v2411_v59 = vadd.f32 %v2410_v58, %v2409_v57  ;;  %v4451_v57 = vld [vmem:[%s6107_s19 + $0x144] ss:$16 sps:$4 sm:$0xff]   ;;  %v4454_v58 = vld [vmem:[%s6107_s19 + $0x14c] ss:$16 sps:$4 sm:$0xff]   ;;  %s3523_s2 = sshll.u32 %s4581_s18, 4  ;;  %s3524_s2 = int_to_ptr.vmem [resolvable:$true] %s3523_s2 }
 0x3b2   :  { %v2559_v53 = vmax.f32 %v5683_v47, 0.0  ;;  %v2626_v29 = vmul.f32 %v2619_v21, %v2613_v25  ;;  %v4490_v21 = vld [vmem:[%s6111_s23 + $0x48] sm:$0xff]  }
 0x3b3   :  { %v2562_v54 = vsel %vm2408_vm4, %v2558_v48, 0.0  ;;  %3118 = vmatpush1.bf16.msra.mxu1 %v4428_v26  ;;  %v2623_v26 = vrot.slane %v2609_v19, %v4792_v30  ;;  %v4489_v19 = vld [vmem:[%s6109_s21 + $0x48] sm:$0xff]  }
 0x3b4   :  { %v2563_v55 = vsel %vm2408_vm4, %v2559_v53, 0.0  ;;  %3119 = vmatprep.subr.bf16.mxu1 %v4436_v31  ;;  %v2633_v31 = vrot.slane %v2628_v24, %v4786_v28 }
 0x3b5   :  { %v2564_v56 = vadd.f32 %v2563_v55, %v2562_v54  ;;  %v4443_v55 = vld [vmem:[%s6107_s19 + $0x120] ss:$16 sps:$4 sm:$0xff]   ;;  %v2627_v32 = vmul.f32 %v2623_v26, %v2613_v25  ;;  %v4492_v25 = vld [vmem:[%s6111_s23 + $0x8] sm:$0xff]  }
 0x3b6   :  { %3083 = vmatpush1.bf16.msra.mxu0 %v4443_v55  ;;  %v2640_v33 = vadd.f32 %v2633_v31, %v2626_v29  ;;  %v4493_v26 = vld [vmem:[%s6109_s21 + $0x50] sm:$0xff]  }
 0x3b7   :  { %2565 = vadd.xlane.f32.xlu0 %v2564_v56  ;;  %3120 = vmatpush1.bf16.msra.mxu1 %v4434_v20  ;;  %v4446_v56 = vld [vmem:[%s6107_s19 + $0x128] ss:$16 sps:$4 sm:$0xff]   ;;  %v2637_v20 = vrot.slane %v2628_v24, %v4792_v30  ;;  %v4494_v29 = vld [vmem:[%s6111_s23 + $0x50] sm:$0xff]  }
 0x3b8   :  { %3121 = vmatprep.subr.bf16.mxu1 %v4442_v12  ;;  %3084 = vmatprep.subr.bf16.mxu0 %v4451_v57  ;;  %v2642_v5 = vsub.f32 0.0, %v2640_v33  ;;  %v4491_v24 = vld [vmem:[%s6109_s21 + $0x8] sm:$0xff]   ;;  %v4495_v31 = vld [vmem:[%s6109_s21 + $0x10] sm:$0xff]   ;;  %v4498_v33 = vld [vmem:[%s6111_s23 + $0x58] sm:$0xff]  }
 0x3b9   :  { %v2641_v12 = vadd.f32 %v2637_v20, %v2627_v32  ;;  %v4496_v32 = vld [vmem:[%s6111_s23 + $0x10] sm:$0xff]   ;;  %v4497_v20 = vld [vmem:[%s6109_s21 + $0x58] sm:$0xff]  }
 0x3bb   :  { %2412 = vadd.xlane.f32.xlu0 %v2411_v59  ;;  %3122 = vmatpush1.bf16.msra.mxu1 %v4440_v34  ;;  %v4449_v59 = vld [vmem:[%s6107_s19 + $0x140] ss:$16 sps:$4 sm:$0xff]   ;;  %v2643_v34 = vsub.f32 0.0, %v2641_v12  ;;  %v4499_v12 = vld [vmem:[%s6109_s21 + $0x18] sm:$0xff]  }
 0x3bc   :  { %3085 = vmatpush1.bf16.msra.mxu0 %v4449_v59  ;;  %v2407_v59 = vld [vmem:[%s6100_s12] sm:$0x3] }
 0x3bd   :  { %3086 = vmatprep.subr.bf16.mxu0 %v4457_v61 }
 0x3c0   :  { %3087 = vmatpush1.bf16.msra.mxu0 %v4455_v63 }
 0x3c1   :  { %3088 = vmatprep.subr.bf16.mxu0 %v4463_v1 }
 0x3c4   :  { %3089 = vmatpush1.bf16.msra.mxu0 %v4461_v2  ;;  %v2447_v2 = vrot.slane %v2407_v59, %v4786_v28 }
 0x3c5   :  { %3090 = vmatprep.subr.bf16.mxu0 %v4469_v4 }
 0x3c8   :  { %3091 = vmatpush1.bf16.msra.mxu0 %v4467_v8 }
 0x3c9   :  { %3092 = vmatprep.subr.bf16.mxu0 %v4475_v13 }
 0x3cc   :  { %3093 = vmatpush1.bf16.msra.mxu0 %v4473_v10 }
 0x3cd   :  { %3094 = vmatprep.subr.bf16.mxu0 %v4481_v16 }
 0x3d0   :  { %3095 = vmatpush1.bf16.msra.mxu0 %v4479_v23 }
 0x3d1   :  { %3922 = vmatprep.subr.bf16.mxu0 %v4485_v18 }
 0x444   :  { %v2566_v35 = vpop.xlane.xlu0 %2565 }
 0x445   :  { %v2567_v36 = vmul.f32 0.00390625, %v2566_v35  ;;  %v2644_v35 = vmul.f32 1.442695, %v2642_v5  ;;  %v4500_v5 = vld [vmem:[%s6111_s23 + $0x18] sm:$0xff]  }
 0x447   :  { %v5811_v37 = vsub.f32 %v2558_v48, %v2567_v36  ;;  %v5815_v39 = vsub.f32 %v2559_v53, %v2567_v36  ;;  %v2646_v36 = vmul.f32 1.442695, %v2643_v34  ;;  %4517 = vpow2.f32 %v2644_v35  ;;  %v4501_v34 = vld [vmem:[%s6109_s21 + $0x60] sm:$0xff]  }
 0x448   :  { %v2413_v40 = vpop.xlane.xlu0 %2412  ;;  %v4502_v35 = vld [vmem:[%s6111_s23 + $0x60] sm:$0xff]  }
 0x449   :  { %v2415_v41 = vmul.f32 0.00390625, %v2413_v40  ;;  %v2570_v11 = vmul.f32 %v5811_v37, %v5811_v37  ;;  %v2571_v42 = vmul.f32 %v5815_v39, %v5815_v39  ;;  %4519 = vpow2.f32 %v2646_v36  ;;  %v4503_v36 = vld [vmem:[%s6109_s21 + $0x20] sm:$0xff]  }
 0x44b   :  { %v5823_v6 = vsub.f32 %v2404_v49, %v2415_v41  ;;  %v5827_v44 = vsub.f32 %v2405_v51, %v2415_v41  ;;  %v2572_v45 = vsel %vm2408_vm4, %v2570_v11, 0.0  ;;  %v2573_v46 = vsel %vm2408_vm4, %v2571_v42, 0.0  ;;  %v4448_v51 = vld [vmem:[%s6107_s19 + $0x12c] ss:$16 sps:$4 sm:$0xff]  }
 0x44c   :  { %v2574_v47 = vadd.f32 %v2573_v46, %v2572_v45  ;;  %3123 = vmatprep.subr.bf16.mxu1 %v4448_v51 }
 0x44d   :  { %v2418_v48 = vmul.f32 %v5823_v6, %v5823_v6  ;;  %v2419_v53 = vmul.f32 %v5827_v44, %v5827_v44  ;;  %3124 = vmatpush1.bf16.msra.mxu1 %v4446_v56  ;;  %v2406_v56 = vld [vmem:[%s6099_s11] sm:$0x3] }
 0x44e   :  { %2575 = vadd.xlane.f32.xlu1 %v2574_v47  ;;  %3125 = vmatprep.subr.bf16.mxu1 %v4454_v58  ;;  %v2438_v63 = vrot.slane %v2406_v56, %v4792_v30 }
 0x44f   :  { %v2420_v43 = vsel %vm2408_vm4, %v2418_v48, 0.0  ;;  %v2421_v49 = vsel %vm2408_vm4, %v2419_v53, 0.0 }
 0x450   :  { %v2422_v54 = vadd.f32 %v2421_v49, %v2420_v43  ;;  %v2560_v49 = vld [vmem:[%s6103_s15] sm:$0x3] }
 0x451   :  { %3126 = vmatpush1.bf16.msra.mxu1 %v4452_v60  ;;  %v4518_v45 = vpop.eup %4517  ;;  %v2586_v22 = vrot.slane %v2560_v49, %v4786_v28  ;;  %v2590_v51 = vrot.slane %v2560_v49, %v4792_v30  ;;  %v4514_v49 = vld [vmem:[%s6111_s23 + $0x78] sm:$0xff]  }
 0x452   :  { %2423 = vadd.xlane.f32.xlu0 %v2422_v54  ;;  %3127 = vmatprep.subr.bf16.mxu1 %v4460_v62  ;;  %v2648_v53 = vadd.f32 1.0, %v4518_v45  ;;  %v2561_v54 = vld [vmem:[%s6104_s16] sm:$0x3]  ;;  %v2434_v62 = vrot.slane %v2406_v56, %v4786_v28  ;;  %v4508_v45 = vld [vmem:[%s6111_s23 + $0x28] sm:$0xff]   ;;  %v2738_v56 = vsub.s32 3, %v4783_v27 }
 0x453   :  { %v4520_v47 = vpop.eup %4519  ;;  %v2599_v60 = vrot.slane %v2561_v54, %v4786_v28  ;;  %v2603_v61 = vrot.slane %v2561_v54, %v4792_v30  ;;  %v4515_v54 = vld [vmem:[%s6109_s21 + $0x38] sm:$0xff]  }
 0x454   :  { %v2649_v43 = vadd.f32 1.0, %v4520_v47  ;;  %v4510_v47 = vld [vmem:[%s6111_s23 + $0x70] sm:$0xff]  }
 0x455   :  { %3128 = vmatpush1.bf16.msra.mxu1 %v4458_v0 }
 0x456   :  { %3129 = vmatprep.subr.bf16.mxu1 %v4466_v38 }
 0x459   :  { %3130 = vmatpush1.bf16.msra.mxu1 %v4464_v3 }
 0x45a   :  { %3131 = vmatprep.subr.bf16.mxu1 %v4472_v7 }
 0x45d   :  { %3132 = vmatpush1.bf16.msra.mxu1 %v4470_v9 }
 0x45e   :  { %3133 = vmatprep.subr.bf16.mxu1 %v4478_v15 }
 0x461   :  { %3134 = vmatpush1.bf16.msra.mxu1 %v4476_v14 }
 0x462   :  { %3135 = vmatprep.subr.bf16.mxu1 %v4484_v17 }
 0x465   :  { %3136 = vmatpush1.bf16.msra.mxu1 %v4482_v50 }
 0x466   :  { %3944 = vmatprep.subr.bf16.mxu1 %v4486_v52 }
 0x4db   :  { %v2576_v40 = vpop.xlane.xlu1 %2575 }
 0x4dc   :  { %v2577_v41 = vmul.f32 0.00390625, %v2576_v40  ;;  %v4504_v40 = vld [vmem:[%s6111_s23 + $0x20] sm:$0xff]  }
 0x4de   :  { %v2578_v11 = vadd.f32 1e-05, %v2577_v41  ;;  %v4505_v41 = vld [vmem:[%s6109_s21 + $0x68] sm:$0xff]  }
 0x4df   :  { %v2424_v42 = vpop.xlane.xlu0 %2423 }
 0x4e0   :  { %4521 = vrsqrt.f32 %v2578_v11  ;;  %v2425_v46 = vmul.f32 0.00390625, %v2424_v42  ;;  %v4506_v11 = vld [vmem:[%s6111_s23 + $0x68] sm:$0xff]  }
 0x4e1   :  { %v4507_v42 = vld [vmem:[%s6109_s21 + $0x28] sm:$0xff]  }
 0x4e2   :  { %v2426_v48 = vadd.f32 1e-05, %v2425_v46  ;;  %v4509_v46 = vld [vmem:[%s6109_s21 + $0x70] sm:$0xff]  }
 0x4e4   :  { %4523 = vrsqrt.f32 %v2426_v48  ;;  %v4511_v48 = vld [vmem:[%s6109_s21 + $0x30] sm:$0xff]  }
 0x4e5   :  { %4525 = vrcp.f32 %v2648_v53  ;;  %v4512_v53 = vld [vmem:[%s6111_s23 + $0x30] sm:$0xff]  }
 0x4e6   :  { %4527 = vrcp.f32 %v2649_v43  ;;  %v4513_v43 = vld [vmem:[%s6109_s21 + $0x78] sm:$0xff]  }
 0x4ea   :  { %v4522_v55 = vpop.eup %4521 }
 0x4eb   :  { %v2580_v57 = vmul.f32 %v4522_v55, %v5811_v37  ;;  %v2581_v58 = vmul.f32 %v4522_v55, %v5815_v39  ;;  %v2451_v37 = vrot.slane %v2407_v59, %v4792_v30  ;;  %v2722_v55 = vld [vmem:[%s6108_s20] sm:$0xf] }
 0x4ec   :  { %v2731_v59 = vrot.slane %v2722_v55, %v4792_v30 }
 0x4ed   :  { %v2594_v0 = vmul.f32 %v2590_v51, %v2581_v58  ;;  %v2593_v1 = vmul.f32 %v2586_v22, %v2580_v57  ;;  %v4516_v22 = vld [vmem:[%s6111_s23 + $0x38] sm:$0xff]   ;;  %v2734_v51 = vsub.s32 2, %v4783_v27  ;;  %v2727_v57 = vrot.slane %v2722_v55, %v4786_v28 }
 0x4ee   :  { %v4524_v38 = vpop.eup %4523 }
 0x4ef   :  { %v2428_v39 = vmul.f32 %v4524_v38, %v5823_v6  ;;  %v2429_v3 = vmul.f32 %v4524_v38, %v5827_v44  ;;  %v2607_v4 = vadd.f32 %v2603_v61, %v2594_v0  ;;  %v2606_v7 = vadd.f32 %v2599_v60, %v2593_v1  ;;  %v4526_v8 = vpop.eup %4525  ;;  %v4487_v6 = vld [vmem:[%s6109_s21] sm:$0xff]  }
 0x4f0   :  { %v4528_v13 = vpop.eup %4527  ;;  %v4488_v44 = vld [vmem:[%s6111_s23] sm:$0xff]   ;;  %v2735_v58 = vrot.slane %v2722_v55, %v2734_v51  ;;  %v2739_v60 = vrot.slane %v2722_v55, %v2738_v56 }
 0x4f1   :  { %v2442_v9 = vmul.f32 %v2438_v63, %v2429_v3  ;;  %v2441_v10 = vmul.f32 %v2434_v62, %v2428_v39  ;;  %v2653_v15 = vmul.f32 %v4528_v13, %v2607_v4  ;;  %v2652_v17 = vmul.f32 %v4526_v8, %v2606_v7 }
 0x4f3   :  { %v2455_v14 = vadd.f32 %v2451_v37, %v2442_v9  ;;  %v2454_v16 = vadd.f32 %v2447_v2, %v2441_v10 }
 0x4f5   :  { %v2655_v23 = vmul.f32 %v2653_v15, %v2455_v14  ;;  %v2654_v50 = vmul.f32 %v2652_v17, %v2454_v16  ;;  %v3905_v17 = vld [vmem:[%s6112_s24] ss:$0 sm:$0xff]  ;;  %s4529_s24 = scalar_lea.vmem %s3514_s17, 32 }
 0x4f6   :  { %p4530_p0 = scmp.ne.s32.totalorder %s3514_s17, %s4529_s24  ;;  %p4535_p2 = scmp.lt.s32.totalorder %s4529_s24, %s4529_s24 }
 0x4f7   :  { %v2657_v18 = vpack.c.bf16 %v2655_v23, %v2655_v23  ;;  %v2656_v52 = vpack.c.bf16 %v2654_v50, %v2654_v50 }
 0x4f8   :  { %p4536_p3 = por %p4535_p2, %p4534_p1 }
 0x4f9   :  { %3096 = vmatprep.mubr.bf16.mxu0 %v2657_v18  ;;  %3137 = vmatprep.mubr.bf16.mxu1 %v2657_v18  ;;  %v3888_v18 = vld [vmem:[%s6110_s22] ss:$0 sm:$0xff] }
 0x4fa   :  { %3097 = vmatmul.mubr.bf16.vlgmr.msra.gmra.mrb[28].mxu0 %v2656_v52  ;;  %3138 = vmatmul.mubr.bf16.vlgmr.msra.gmra.mrb[20].mxu1 %v2656_v52  ;;  %p4537_p4 = pnand %p4536_p3, %p4530_p0 }
 0x4fb   :  { %3923 = vmatpush3.bf16.msra.mxu0 %v4487_v6  ;;  %3945 = vmatpush3.bf16.msra.mxu1 %v4488_v44 }
 0x4fc   :  { %3924 = vmatprep.subr.bf16.mxu0 %v4489_v19  ;;  %3946 = vmatprep.subr.bf16.mxu1 %v4490_v21 }
 0x4ff   :  { %3925 = vmatpush3.bf16.msra.mxu0 %v4491_v24  ;;  %3947 = vmatpush3.bf16.msra.mxu1 %v4492_v25 }
 0x500   :  { %3926 = vmatprep.subr.bf16.mxu0 %v4493_v26  ;;  %3948 = vmatprep.subr.bf16.mxu1 %v4494_v29 }
 0x503   :  { %3927 = vmatpush3.bf16.msra.mxu0 %v4495_v31  ;;  %3949 = vmatpush3.bf16.msra.mxu1 %v4496_v32 }
 0x504   :  { %3928 = vmatprep.subr.bf16.mxu0 %v4497_v20  ;;  %3950 = vmatprep.subr.bf16.mxu1 %v4498_v33 }
 0x507   :  { %3929 = vmatpush3.bf16.msra.mxu0 %v4499_v12  ;;  %3951 = vmatpush3.bf16.msra.mxu1 %v4500_v5 }
 0x508   :  { %3930 = vmatprep.subr.bf16.mxu0 %v4501_v34  ;;  %3952 = vmatprep.subr.bf16.mxu1 %v4502_v35 }
 0x50b   :  { %3931 = vmatpush3.bf16.msra.mxu0 %v4503_v36  ;;  %3953 = vmatpush3.bf16.msra.mxu1 %v4504_v40 }
 0x50c   :  { %3932 = vmatprep.subr.bf16.mxu0 %v4505_v41  ;;  %3954 = vmatprep.subr.bf16.mxu1 %v4506_v11 }
 0x50f   :  { %3933 = vmatpush3.bf16.msra.mxu0 %v4507_v42  ;;  %3955 = vmatpush3.bf16.msra.mxu1 %v4508_v45 }
 0x510   :  { %3934 = vmatprep.subr.bf16.mxu0 %v4509_v46  ;;  %3956 = vmatprep.subr.bf16.mxu1 %v4510_v47 }
 0x513   :  { %3935 = vmatpush3.bf16.msra.mxu0 %v4511_v48  ;;  %3957 = vmatpush3.bf16.msra.mxu1 %v4512_v53 }
 0x514   :  { %3936 = vmatprep.subr.bf16.mxu0 %v4513_v43  ;;  %3958 = vmatprep.subr.bf16.mxu1 %v4514_v49 }
 0x517   :  { %3937 = vmatpush3.bf16.msra.mxu0 %v4515_v54  ;;  %3959 = vmatpush3.bf16.msra.mxu1 %v4516_v22 }
 0x5cd   :  { %v3098_v61 = vpop.f32.mrb[28].mxu0  ;;  %v3139_v62 = vpop.f32.mrb[20].mxu1 }
 0x5ce   :  { %v3099_v63 = vadd.f32 %v3098_v61, %v2727_v57  ;;  %v3140_v0 = vadd.f32 %v3139_v62, %v2735_v58  ;;  %v3100_v1 = vpop.f32.mrb[29].mxu0  ;;  %v3141_v38 = vpop.f32.mrb[21].mxu1 }
 0x5cf   :  { %v3101_v2 = vadd.f32 %v3100_v1, %v2731_v59  ;;  %v3142_v37 = vadd.f32 %v3141_v38, %v2739_v60  ;;  %v3102_v39 = vpop.f32.mrb[30].mxu0  ;;  %v3143_v3 = vpop.f32.mrb[22].mxu1 }
 0x5d0   :  { %v3146_v4 = vmax.f32 %v3099_v63, 0.0  ;;  %v3148_v7 = vmax.f32 %v3140_v0, 0.0  ;;  %v3103_v8 = vpop.f32.mrb[31].mxu0  ;;  %v3144_v27 = vpop.f32.mrb[23].mxu1 }
 0x5d1   :  { %v3147_v9 = vmax.f32 %v3101_v2, 0.0  ;;  %v3149_v28 = vmax.f32 %v3142_v37, 0.0 }
 0x5d2   :  { %v3150_v30 = vpack.c.bf16 %v3146_v4, %v3146_v4  ;;  %v3327_v14 = vpack.c.bf16 %v3148_v7, %v3148_v7 }
 0x5d3   :  { %v3151_v10 = vpack.c.bf16 %v3147_v9, %v3147_v9  ;;  %v3328_v13 = vpack.c.bf16 %v3149_v28, %v3149_v28 }
 0x5d5   :  { %3319 = vmatprep.mubr.bf16.mxu0 %v3151_v10  ;;  %3496 = vmatprep.mubr.bf16.mxu1 %v3328_v13 }
 0x5d6   :  { %3320 = vmatmul.mubr.bf16.vlgmr.msra.gmra.mrb[32].mxu0 %v3150_v30  ;;  %3497 = vmatmul.mubr.bf16.vlgmr.msra.gmra.mrb[24].mxu1 %v3327_v14 }
 0x6a9   :  { %v3938_v15 = vpop.f32.mrb[32].mxu0  ;;  %v3960_v16 = vpop.f32.mrb[24].mxu1 }
 0x6aa   :  { %v3939_v23 = vpop.f32.mrb[33].mxu0  ;;  %v3961_v50 = vpop.f32.mrb[25].mxu1 }
 0x6ab   :  { %v3940_v52 = vadd.f32 %v3939_v23, %v3938_v15  ;;  %v3962_v6 = vadd.f32 %v3961_v50, %v3960_v16  ;;  %v3941_v44 = vpop.f32.mrb[34].mxu0  ;;  %v3963_v19 = vpop.f32.mrb[26].mxu1 }
 0x6ac   :  { %v3942_v21 = vpop.f32.mrb[35].mxu0  ;;  %v3964_v24 = vpop.f32.mrb[27].mxu1 }
 0x6ad   :  { %v3499_v25 = vadd.f32 %v3962_v6, %v3905_v17  ;;  %v3322_v26 = vadd.f32 %v3940_v52, %v3888_v18 }
 0x6af   :  { %3505 = vst.msk [vmem:[#allocation2] sm:$0x3] %vm3504_vm6, %v3322_v26  ;;  %3506 = vst.msk [vmem:[#allocation4] sm:$0x3] %vm3504_vm6, %v3499_v25 }
 0x6b0   :  { %4540 = shalt.err (!%p4537_p4)
}
 0x6b1   :  { %s4541_s5 = scalar_lea.hbm %s6113_s25, 32 }
 0x6b2   :  { %p4542_p5 = scmp.ne.s32.totalorder %s6113_s25, %s4541_s5  ;;  %p4545_p6 = scmp.lt.u32.totalorder %s4541_s5, %s6113_s25 }
 0x6b4   :  { %p4547_p7 = pnand %p4545_p6, %p4542_p5 }
 0x6b6   :  { %4550 = shalt.err (!%p4547_p7)
}
 0x6b7   :  { %3516 = dma.vmem_to_hbm [thread:$0]  %s3514_s17, 32, %s6113_s25, [#allocation3]  }
 0x6b8   :  { %s4551_s3 = scalar_lea.vmem %s3524_s2, 32  ;;  %p4556_p9 = scmp.lt.s32.totalorder %s3524_s2, %s3524_s2 }
 0x6b9   :  { %p4552_p8 = scmp.ne.s32.totalorder %s3524_s2, %s4551_s3  ;;  %p4557_p10 = scmp.lt.s32.totalorder %s4551_s3, %s4551_s3 }
 0x6bb   :  { %p4558_p11 = por %p4557_p10, %p4556_p9 }
 0x6bd   :  { %p4559_p12 = pnand %p4558_p11, %p4552_p8 }
 0x6bf   :  { %4562 = shalt.err (!%p4559_p12)
}
 0x6c0   :  { %s4563_s28 = scalar_lea.hbm %s6114_s26, 32 }
 0x6c1   :  { %p4564_p13 = scmp.ne.s32.totalorder %s6114_s26, %s4563_s28  ;;  %p4567_p0 = scmp.lt.u32.totalorder %s4563_s28, %s6114_s26 }
 0x6c3   :  { %p4569_p1 = pnand %p4567_p0, %p4564_p13 }
 0x6c5   :  { %4572 = shalt.err (!%p4569_p1)
}
 0x6c6   :  { %3526 = dma.vmem_to_hbm [thread:$0]  %s3524_s2, 32, %s6114_s26, [#allocation5]  }
 0x6c7   :  { %4573 = dma.done.wait [#allocation3], 32  }
 0x6c8   :  { %4574 = vsyncadd [#allocation3], 4294967264 }
 0x6c9   :  { %4575 = dma.done.wait [#allocation5], 32  }
 0x6ca   :  { %4576 = vsyncadd [#allocation5], 4294967264 }
 0x6cb   :  { %3533 = vsyncpa [#allocation3], 1 }
 0x6cc   :  { %3534 = vsyncpa [#allocation5], 1 }

// kernel: pcn_forward.2
= control target key start
LH: loop header
LB: loop body
LE: loop exit
PB: predicated region body
PF: predicated region fallthrough
CT: control target
= control target key end

     0   :  { %s8278_s13 = smov 0   ;;  %s9932_s0 = inlined_call_operand.vmem [shape: bf16[2048,50], index: 0, kind: input, shape index: {}]   ;;  %s9933_s1 = inlined_call_operand.vmem [shape: bf16[50,128], index: 1, kind: input, shape index: {}]   ;;  %s9934_s2 = inlined_call_operand.vmem [shape: f32[1,128], index: 2, kind: input, shape index: {}]   ;;  %s9935_s3 = inlined_call_operand.vmem [shape: bf16[576,256], index: 3, kind: input, shape index: {}]   ;;  %s9936_s4 = inlined_call_operand.vmem [shape: bf16[9,128,128], index: 4, kind: input, shape index: {}]   ;;  %s9937_s5 = inlined_call_operand.vmem [shape: f32[1,128], index: 5, kind: input, shape index: {}]   ;;  %s9938_s6 = inlined_call_operand.vmem [shape: bf16[64,64], index: 6, kind: input, shape index: {}]   ;;  %s9939_s7 = inlined_call_operand.vmem [shape: bf16[144,16], index: 7, kind: input, shape index: {}]   ;;  %s9940_s8 = inlined_call_operand.vmem [shape: bf16[9,128,128], index: 8, kind: input, shape index: {}]   ;;  %s9941_s9 = inlined_call_operand.vmem [shape: f32[1,128], index: 9, kind: input, shape index: {}]   ;;  %s9942_s10 = inlined_call_operand.vmem [shape: bf16[32,128], index: 10, kind: output, shape index: {}]  }
   0x1 LB: > { %s5859_s14 = sadd.s32 4294967295, %s8219_s13   ;;  %p5863_p0 = scmp.ge.s32.totalorder %s8219_s13, 1  ;;  %s8219_s13 = sphi %s8278_s13, %s20_s13  }
   0x2   : > { %p313_p1 = scmp.lt.s32.totalorder %s8219_s13, 3 }
   0x4   : > { %p314_p2 = pnand %p5863_p0, %p313_p1 }
   0x5   : > { %v8289_v0 = vld [vmem:[%s9933_s1] sm:$0xff] (!%p314_p2)   ;;  %v8294_v1 = vld [vmem:[%s9933_s1 + $0x8] sm:$0xff] (!%p314_p2)   ;;  %s5864_s19 = sshll.u32 (!%p314_p2), %s5859_s14, 7  ;;  %v8305_v2 = vld [vmem:[%s9933_s1 + $0x10] sm:$0xff] (!%p314_p2)   ;;  %vm511_vm0 = vcmask (!%p314_p2), 408576   ;;  %vm560_vm1 = vcmask (!%p314_p2), 1040384  }
   0x6   : > { %317 = sbr.rel (%p314_p2) target bundleno = 2684 (0xa7c), region = 60  ;;  %7167 = vmatprep.subr.bf16.mxu0 (!%p314_p2), %v8289_v0  ;;  %7793 = vmatprep.subr.bf16.mxu1 (!%p314_p2), %v8289_v0  ;;  %p352_p3 = scmp.lt.s32.totalorder (!%p314_p2), %s5864_s19, 255  ;;  %v8312_v3 = vld [vmem:[%s9933_s1 + $0x18] ss:$0 sps:$4 sm:$0x11] (!%p314_p2)   ;;  %vm4261_vm2 = vcmask (!%p314_p2), 523264  }
   0x7   : > { %7168 = vmatpush3.bf16.msra.mxu0 (!%p314_p2), %v8289_v0  ;;  %7797 = vmatpush3.bf16.msra.mxu1 (!%p314_p2), %v8289_v0  ;;  %v562_v6 = vsel (!%p314_p2), %vm560_vm1, %v8312_v3, 0  ;;  %vm8222_vm3 = vmmov (!%p314_p2), 0   ;;  %vm4353_vm4 = vcmask (!%p314_p2), 130048   ;;  %s5866_s22 = sshll.u32 (!%p314_p2), %s5859_s14, 1 }
   0x8   : > { %7169 = vmatprep.subr.bf16.mxu0 (!%p314_p2), %v8294_v1  ;;  %7794 = vmatprep.subr.bf16.mxu1 (!%p314_p2), %v8294_v1  ;;  %p358_p4 = scmp.lt.s32.totalorder (!%p314_p2), %s5866_s22, 3 }
   0xb   : > { %7170 = vmatpush3.bf16.msra.mxu0 (!%p314_p2), %v8294_v1  ;;  %7798 = vmatpush3.bf16.msra.mxu1 (!%p314_p2), %v8294_v1 }
   0xc   : > { %7171 = vmatprep.subr.bf16.mxu0 (!%p314_p2), %v8305_v2  ;;  %7795 = vmatprep.subr.bf16.mxu1 (!%p314_p2), %v8305_v2 }
   0xd   : > { %s9944_s19 = smov (!%p352_p3, %s5864_s19), 255  ;;  %s9946_s22 = smov (!%p358_p4, %s5866_s22), 3 }
   0xe   : > { %s5865_s24 = sshll.u32 %s9944_s19, 2  ;;  %s5867_s25 = sshll.u32 %s9946_s22, 2 }
   0xf   : > { %s8319_s27 = scalar_lea.vmem %s9932_s0, %s5865_s24  ;;  %7172 = vmatpush3.bf16.msra.mxu0 %v8305_v2  ;;  %7799 = vmatpush3.bf16.msra.mxu1 %v8305_v2  ;;  %s361_s14 = scalar_lea.vmem %s9942_s10, %s5867_s25 }
  0x10   : > { %v7884_v4 = vld [vmem:[%s8319_s27] sm:$0xff]   ;;  %7865 = vmatprep.subr.msk.bf16.mxu0 %vm560_vm1, %v8312_v3  ;;  %7866 = vmatprep.subr.msk.bf16.mxu1 %vm560_vm1, %v8312_v3  ;;  %v7886_v7 = vld [vmem:[%s8319_s27 + $0x8] sm:$0xff]   ;;  %v7888_v9 = vld [vmem:[%s8319_s27 + $0x10] sm:$0xff]  }
  0x11   : > { %v7885_v5 = vld [vmem:[%s8319_s27 + $0x60] sm:$0xff]   ;;  %7175 = vmatprep.mubr.msk.bf16.mxu0 %vm511_vm0, %v7884_v4  ;;  %v7887_v8 = vld [vmem:[%s8319_s27 + $0x68] sm:$0xff]   ;;  %v7889_v10 = vld [vmem:[%s8319_s27 + $0x70] sm:$0xff]  }
  0x12   : > { %7199 = vmatprep.mubr.msk.bf16.mxu1 %vm511_vm0, %v7885_v5  ;;  %v7890_v11 = vld [vmem:[%s8319_s27 + $0x18] sm:$0xff]   ;;  %v7892_v13 = vld [vmem:[%s8319_s27 + $0x20] sm:$0xff]   ;;  %v7894_v15 = vld [vmem:[%s8319_s27 + $0x28] sm:$0xff]  }
  0x13   : > { %7174 = vmatpush3.bf16.msra.mxu0 %v562_v6  ;;  %7800 = vmatpush3.bf16.msra.mxu1 %v562_v6  ;;  %v7891_v12 = vld [vmem:[%s8319_s27 + $0x78] sm:$0xff]   ;;  %v7893_v14 = vld [vmem:[%s8319_s27 + $0x80] sm:$0xff]   ;;  %v7895_v16 = vld [vmem:[%s8319_s27 + $0x88] sm:$0xff]  }
  0x14   : > { %7207 = vmatprep.subr.bf16.mxu1 %v8289_v0  ;;  %7247 = vmatprep.subr.bf16.mxu0 %v8289_v0  ;;  %v7896_v17 = vld [vmem:[%s8319_s27 + $0x30] sm:$0xff]   ;;  %v7898_v19 = vld [vmem:[%s8319_s27 + $0x38] sm:$0xff]   ;;  %v7900_v21 = vld [vmem:[%s8319_s27 + $0x40] sm:$0xff]  }
  0x15   : > { %v7897_v18 = vld [vmem:[%s8319_s27 + $0x90] sm:$0xff]   ;;  %v7899_v20 = vld [vmem:[%s8319_s27 + $0x98] sm:$0xff]   ;;  %v7901_v22 = vld [vmem:[%s8319_s27 + $0xa0] sm:$0xff]  }
  0x16   : > { %7176 = vmatmul.mubr.msk.bf16.vlgmr.msra.gmra.mrb[0].mxu0 %vm511_vm0, %v7886_v7  ;;  %7200 = vmatmul.mubr.msk.bf16.vlgmr.msra.gmra.mrb[0].mxu1 %vm511_vm0, %v7887_v8  ;;  %v7902_v23 = vld [vmem:[%s8319_s27 + $0x48] sm:$0xff]   ;;  %v7904_v25 = vld [vmem:[%s8319_s27 + $0x50] sm:$0xff]   ;;  %v7906_v27 = vld [vmem:[%s8319_s27 + $0x58] sm:$0xff]  }
  0x17   : > { %7208 = vmatpush3.bf16.msra.mxu1 %v8289_v0  ;;  %7179 = vmatprep.mubr.msk.bf16.mxu0 %vm511_vm0, %v7888_v9  ;;  %v7903_v24 = vld [vmem:[%s8319_s27 + $0xa8] sm:$0xff]   ;;  %v7905_v26 = vld [vmem:[%s8319_s27 + $0xb0] sm:$0xff]   ;;  %v7907_v28 = vld [vmem:[%s8319_s27 + $0xb8] sm:$0xff]  }
  0x18   : > { %7209 = vmatprep.subr.bf16.mxu1 %v8294_v1  ;;  %7203 = vmatprep.mubr.msk.bf16.mxu1 %vm511_vm0, %v7889_v10  ;;  %v7908_v29 = vld [vmem:[%s8319_s27 + $0xc0] sm:$0xff]   ;;  %v7910_v31 = vld [vmem:[%s8319_s27 + $0xc8] sm:$0xff]   ;;  %v7912_v33 = vld [vmem:[%s8319_s27 + $0xd0] sm:$0xff]  }
  0x19   : > { %7248 = vmatpush3.bf16.msra.mxu0 %v8289_v0  ;;  %v7909_v30 = vld [vmem:[%s8319_s27 + $0x100] sm:$0xff]   ;;  %v7911_v32 = vld [vmem:[%s8319_s27 + $0x108] sm:$0xff]   ;;  %v7913_v34 = vld [vmem:[%s8319_s27 + $0x110] sm:$0xff]  }
  0x1a   : > { %7249 = vmatprep.subr.bf16.mxu0 %v8294_v1  ;;  %v7914_v35 = vld [vmem:[%s8319_s27 + $0xd8] sm:$0xff]   ;;  %v7916_v37 = vld [vmem:[%s8319_s27 + $0xe0] sm:$0xff]   ;;  %v7918_v39 = vld [vmem:[%s8319_s27 + $0xe8] sm:$0xff]  }
  0x1b   : > { %7210 = vmatpush3.bf16.msra.mxu1 %v8294_v1  ;;  %v7915_v36 = vld [vmem:[%s8319_s27 + $0x118] sm:$0xff]   ;;  %v7917_v38 = vld [vmem:[%s8319_s27 + $0x120] sm:$0xff]   ;;  %v7919_v40 = vld [vmem:[%s8319_s27 + $0x128] sm:$0xff]  }
  0x1c   : > { %7211 = vmatprep.subr.bf16.mxu1 %v8305_v2  ;;  %v7920_v41 = vld [vmem:[%s8319_s27 + $0xf0] sm:$0xff]   ;;  %v7922_v43 = vld [vmem:[%s8319_s27 + $0xf8] sm:$0xff]   ;;  %v7924_v45 = vld [vmem:[%s8319_s27 + $0x140] sm:$0xff]  }
  0x1d   : > { %7250 = vmatpush3.bf16.msra.mxu0 %v8294_v1  ;;  %v7921_v42 = vld [vmem:[%s8319_s27 + $0x130] sm:$0xff]   ;;  %v7923_v44 = vld [vmem:[%s8319_s27 + $0x138] sm:$0xff]   ;;  %v7925_v46 = vld [vmem:[%s8319_s27 + $0x180] sm:$0xff]  }
  0x1e   : > { %7180 = vmatmul.mubr.msk.bf16.gmra.mrb[4].mxu0 %vm511_vm0, %v7890_v11  ;;  %7204 = vmatmul.mubr.msk.bf16.gmra.mrb[4].mxu1 %vm511_vm0, %v7891_v12  ;;  %v7926_v47 = vld [vmem:[%s8319_s27 + $0x148] sm:$0xff]   ;;  %v7928_v49 = vld [vmem:[%s8319_s27 + $0x150] sm:$0xff]   ;;  %v7930_v51 = vld [vmem:[%s8319_s27 + $0x158] sm:$0xff]  }
  0x1f   : > { %7212 = vmatpush3.bf16.msra.mxu1 %v8305_v2  ;;  %7183 = vmatprep.mubr.msk.bf16.mxu0 %vm511_vm0, %v7892_v13  ;;  %v7927_v48 = vld [vmem:[%s8319_s27 + $0x188] sm:$0xff]   ;;  %v7929_v50 = vld [vmem:[%s8319_s27 + $0x190] sm:$0xff]   ;;  %v7931_v52 = vld [vmem:[%s8319_s27 + $0x198] sm:$0xff]  }
  0x20   : > { %7867 = vmatprep.subr.msk.bf16.mxu1 %vm560_vm1, %v8312_v3  ;;  %7215 = vmatprep.mubr.msk.bf16.mxu1 %vm511_vm0, %v7893_v14  ;;  %v7932_v53 = vld [vmem:[%s8319_s27 + $0x160] sm:$0xff]   ;;  %v7934_v55 = vld [vmem:[%s8319_s27 + $0x168] sm:$0xff]   ;;  %v7936_v57 = vld [vmem:[%s8319_s27 + $0x170] sm:$0xff]  }
  0x21   : > { %7251 = vmatprep.subr.bf16.mxu0 %v8305_v2  ;;  %v7933_v54 = vld [vmem:[%s8319_s27 + $0x1a0] sm:$0xff]   ;;  %v7935_v56 = vld [vmem:[%s8319_s27 + $0x1a8] sm:$0xff]   ;;  %v7937_v58 = vld [vmem:[%s8319_s27 + $0x1b0] sm:$0xff]  }
  0x22   : > { %7252 = vmatpush3.bf16.msra.mxu0 %v8305_v2  ;;  %v7938_v59 = vld [vmem:[%s8319_s27 + $0x178] sm:$0xff]   ;;  %v7940_v61 = vld [vmem:[%s8319_s27 + $0x1c0] sm:$0xff]   ;;  %v7941_v62 = vld [vmem:[%s8319_s27 + $0x1c8] sm:$0xff]  }
  0x23   : > { %7214 = vmatpush3.bf16.msra.mxu1 %v562_v6  ;;  %7868 = vmatprep.subr.msk.bf16.mxu0 %vm560_vm1, %v8312_v3  ;;  %v7939_v60 = vld [vmem:[%s8319_s27 + $0x1b8] sm:$0xff]   ;;  %v7942_v63 = vld [vmem:[%s8319_s27 + $0x1d0] sm:$0xff]  }
  0x24   : > { %7287 = vmatprep.subr.bf16.mxu1 %v8289_v0  ;;  %v7947_v4 = vld [vmem:[%s8319_s27 + $0x1f8] sm:$0xff]  }
  0x26   : > { %7184 = vmatmul.mubr.msk.bf16.gmra.mrb[8].mxu0 %vm511_vm0, %v7894_v15  ;;  %7216 = vmatmul.mubr.msk.bf16.vlgmr.msra.gmra.mrb[8].mxu1 %vm511_vm0, %v7895_v16 }
  0x27   : > { %7187 = vmatprep.mubr.msk.bf16.mxu0 %vm511_vm0, %v7896_v17  ;;  %7219 = vmatprep.mubr.msk.bf16.mxu1 %vm511_vm0, %v7897_v18 }
  0x28   : > { %7254 = vmatpush3.bf16.msra.mxu0 %v562_v6  ;;  %7288 = vmatpush3.bf16.msra.mxu1 %v8289_v0  ;;  %v7943_v0 = vld [vmem:[%s8319_s27 + $0x1d8] sm:$0xff]  }
  0x29   : > { %7289 = vmatprep.subr.bf16.mxu1 %v8294_v1 }
  0x2c   : > { %7290 = vmatpush3.bf16.msra.mxu1 %v8294_v1  ;;  %v7944_v1 = vld [vmem:[%s8319_s27 + $0x1e0] sm:$0xff]  }
  0x2d   : > { %7291 = vmatprep.subr.bf16.mxu1 %v8305_v2 }
  0x2e   : > { %7188 = vmatmul.mubr.msk.bf16.gmra.mrb[12].mxu0 %vm511_vm0, %v7898_v19  ;;  %7220 = vmatmul.mubr.msk.bf16.gmra.mrb[12].mxu1 %vm511_vm0, %v7899_v20 }
  0x2f   : > { %7191 = vmatprep.mubr.msk.bf16.mxu0 %vm511_vm0, %v7900_v21  ;;  %7223 = vmatprep.mubr.msk.bf16.mxu1 %vm511_vm0, %v7901_v22  ;;  %v8502_v21 = vld [vmem:[%s9934_s2] ss:$0 sm:$0xff] }
  0x30   : > { %7292 = vmatpush3.bf16.msra.mxu1 %v8305_v2  ;;  %v7945_v2 = vld [vmem:[%s8319_s27 + $0x1e8] sm:$0xff]  }
  0x31   : > { %7869 = vmatprep.subr.msk.bf16.mxu1 %vm560_vm1, %v8312_v3  ;;  %v7946_v3 = vld [vmem:[%s8319_s27 + $0x1f0] sm:$0xff]  }
  0x34   : > { %7294 = vmatpush3.bf16.msra.mxu1 %v562_v6 }
  0x36   : > { %7192 = vmatmul.mubr.msk.bf16.gmra.mrb[16].mxu0 %vm511_vm0, %v7902_v23  ;;  %7224 = vmatmul.mubr.msk.bf16.gmra.mrb[16].mxu1 %vm511_vm0, %v7903_v24 }
  0x37   : > { %7195 = vmatprep.mubr.msk.bf16.mxu0 %vm511_vm0, %v7904_v25  ;;  %7227 = vmatprep.mubr.msk.bf16.mxu1 %vm511_vm0, %v7905_v26 }
  0x3e   : > { %7196 = vmatmul.mubr.msk.bf16.gmra.mrb[20].mxu0 %vm511_vm0, %v7906_v27  ;;  %7228 = vmatmul.mubr.msk.bf16.gmra.mrb[20].mxu1 %vm511_vm0, %v7907_v28 }
  0x3f   : > { %7231 = vmatprep.mubr.msk.bf16.mxu1 %vm511_vm0, %v7908_v29  ;;  %7255 = vmatprep.mubr.msk.bf16.mxu0 %vm511_vm0, %v7909_v30 }
  0x46   : > { %7232 = vmatmul.mubr.msk.bf16.gmra.mrb[24].mxu1 %vm511_vm0, %v7910_v31  ;;  %7256 = vmatmul.mubr.msk.bf16.vlgmr.msra.gmra.mrb[24].mxu0 %vm511_vm0, %v7911_v32 }
  0x47   : > { %7235 = vmatprep.mubr.msk.bf16.mxu1 %vm511_vm0, %v7912_v33  ;;  %7259 = vmatprep.mubr.msk.bf16.mxu0 %vm511_vm0, %v7913_v34 }
  0x4e   : > { %7236 = vmatmul.mubr.msk.bf16.gmra.mrb[28].mxu1 %vm511_vm0, %v7914_v35  ;;  %7260 = vmatmul.mubr.msk.bf16.gmra.mrb[28].mxu0 %vm511_vm0, %v7915_v36 }
  0x4f   : > { %7239 = vmatprep.mubr.msk.bf16.mxu1 %vm511_vm0, %v7916_v37  ;;  %7263 = vmatprep.mubr.msk.bf16.mxu0 %vm511_vm0, %v7917_v38 }
  0x56   : > { %7240 = vmatmul.mubr.msk.bf16.gmra.mrb[32].mxu1 %vm511_vm0, %v7918_v39  ;;  %7264 = vmatmul.mubr.msk.bf16.gmra.mrb[32].mxu0 %vm511_vm0, %v7919_v40 }
  0x57   : > { %7243 = vmatprep.mubr.msk.bf16.mxu1 %vm511_vm0, %v7920_v41  ;;  %7267 = vmatprep.mubr.msk.bf16.mxu0 %vm511_vm0, %v7921_v42 }
  0x5e   : > { %7244 = vmatmul.mubr.msk.bf16.gmra.mrb[36].mxu1 %vm511_vm0, %v7922_v43  ;;  %7268 = vmatmul.mubr.msk.bf16.gmra.mrb[36].mxu0 %vm511_vm0, %v7923_v44 }
  0x5f   : > { %7271 = vmatprep.mubr.msk.bf16.mxu0 %vm511_vm0, %v7924_v45  ;;  %7295 = vmatprep.mubr.msk.bf16.mxu1 %vm511_vm0, %v7925_v46 }
  0x66   : > { %7272 = vmatmul.mubr.msk.bf16.gmra.mrb[40].mxu0 %vm511_vm0, %v7926_v47  ;;  %7296 = vmatmul.mubr.msk.bf16.vlgmr.msra.gmra.mrb[40].mxu1 %vm511_vm0, %v7927_v48 }
  0x67   : > { %7275 = vmatprep.mubr.msk.bf16.mxu0 %vm511_vm0, %v7928_v49  ;;  %7299 = vmatprep.mubr.msk.bf16.mxu1 %vm511_vm0, %v7929_v50 }
  0x6e   : > { %7276 = vmatmul.mubr.msk.bf16.gmra.mrb[44].mxu0 %vm511_vm0, %v7930_v51  ;;  %7300 = vmatmul.mubr.msk.bf16.gmra.mrb[44].mxu1 %vm511_vm0, %v7931_v52 }
  0x6f   : > { %7279 = vmatprep.mubr.msk.bf16.mxu0 %vm511_vm0, %v7932_v53  ;;  %7303 = vmatprep.mubr.msk.bf16.mxu1 %vm511_vm0, %v7933_v54 }
  0x76   : > { %7280 = vmatmul.mubr.msk.bf16.gmra.mrb[48].mxu0 %vm511_vm0, %v7934_v55  ;;  %7304 = vmatmul.mubr.msk.bf16.gmra.mrb[48].mxu1 %vm511_vm0, %v7935_v56 }
  0x77   : > { %7283 = vmatprep.mubr.msk.bf16.mxu0 %vm511_vm0, %v7936_v57  ;;  %7307 = vmatprep.mubr.msk.bf16.mxu1 %vm511_vm0, %v7937_v58 }
  0x7e   : > { %7284 = vmatmul.mubr.msk.bf16.gmra.mrb[52].mxu0 %vm511_vm0, %v7938_v59  ;;  %7308 = vmatmul.mubr.msk.bf16.gmra.mrb[52].mxu1 %vm511_vm0, %v7939_v60  ;;  %v7950_v60 = vld [vmem:[%s9935_s3 + $0x44] ss:$8 sps:$4 sm:$0xff]  }
  0x7f   : > { %7311 = vmatprep.mubr.msk.bf16.mxu1 %vm511_vm0, %v7940_v61 }
  0x86   : > { %7312 = vmatmul.mubr.msk.bf16.gmra.mrb[56].mxu1 %vm511_vm0, %v7941_v62 }
  0x87   : > { %7315 = vmatprep.mubr.msk.bf16.mxu1 %vm511_vm0, %v7942_v63 }
  0x8e   : > { %7316 = vmatmul.mubr.msk.bf16.gmra.mrb[60].mxu1 %vm511_vm0, %v7943_v0 }
  0x8f   : > { %7319 = vmatprep.mubr.msk.bf16.mxu1 %vm511_vm0, %v7944_v1 }
  0x96   : > { %7320 = vmatmul.mubr.msk.bf16.gmra.mrb[64].mxu1 %vm511_vm0, %v7945_v2 }
  0x97   : > { %7323 = vmatprep.mubr.msk.bf16.mxu1 %vm511_vm0, %v7946_v3 }
  0x9e   : > { %7324 = vmatmul.mubr.msk.bf16.gmra.mrb[68].mxu1 %vm511_vm0, %v7947_v4 }
  0x9f   : > { %2141 = vmatprep.mubr.bf16.mxu1 %v7950_v60 }
  0xe9   : > { %v8483_v5 = vpop.f32.mrb[0].mxu1  ;;  %v7177_v6 = vpop.f32.mrb[0].mxu0 }
  0xea   : > { %v8485_v7 = vpop.f32.mrb[1].mxu1  ;;  %v598_v8 = vpop.f32.mrb[1].mxu0  ;;  %v607_v22 = vadd.f32 %v7177_v6, %v8502_v21 }
  0xeb   : > { %v8487_v9 = vpop.f32.mrb[2].mxu1  ;;  %v7178_v10 = vpop.f32.mrb[2].mxu0  ;;  %v599_v23 = vadd.f32 %v8502_v21, %v598_v8 }
  0xec   : > { %v8489_v11 = vpop.f32.mrb[3].mxu1  ;;  %v601_v12 = vpop.f32.mrb[3].mxu0  ;;  %v610_v24 = vadd.f32 %v7178_v10, %v8502_v21  ;;  %v727_v28 = vmax.f32 %v607_v22, 0.0 }
  0xed   : > { %v602_v26 = vadd.f32 %v8502_v21, %v601_v12  ;;  %v725_v32 = vmax.f32 %v599_v23, 0.0 }
  0xee   : > { %v728_v37 = vmax.f32 %v610_v24, 0.0 }
  0xef   : > { %v726_v42 = vmax.f32 %v602_v26, 0.0 }
  0xf1   : > { %v8491_v13 = vpop.f32.mrb[4].mxu1  ;;  %v7181_v14 = vpop.f32.mrb[4].mxu0 }
  0xf2   : > { %v8493_v15 = vpop.f32.mrb[5].mxu1  ;;  %v614_v16 = vpop.f32.mrb[5].mxu0  ;;  %v623_v46 = vadd.f32 %v7181_v14, %v8502_v21 }
  0xf3   : > { %v8495_v17 = vpop.f32.mrb[6].mxu1  ;;  %v7182_v18 = vpop.f32.mrb[6].mxu0  ;;  %v615_v49 = vadd.f32 %v8502_v21, %v614_v16 }
  0xf4   : > { %v8497_v19 = vpop.f32.mrb[7].mxu1  ;;  %v617_v20 = vpop.f32.mrb[7].mxu0  ;;  %v626_v51 = vadd.f32 %v7182_v18, %v8502_v21  ;;  %v731_v56 = vmax.f32 %v623_v46, 0.0 }
  0xf5   : > { %v618_v54 = vadd.f32 %v8502_v21, %v617_v20  ;;  %v729_v61 = vmax.f32 %v615_v49, 0.0 }
  0xf6   : > { %v732_v2 = vmax.f32 %v626_v51, 0.0 }
  0xf7   : > { %v730_v10 = vmax.f32 %v618_v54, 0.0 }
  0xf9   : > { %v7217_v25 = vpop.f32.mrb[8].mxu1  ;;  %v7185_v27 = vpop.f32.mrb[8].mxu0 }
  0xfa   : > { %v960_v29 = vadd.f32 %v7217_v25, %v8502_v21  ;;  %v951_v30 = vpop.f32.mrb[9].mxu1  ;;  %v630_v31 = vpop.f32.mrb[9].mxu0  ;;  %v639_v18 = vadd.f32 %v7185_v27, %v8502_v21 }
  0xfb   : > { %v952_v33 = vadd.f32 %v8502_v21, %v951_v30  ;;  %v7218_v34 = vpop.f32.mrb[10].mxu1  ;;  %v7186_v35 = vpop.f32.mrb[10].mxu0  ;;  %v631_v23 = vadd.f32 %v8502_v21, %v630_v31 }
  0xfc   : > { %v1080_v36 = vmax.f32 %v960_v29, 0.0  ;;  %v963_v38 = vadd.f32 %v7218_v34, %v8502_v21  ;;  %v954_v39 = vpop.f32.mrb[11].mxu1  ;;  %v633_v40 = vpop.f32.mrb[11].mxu0  ;;  %v642_v25 = vadd.f32 %v7186_v35, %v8502_v21 }
  0xfd   : > { %v1078_v41 = vmax.f32 %v952_v33, 0.0  ;;  %v955_v43 = vadd.f32 %v8502_v21, %v954_v39  ;;  %v634_v29 = vadd.f32 %v8502_v21, %v633_v40 }
  0xfe   : > { %v8512_v44 = vmax.f32 %v727_v28, %v1080_v36  ;;  %v1081_v45 = vmax.f32 %v963_v38, 0.0  ;;  %v733_v36 = vmax.f32 %v631_v23, 0.0 }
  0xff   : > { %v8515_v47 = vmax.f32 %v725_v32, %v1078_v41  ;;  %v1079_v48 = vmax.f32 %v955_v43, 0.0  ;;  %v735_v32 = vmax.f32 %v639_v18, 0.0  ;;  %v736_v41 = vmax.f32 %v642_v25, 0.0 }
 0x100   : > { %v8518_v50 = vmax.f32 %v728_v37, %v1081_v45  ;;  %v734_v46 = vmax.f32 %v634_v29, 0.0 }
 0x101   : > { %v8521_v52 = vmax.f32 %v726_v42, %v1079_v48  ;;  %v7221_v53 = vpop.f32.mrb[12].mxu1  ;;  %v7189_v55 = vpop.f32.mrb[12].mxu0 }
 0x102   : > { %v976_v57 = vadd.f32 %v7221_v53, %v8502_v21  ;;  %v967_v58 = vpop.f32.mrb[13].mxu1  ;;  %v646_v59 = vpop.f32.mrb[13].mxu0  ;;  %v655_v51 = vadd.f32 %v7189_v55, %v8502_v21 }
 0x103   : > { %v968_v62 = vadd.f32 %v8502_v21, %v967_v58  ;;  %v7222_v63 = vpop.f32.mrb[14].mxu1  ;;  %v7190_v0 = vpop.f32.mrb[14].mxu0  ;;  %v647_v53 = vadd.f32 %v8502_v21, %v646_v59 }
 0x104   : > { %v1084_v1 = vmax.f32 %v976_v57, 0.0  ;;  %v979_v3 = vadd.f32 %v7222_v63, %v8502_v21  ;;  %v970_v4 = vpop.f32.mrb[15].mxu1  ;;  %v649_v6 = vpop.f32.mrb[15].mxu0  ;;  %v658_v57 = vadd.f32 %v7190_v0, %v8502_v21 }
 0x105   : > { %v1082_v8 = vmax.f32 %v968_v62, 0.0  ;;  %v971_v12 = vadd.f32 %v8502_v21, %v970_v4  ;;  %v650_v58 = vadd.f32 %v8502_v21, %v649_v6  ;;  %v737_v4 = vmax.f32 %v647_v53, 0.0 }
 0x106   : > { %v8531_v14 = vmax.f32 %v731_v56, %v1084_v1  ;;  %v1085_v16 = vmax.f32 %v979_v3, 0.0  ;;  %v739_v1 = vmax.f32 %v655_v51, 0.0  ;;  %v740_v59 = vmax.f32 %v658_v57, 0.0 }
 0x107   : > { %v8534_v20 = vmax.f32 %v729_v61, %v1082_v8  ;;  %v1083_v22 = vmax.f32 %v971_v12, 0.0  ;;  %v738_v8 = vmax.f32 %v650_v58, 0.0 }
 0x108   : > { %v8537_v24 = vmax.f32 %v732_v2, %v1085_v16 }
 0x109   : > { %v8540_v26 = vmax.f32 %v730_v10, %v1083_v22  ;;  %v7225_v28 = vpop.f32.mrb[16].mxu1  ;;  %v7193_v30 = vpop.f32.mrb[16].mxu0 }
 0x10a   : > { %v992_v33 = vadd.f32 %v7225_v28, %v8502_v21  ;;  %v983_v34 = vpop.f32.mrb[17].mxu1  ;;  %v662_v27 = vpop.f32.mrb[17].mxu0  ;;  %v671_v6 = vadd.f32 %v7193_v30, %v8502_v21 }
 0x10b   : > { %v984_v37 = vadd.f32 %v8502_v21, %v983_v34  ;;  %v7226_v38 = vpop.f32.mrb[18].mxu1  ;;  %v7194_v31 = vpop.f32.mrb[18].mxu0  ;;  %v663_v18 = vadd.f32 %v8502_v21, %v662_v27 }
 0x10c   : > { %v1088_v39 = vmax.f32 %v992_v33, 0.0  ;;  %v995_v35 = vadd.f32 %v7226_v38, %v8502_v21  ;;  %v986_v42 = vpop.f32.mrb[19].mxu1  ;;  %v665_v43 = vpop.f32.mrb[19].mxu0  ;;  %v674_v29 = vadd.f32 %v7194_v31, %v8502_v21  ;;  %v743_v38 = vmax.f32 %v671_v6, 0.0 }
 0x10d   : > { %v1086_v45 = vmax.f32 %v984_v37, 0.0  ;;  %v987_v40 = vadd.f32 %v8502_v21, %v986_v42  ;;  %v741_v27 = vmax.f32 %v663_v18, 0.0 }
 0x10e   : > { %v8547_v48 = vmax.f32 %v735_v32, %v1088_v39  ;;  %v1089_v49 = vmax.f32 %v995_v35, 0.0  ;;  %v666_v32 = vadd.f32 %v8502_v21, %v665_v43 }
 0x10f   : > { %v8551_v54 = vmax.f32 %v733_v36, %v1086_v45  ;;  %v1087_v56 = vmax.f32 %v987_v40, 0.0 }
 0x110   : > { %v8555_v60 = vmax.f32 %v736_v41, %v1089_v49  ;;  %v744_v41 = vmax.f32 %v674_v29, 0.0  ;;  %v742_v35 = vmax.f32 %v666_v32, 0.0 }
 0x111   : > { %v8557_v61 = vmax.f32 %v734_v46, %v1087_v56  ;;  %v7229_v62 = vpop.f32.mrb[20].mxu1  ;;  %v7197_v63 = vpop.f32.mrb[20].mxu0 }
 0x112   : > { %v1008_v2 = vadd.f32 %v7229_v62, %v8502_v21  ;;  %v999_v3 = vpop.f32.mrb[21].mxu1  ;;  %v678_v55 = vpop.f32.mrb[21].mxu0  ;;  %v8576_v43 = vadd.f32 %v7197_v63, %v8502_v21 }
 0x113   : > { %v1000_v10 = vadd.f32 %v8502_v21, %v999_v3  ;;  %v7230_v12 = vpop.f32.mrb[22].mxu1  ;;  %v7198_v0 = vpop.f32.mrb[22].mxu0  ;;  %v8579_v46 = vadd.f32 %v8502_v21, %v678_v55 }
 0x114   : > { %v1092_v16 = vmax.f32 %v1008_v2, 0.0  ;;  %v1011_v22 = vadd.f32 %v7230_v12, %v8502_v21  ;;  %v1002_v23 = vpop.f32.mrb[23].mxu1  ;;  %v681_v25 = vpop.f32.mrb[23].mxu0  ;;  %v8584_v56 = vadd.f32 %v7198_v0, %v8502_v21 }
 0x115   : > { %v1090_v28 = vmax.f32 %v1000_v10, 0.0  ;;  %v1003_v33 = vadd.f32 %v8502_v21, %v1002_v23  ;;  %v8587_v57 = vadd.f32 %v8502_v21, %v681_v25 }
 0x116   : > { %v8567_v34 = vmax.f32 %v739_v1, %v1092_v16  ;;  %v1093_v36 = vmax.f32 %v1011_v22, 0.0  ;;  %v7962_v16 = vld [vmem:[%s9935_s3 + $0x4] ss:$8 sps:$4 sm:$0xff]  }
 0x117   : > { %v8569_v37 = vmax.f32 %v737_v4, %v1090_v28  ;;  %v1091_v30 = vmax.f32 %v1003_v33, 0.0  ;;  %2008 = vmatprep.mubr.bf16.mxu0 %v7962_v16 }
 0x118   : > { %v8571_v39 = vmax.f32 %v740_v59, %v1093_v36  ;;  %v8610_v36 = vadd.f32 %v8483_v5, %v8502_v21 }
 0x119   : > { %v8573_v42 = vmax.f32 %v738_v8, %v1091_v30  ;;  %v7233_v45 = vpop.f32.mrb[24].mxu1  ;;  %v7257_v31 = vpop.f32.mrb[24].mxu0  ;;  %v8614_v30 = vadd.f32 %v8502_v21, %v8485_v7 }
 0x11a   : > { %v1024_v40 = vadd.f32 %v7233_v45, %v8502_v21  ;;  %v1345_v49 = vadd.f32 %v7257_v31, %v8502_v21  ;;  %v1015_v51 = vpop.f32.mrb[25].mxu1  ;;  %v1336_v53 = vpop.f32.mrb[25].mxu0 }
 0x11b   : > { %v1016_v58 = vadd.f32 %v8502_v21, %v1015_v51  ;;  %v1337_v62 = vadd.f32 %v8502_v21, %v1336_v53  ;;  %v7234_v63 = vpop.f32.mrb[26].mxu1  ;;  %v7258_v1 = vpop.f32.mrb[26].mxu0 }
 0x11c   : > { %v1096_v2 = vmax.f32 %v1024_v40, 0.0  ;;  %v1465_v3 = vmax.f32 %v1345_v49, 0.0  ;;  %v1027_v55 = vadd.f32 %v7234_v63, %v8502_v21  ;;  %v1348_v4 = vadd.f32 %v7258_v1, %v8502_v21  ;;  %v1018_v59 = vpop.f32.mrb[27].mxu1  ;;  %v1339_v8 = vpop.f32.mrb[27].mxu0 }
 0x11d   : > { %v1094_v10 = vmax.f32 %v1016_v58, 0.0  ;;  %v1463_v12 = vmax.f32 %v1337_v62, 0.0  ;;  %v1019_v0 = vadd.f32 %v8502_v21, %v1018_v59  ;;  %v1340_v6 = vadd.f32 %v8502_v21, %v1339_v8 }
 0x11e   : > { %v8598_v18 = vmax.f32 %v743_v38, %v1096_v2  ;;  %v8601_v22 = vmax.f32 %v8512_v44, %v1465_v3  ;;  %v1097_v23 = vmax.f32 %v1027_v55, 0.0  ;;  %v1466_v25 = vmax.f32 %v1348_v4, 0.0 }
 0x11f   : > { %v8603_v28 = vmax.f32 %v741_v27, %v1094_v10  ;;  %v8606_v29 = vmax.f32 %v8515_v47, %v1463_v12  ;;  %v1095_v32 = vmax.f32 %v1019_v0, 0.0  ;;  %v1464_v33 = vmax.f32 %v1340_v6, 0.0 }
 0x120   : > { %v8616_v44 = vmax.f32 %v744_v41, %v1097_v23  ;;  %v8619_v38 = vmax.f32 %v8518_v50, %v1466_v25  ;;  %v8623_v47 = vadd.f32 %v8487_v9, %v8502_v21  ;;  %v8627_v27 = vadd.f32 %v8502_v21, %v8489_v11 }
 0x121   : > { %v8629_v45 = vmax.f32 %v742_v35, %v1095_v32  ;;  %v8632_v5 = vmax.f32 %v8521_v52, %v1464_v33  ;;  %v7237_v7 = vpop.f32.mrb[28].mxu1  ;;  %v7261_v31 = vpop.f32.mrb[28].mxu0  ;;  %v747_v41 = vmax.f32 %v8576_v43, 0.0  ;;  %v745_v50 = vmax.f32 %v8579_v46, 0.0 }
 0x122   : > { %v1040_v40 = vadd.f32 %v7237_v7, %v8502_v21  ;;  %v1361_v9 = vadd.f32 %v7261_v31, %v8502_v21  ;;  %v1031_v49 = vpop.f32.mrb[29].mxu1  ;;  %v1352_v51 = vpop.f32.mrb[29].mxu0  ;;  %v748_v11 = vmax.f32 %v8584_v56, 0.0  ;;  %v746_v35 = vmax.f32 %v8587_v57, 0.0 }
 0x123   : > { %v1032_v53 = vadd.f32 %v8502_v21, %v1031_v49  ;;  %v1353_v52 = vadd.f32 %v8502_v21, %v1352_v51  ;;  %v7238_v58 = vpop.f32.mrb[30].mxu1  ;;  %v7262_v62 = vpop.f32.mrb[30].mxu0  ;;  %v751_v25 = vmax.f32 %v8610_v36, 0.0  ;;  %v749_v32 = vmax.f32 %v8614_v30, 0.0 }
 0x124   : > { %v1100_v63 = vmax.f32 %v1040_v40, 0.0  ;;  %v1469_v43 = vmax.f32 %v1361_v9, 0.0  ;;  %v1043_v46 = vadd.f32 %v7238_v58, %v8502_v21  ;;  %v1364_v1 = vadd.f32 %v7262_v62, %v8502_v21  ;;  %v1034_v2 = vpop.f32.mrb[31].mxu1  ;;  %v1355_v3 = vpop.f32.mrb[31].mxu0 }
 0x125   : > { %v1098_v55 = vmax.f32 %v1032_v53, 0.0  ;;  %v1467_v4 = vmax.f32 %v1353_v52, 0.0  ;;  %v1035_v56 = vadd.f32 %v8502_v21, %v1034_v2  ;;  %v1356_v57 = vadd.f32 %v8502_v21, %v1355_v3 }
 0x126   : > { %v8646_v59 = vmax.f32 %v747_v41, %v1100_v63  ;;  %v8649_v8 = vmax.f32 %v8531_v14, %v1469_v43  ;;  %v1101_v10 = vmax.f32 %v1043_v46, 0.0  ;;  %v1470_v12 = vmax.f32 %v1364_v1, 0.0 }
 0x127   : > { %v8651_v0 = vmax.f32 %v745_v50, %v1098_v55  ;;  %v8654_v6 = vmax.f32 %v8534_v20, %v1467_v4  ;;  %v1099_v16 = vmax.f32 %v1035_v56, 0.0  ;;  %v1468_v23 = vmax.f32 %v1356_v57, 0.0 }
 0x128   : > { %v8658_v33 = vmax.f32 %v748_v11, %v1101_v10  ;;  %v8661_v7 = vmax.f32 %v8537_v24, %v1470_v12  ;;  %v752_v14 = vmax.f32 %v8623_v47, 0.0  ;;  %v750_v31 = vmax.f32 %v8627_v27, 0.0 }
 0x129   : > { %v8665_v41 = vmax.f32 %v746_v35, %v1099_v16  ;;  %v8668_v20 = vmax.f32 %v8540_v26, %v1468_v23  ;;  %v7241_v50 = vpop.f32.mrb[32].mxu1  ;;  %v7265_v40 = vpop.f32.mrb[32].mxu0  ;;  %v719_v36 = vadd.f32 %v8491_v13, %v8502_v21  ;;  %v711_v30 = vadd.f32 %v8502_v21, %v8493_v15 }
 0x12a   : > { %v1056_v24 = vadd.f32 %v7241_v50, %v8502_v21  ;;  %v1377_v9 = vadd.f32 %v7265_v40, %v8502_v21  ;;  %v1047_v47 = vpop.f32.mrb[33].mxu1  ;;  %v1368_v49 = vpop.f32.mrb[33].mxu0  ;;  %v722_v27 = vadd.f32 %v8495_v17, %v8502_v21  ;;  %v714_v26 = vadd.f32 %v8502_v21, %v8497_v19 }
 0x12b   : > { %v1048_v51 = vadd.f32 %v8502_v21, %v1047_v47  ;;  %v1369_v11 = vadd.f32 %v8502_v21, %v1368_v49  ;;  %v7242_v13 = vpop.f32.mrb[34].mxu1  ;;  %v7266_v35 = vpop.f32.mrb[34].mxu0  ;;  %v755_v40 = vmax.f32 %v719_v36, 0.0 }
 0x12c   : > { %v1104_v53 = vmax.f32 %v1056_v24, 0.0  ;;  %v1473_v15 = vmax.f32 %v1377_v9, 0.0  ;;  %v1059_v52 = vadd.f32 %v7242_v13, %v8502_v21  ;;  %v1380_v58 = vadd.f32 %v7266_v35, %v8502_v21  ;;  %v1050_v62 = vpop.f32.mrb[35].mxu1  ;;  %v1371_v63 = vpop.f32.mrb[35].mxu0 }
 0x12d   : > { %v1102_v43 = vmax.f32 %v1048_v51, 0.0  ;;  %v1471_v46 = vmax.f32 %v1369_v11, 0.0  ;;  %v1051_v17 = vadd.f32 %v8502_v21, %v1050_v62  ;;  %v1372_v19 = vadd.f32 %v8502_v21, %v1371_v63 }
 0x12e   : > { %v8686_v1 = vmax.f32 %v751_v25, %v1104_v53  ;;  %v8689_v2 = vmax.f32 %v8547_v48, %v1473_v15  ;;  %v1105_v3 = vmax.f32 %v1059_v52, 0.0  ;;  %v1474_v55 = vmax.f32 %v1380_v58, 0.0 }
 0x12f   : > { %v8691_v4 = vmax.f32 %v749_v32, %v1102_v43  ;;  %v8694_v56 = vmax.f32 %v8551_v54, %v1471_v46  ;;  %v1103_v57 = vmax.f32 %v1051_v17, 0.0  ;;  %v1472_v10 = vmax.f32 %v1372_v19, 0.0 }
 0x130   : > { %v8696_v12 = vmax.f32 %v752_v14, %v1105_v3  ;;  %v8699_v16 = vmax.f32 %v8555_v60, %v1474_v55  ;;  %v753_v32 = vmax.f32 %v711_v30, 0.0  ;;  %v756_v14 = vmax.f32 %v722_v27, 0.0 }
 0x131   : > { %v8701_v23 = vmax.f32 %v750_v31, %v1103_v57  ;;  %v8704_v25 = vmax.f32 %v8557_v61, %v1472_v10  ;;  %v7245_v48 = vpop.f32.mrb[36].mxu1  ;;  %v7269_v50 = vpop.f32.mrb[36].mxu0  ;;  %v754_v49 = vmax.f32 %v714_v26, 0.0 }
 0x132   : > { %v1072_v24 = vadd.f32 %v7245_v48, %v8502_v21  ;;  %v1393_v54 = vadd.f32 %v7269_v50, %v8502_v21  ;;  %v1063_v9 = vpop.f32.mrb[37].mxu1  ;;  %v1384_v47 = vpop.f32.mrb[37].mxu0 }
 0x133   : > { %v1064_v60 = vadd.f32 %v8502_v21, %v1063_v9  ;;  %v1385_v31 = vadd.f32 %v8502_v21, %v1384_v47  ;;  %v7246_v51 = vpop.f32.mrb[38].mxu1  ;;  %v7270_v11 = vpop.f32.mrb[38].mxu0 }
 0x134   : > { %v1108_v61 = vmax.f32 %v1072_v24, 0.0  ;;  %v1477_v13 = vmax.f32 %v1393_v54, 0.0  ;;  %v1075_v35 = vadd.f32 %v7246_v51, %v8502_v21  ;;  %v1396_v36 = vadd.f32 %v7270_v11, %v8502_v21  ;;  %v1066_v30 = vpop.f32.mrb[39].mxu1  ;;  %v1387_v53 = vpop.f32.mrb[39].mxu0 }
 0x135   : > { %v1106_v15 = vmax.f32 %v1064_v60, 0.0  ;;  %v1475_v52 = vmax.f32 %v1385_v31, 0.0  ;;  %v1067_v58 = vadd.f32 %v8502_v21, %v1066_v30  ;;  %v1388_v27 = vadd.f32 %v8502_v21, %v1387_v53 }
 0x136   : > { %v8714_v26 = vmax.f32 %v755_v40, %v1108_v61  ;;  %v8717_v62 = vmax.f32 %v8567_v34, %v1477_v13  ;;  %v1109_v63 = vmax.f32 %v1075_v35, 0.0  ;;  %v1478_v43 = vmax.f32 %v1396_v36, 0.0 }
 0x137   : > { %v8719_v46 = vmax.f32 %v753_v32, %v1106_v15  ;;  %v8722_v17 = vmax.f32 %v8569_v37, %v1475_v52  ;;  %v1107_v19 = vmax.f32 %v1067_v58, 0.0  ;;  %v1476_v3 = vmax.f32 %v1388_v27, 0.0 }
 0x138   : > { %v8724_v55 = vmax.f32 %v756_v14, %v1109_v63  ;;  %v8727_v57 = vmax.f32 %v8571_v39, %v1478_v43 }
 0x139   : > { %v8729_v10 = vmax.f32 %v754_v49, %v1107_v19  ;;  %v8732_v48 = vmax.f32 %v8573_v42, %v1476_v3  ;;  %v7273_v34 = vpop.f32.mrb[40].mxu0  ;;  %v7297_v50 = vpop.f32.mrb[40].mxu1 }
 0x13a   : > { %v1409_v40 = vadd.f32 %v7273_v34, %v8502_v21  ;;  %v1730_v32 = vadd.f32 %v7297_v50, %v8502_v21  ;;  %v1400_v37 = vpop.f32.mrb[41].mxu0  ;;  %v1721_v24 = vpop.f32.mrb[41].mxu1 }
 0x13b   : > { %v1401_v54 = vadd.f32 %v8502_v21, %v1400_v37  ;;  %v1722_v9 = vadd.f32 %v8502_v21, %v1721_v24  ;;  %v7274_v47 = vpop.f32.mrb[42].mxu0  ;;  %v7298_v39 = vpop.f32.mrb[42].mxu1 }
 0x13c   : > { %v1481_v14 = vmax.f32 %v1409_v40, 0.0  ;;  %v1850_v49 = vmax.f32 %v1730_v32, 0.0  ;;  %v1412_v60 = vadd.f32 %v7274_v47, %v8502_v21  ;;  %v1733_v42 = vadd.f32 %v7298_v39, %v8502_v21  ;;  %v1403_v31 = vpop.f32.mrb[43].mxu0  ;;  %v1724_v51 = vpop.f32.mrb[43].mxu1 }
 0x13d   : > { %v1479_v11 = vmax.f32 %v1401_v54, 0.0  ;;  %v1848_v61 = vmax.f32 %v1722_v9, 0.0  ;;  %v1404_v13 = vadd.f32 %v8502_v21, %v1403_v31  ;;  %v1725_v35 = vadd.f32 %v8502_v21, %v1724_v51 }
 0x13e   : > { %v8743_v36 = vmax.f32 %v8598_v18, %v1481_v14  ;;  %v1882_v30 = vmax.f32 %v8601_v22, %v1850_v49  ;;  %v1482_v53 = vmax.f32 %v1412_v60, 0.0  ;;  %v1851_v15 = vmax.f32 %v1733_v42, 0.0 }
 0x13f   : > { %v8747_v52 = vmax.f32 %v8603_v28, %v1479_v11  ;;  %v1880_v58 = vmax.f32 %v8606_v29, %v1848_v61  ;;  %v1480_v27 = vmax.f32 %v1404_v13, 0.0  ;;  %v1849_v63 = vmax.f32 %v1725_v35, 0.0 }
 0x140   : > { %v8751_v43 = vmax.f32 %v8616_v44, %v1482_v53  ;;  %v1883_v19 = vmax.f32 %v8619_v38, %v1851_v15 }
 0x141   : > { %v8755_v3 = vmax.f32 %v8629_v45, %v1480_v27  ;;  %v1881_v18 = vmax.f32 %v8632_v5, %v1849_v63  ;;  %v7277_v22 = vpop.f32.mrb[44].mxu0  ;;  %v7301_v34 = vpop.f32.mrb[44].mxu1 }
 0x142   : > { %v8758_v50 = vpack.c.bf16 %v1883_v19, %v1882_v30  ;;  %v1425_v28 = vadd.f32 %v7277_v22, %v8502_v21  ;;  %v1746_v29 = vadd.f32 %v7301_v34, %v8502_v21  ;;  %v1416_v40 = vpop.f32.mrb[45].mxu0  ;;  %v1737_v32 = vpop.f32.mrb[45].mxu1 }
 0x143   : > { %v8762_v37 = vpack.c.bf16 %v1881_v18, %v1880_v58  ;;  %v1417_v44 = vadd.f32 %v8502_v21, %v1416_v40  ;;  %v1738_v38 = vadd.f32 %v8502_v21, %v1737_v32  ;;  %v7278_v45 = vpop.f32.mrb[46].mxu0  ;;  %v7302_v24 = vpop.f32.mrb[46].mxu1 }
 0x144   : > { %v1485_v54 = vmax.f32 %v1425_v28, 0.0  ;;  %v1854_v5 = vmax.f32 %v1746_v29, 0.0  ;;  %v1428_v9 = vadd.f32 %v7278_v45, %v8502_v21  ;;  %v1749_v47 = vadd.f32 %v7302_v24, %v8502_v21  ;;  %v1419_v39 = vpop.f32.mrb[47].mxu0  ;;  %v1740_v14 = vpop.f32.mrb[47].mxu1 }
 0x145   : > { %v1483_v49 = vmax.f32 %v1417_v44, 0.0  ;;  %v1852_v60 = vmax.f32 %v1738_v38, 0.0  ;;  %v1420_v42 = vadd.f32 %v8502_v21, %v1419_v39  ;;  %v1741_v31 = vadd.f32 %v8502_v21, %v1740_v14 }
 0x146   : > { %v8771_v51 = vmax.f32 %v8646_v59, %v1485_v54  ;;  %v1886_v11 = vmax.f32 %v8649_v8, %v1854_v5  ;;  %v1486_v61 = vmax.f32 %v1428_v9, 0.0  ;;  %v1855_v13 = vmax.f32 %v1749_v47, 0.0 }
 0x147   : > { %v8775_v35 = vmax.f32 %v8651_v0, %v1483_v49  ;;  %v1884_v30 = vmax.f32 %v8654_v6, %v1852_v60  ;;  %v1484_v53 = vmax.f32 %v1420_v42, 0.0  ;;  %v1853_v15 = vmax.f32 %v1741_v31, 0.0 }
 0x148   : > { %v8779_v58 = vmax.f32 %v8658_v33, %v1486_v61  ;;  %v1887_v27 = vmax.f32 %v8661_v7, %v1855_v13 }
 0x149   : > { %v8783_v63 = vmax.f32 %v8665_v41, %v1484_v53  ;;  %v1885_v59 = vmax.f32 %v8668_v20, %v1853_v15  ;;  %v7281_v8 = vpop.f32.mrb[48].mxu0  ;;  %v7305_v19 = vpop.f32.mrb[48].mxu1 }
 0x14a   : > { %v8786_v18 = vpack.c.bf16 %v1887_v27, %v1886_v11  ;;  %v1441_v0 = vadd.f32 %v7281_v8, %v8502_v21  ;;  %v1762_v6 = vadd.f32 %v7305_v19, %v8502_v21  ;;  %v1432_v22 = vpop.f32.mrb[49].mxu0  ;;  %v1753_v34 = vpop.f32.mrb[49].mxu1 }
 0x14b   : > { %v8790_v28 = vpack.c.bf16 %v1885_v59, %v1884_v30  ;;  %v1433_v33 = vadd.f32 %v8502_v21, %v1432_v22  ;;  %v1754_v7 = vadd.f32 %v8502_v21, %v1753_v34  ;;  %v7282_v41 = vpop.f32.mrb[50].mxu0  ;;  %v7306_v29 = vpop.f32.mrb[50].mxu1 }
 0x14c   : > { %v1489_v40 = vmax.f32 %v1441_v0, 0.0  ;;  %v1858_v20 = vmax.f32 %v1762_v6, 0.0  ;;  %v1444_v32 = vadd.f32 %v7282_v41, %v8502_v21  ;;  %v1765_v44 = vadd.f32 %v7306_v29, %v8502_v21  ;;  %v1435_v38 = vpop.f32.mrb[51].mxu0  ;;  %v1756_v45 = vpop.f32.mrb[51].mxu1 }
 0x14d   : > { %v1487_v24 = vmax.f32 %v1433_v33, 0.0  ;;  %v1856_v54 = vmax.f32 %v1754_v7, 0.0  ;;  %v1436_v5 = vadd.f32 %v8502_v21, %v1435_v38  ;;  %v1757_v9 = vadd.f32 %v8502_v21, %v1756_v45 }
 0x14e   : > { %v8799_v47 = vmax.f32 %v8686_v1, %v1489_v40  ;;  %v1890_v39 = vmax.f32 %v8689_v2, %v1858_v20  ;;  %v1490_v14 = vmax.f32 %v1444_v32, 0.0  ;;  %v1859_v49 = vmax.f32 %v1765_v44, 0.0 }
 0x14f   : > { %v8803_v60 = vmax.f32 %v8691_v4, %v1487_v24  ;;  %v1888_v42 = vmax.f32 %v8694_v56, %v1856_v54  ;;  %v1488_v31 = vmax.f32 %v1436_v5, 0.0  ;;  %v1857_v11 = vmax.f32 %v1757_v9, 0.0 }
 0x150   : > { %v8807_v61 = vmax.f32 %v8696_v12, %v1490_v14  ;;  %v1891_v13 = vmax.f32 %v8699_v16, %v1859_v49 }
 0x151   : > { %v8811_v30 = vmax.f32 %v8701_v23, %v1488_v31  ;;  %v1889_v1 = vmax.f32 %v8704_v25, %v1857_v11  ;;  %v7285_v2 = vpop.f32.mrb[52].mxu0  ;;  %v7309_v53 = vpop.f32.mrb[52].mxu1 }
 0x152   : > { %v8814_v15 = vpack.c.bf16 %v1891_v13, %v1890_v39  ;;  %v1457_v4 = vadd.f32 %v7285_v2, %v8502_v21  ;;  %v1778_v56 = vadd.f32 %v7309_v53, %v8502_v21  ;;  %v1448_v27 = vpop.f32.mrb[53].mxu0  ;;  %v1769_v59 = vpop.f32.mrb[53].mxu1 }
 0x153   : > { %v8818_v8 = vpack.c.bf16 %v1889_v1, %v1888_v42  ;;  %v1449_v12 = vadd.f32 %v8502_v21, %v1448_v27  ;;  %v1770_v16 = vadd.f32 %v8502_v21, %v1769_v59  ;;  %v7286_v23 = vpop.f32.mrb[54].mxu0  ;;  %v7310_v19 = vpop.f32.mrb[54].mxu1 }
 0x154   : > { %v1493_v0 = vmax.f32 %v1457_v4, 0.0  ;;  %v1862_v25 = vmax.f32 %v1778_v56, 0.0  ;;  %v1460_v6 = vadd.f32 %v7286_v23, %v8502_v21  ;;  %v1781_v22 = vadd.f32 %v7310_v19, %v8502_v21  ;;  %v1451_v34 = vpop.f32.mrb[55].mxu0  ;;  %v1772_v33 = vpop.f32.mrb[55].mxu1 }
 0x155   : > { %v1491_v7 = vmax.f32 %v1449_v12, 0.0  ;;  %v1860_v41 = vmax.f32 %v1770_v16, 0.0  ;;  %v1452_v29 = vadd.f32 %v8502_v21, %v1451_v34  ;;  %v1773_v40 = vadd.f32 %v8502_v21, %v1772_v33 }
 0x156   : > { %v8827_v20 = vmax.f32 %v8714_v26, %v1493_v0  ;;  %v1894_v32 = vmax.f32 %v8717_v62, %v1862_v25  ;;  %v1494_v44 = vmax.f32 %v1460_v6, 0.0  ;;  %v1863_v38 = vmax.f32 %v1781_v22, 0.0 }
 0x157   : > { %v8831_v45 = vmax.f32 %v8719_v46, %v1491_v7  ;;  %v1892_v24 = vmax.f32 %v8722_v17, %v1860_v41  ;;  %v1492_v54 = vmax.f32 %v1452_v29, 0.0  ;;  %v1861_v5 = vmax.f32 %v1773_v40, 0.0 }
 0x158   : > { %v8835_v9 = vmax.f32 %v8724_v55, %v1494_v44  ;;  %v1895_v39 = vmax.f32 %v8727_v57, %v1863_v38 }
 0x159   : > { %v8839_v14 = vmax.f32 %v8729_v10, %v1492_v54  ;;  %v1893_v26 = vmax.f32 %v8732_v48, %v1861_v5  ;;  %v7313_v62 = vpop.f32.mrb[56].mxu1 }
 0x15a   : > { %v8842_v49 = vpack.c.bf16 %v1895_v39, %v1894_v32  ;;  %v1794_v46 = vadd.f32 %v7313_v62, %v8502_v21  ;;  %v1785_v42 = vpop.f32.mrb[57].mxu1 }
 0x15b   : > { %v8845_v31 = vpack.c.bf16 %v1893_v26, %v1892_v24  ;;  %v1786_v17 = vadd.f32 %v8502_v21, %v1785_v42  ;;  %v7314_v11 = vpop.f32.mrb[58].mxu1 }
 0x15c   : > { %v1866_v55 = vmax.f32 %v1794_v46, 0.0  ;;  %v1797_v13 = vadd.f32 %v7314_v11, %v8502_v21  ;;  %v1788_v57 = vpop.f32.mrb[59].mxu1 }
 0x15d   : > { %v1864_v1 = vmax.f32 %v1786_v17, 0.0  ;;  %v1789_v10 = vadd.f32 %v8502_v21, %v1788_v57 }
 0x15e   : > { %v1898_v48 = vmax.f32 %v8743_v36, %v1866_v55  ;;  %v1867_v2 = vmax.f32 %v1797_v13, 0.0 }
 0x15f   : > { %v1896_v53 = vmax.f32 %v8747_v52, %v1864_v1  ;;  %v1865_v4 = vmax.f32 %v1789_v10, 0.0 }
 0x160   : > { %v1899_v56 = vmax.f32 %v8751_v43, %v1867_v2 }
 0x161   : > { %v1897_v27 = vmax.f32 %v8755_v3, %v1865_v4  ;;  %v7317_v59 = vpop.f32.mrb[60].mxu1 }
 0x162   : > { %v8854_v12 = vpack.c.bf16 %v1899_v56, %v1898_v48  ;;  %v1810_v16 = vadd.f32 %v7317_v59, %v8502_v21  ;;  %v1801_v23 = vpop.f32.mrb[61].mxu1 }
 0x163   : > { %v8857_v19 = vpack.c.bf16 %v1897_v27, %v1896_v53  ;;  %v1802_v0 = vadd.f32 %v8502_v21, %v1801_v23  ;;  %v7318_v25 = vpop.f32.mrb[62].mxu1 }
 0x164   : > { %v1870_v36 = vmax.f32 %v1810_v16, 0.0  ;;  %v1813_v6 = vadd.f32 %v7318_v25, %v8502_v21  ;;  %v1804_v52 = vpop.f32.mrb[63].mxu1  ;;  %v7953_v25 = vld [vmem:[%s9935_s3 + $0x50] ss:$8 sps:$4 sm:$0xff]  }
 0x165   : > { %v1868_v22 = vmax.f32 %v1802_v0, 0.0  ;;  %v1805_v43 = vadd.f32 %v8502_v21, %v1804_v52  ;;  %6592 = vmatprep.subr.bf16.mxu0 %v8857_v19  ;;  %6632 = vmatprep.subr.bf16.mxu1 %v8857_v19  ;;  %v7966_v0 = vld [vmem:[%s9935_s3 + $0x14] ss:$8 sps:$4 sm:$0xff]   ;;  %v7975_v52 = vld [vmem:[%s9935_s3 + $0x24] ss:$8 sps:$4 sm:$0xff]  }
 0x166   : > { %v1902_v3 = vmax.f32 %v8771_v51, %v1870_v36  ;;  %v1871_v34 = vmax.f32 %v1813_v6, 0.0  ;;  %6593 = vmatpush3.bf16.msra.mxu0 %v8762_v37  ;;  %6633 = vmatpush3.bf16.msra.mxu1 %v8762_v37  ;;  %v7968_v36 = vld [vmem:[%s9935_s3 + $0x10] ss:$8 sps:$4 sm:$0xff]   ;;  %v7954_v6 = vld [vmem:[%s9935_s3 + $0x64] ss:$8 sps:$4 sm:$0xff]  }
 0x167   : > { %v1900_v33 = vmax.f32 %v8775_v35, %v1868_v22  ;;  %v1869_v7 = vmax.f32 %v1805_v43, 0.0  ;;  %6594 = vmatprep.subr.bf16.mxu0 %v8854_v12  ;;  %6634 = vmatprep.subr.bf16.mxu1 %v8854_v12  ;;  %v7956_v22 = vld [vmem:[%s9935_s3 + $0x60] ss:$8 sps:$4 sm:$0xff]  }
 0x168   : > { %v1903_v41 = vmax.f32 %v8779_v58, %v1871_v34  ;;  %v7977_v43 = vld [vmem:[%s9935_s3 + $0x20] ss:$8 sps:$4 sm:$0xff]   ;;  %v7981_v34 = vld [vmem:[%s9935_s3 + $0x34] ss:$8 sps:$4 sm:$0xff]  }
 0x169   : > { %v1901_v29 = vmax.f32 %v8783_v63, %v1869_v7  ;;  %v7321_v40 = vpop.f32.mrb[64].mxu1  ;;  %v7983_v7 = vld [vmem:[%s9935_s3 + $0x30] ss:$8 sps:$4 sm:$0xff]  }
 0x16a   : > { %v8872_v32 = vpack.c.bf16 %v1903_v41, %v1902_v3  ;;  %v1826_v51 = vadd.f32 %v7321_v40, %v8502_v21  ;;  %v1817_v44 = vpop.f32.mrb[65].mxu1  ;;  %6595 = vmatpush3.bf16.msra.mxu0 %v8758_v50  ;;  %6635 = vmatpush3.bf16.msra.mxu1 %v8758_v50  ;;  %v7957_v3 = vld [vmem:[%s9935_s3 + $0x74] ss:$8 sps:$4 sm:$0xff]   ;;  %v7965_v41 = vld [vmem:[%s9935_s3 + $0x84] ss:$8 sps:$4 sm:$0xff]  }
 0x16b   : > { %v8877_v35 = vpack.c.bf16 %v1901_v29, %v1900_v33  ;;  %v1818_v38 = vadd.f32 %v8502_v21, %v1817_v44  ;;  %v7322_v24 = vpop.f32.mrb[66].mxu1  ;;  %v7959_v33 = vld [vmem:[%s9935_s3 + $0x70] ss:$8 sps:$4 sm:$0xff]   ;;  %v7963_v29 = vld [vmem:[%s9935_s3 + $0x80] ss:$8 sps:$4 sm:$0xff]  }
 0x16c   : > { %v1874_v54 = vmax.f32 %v1826_v51, 0.0  ;;  %v1829_v58 = vadd.f32 %v7322_v24, %v8502_v21  ;;  %v1820_v5 = vpop.f32.mrb[67].mxu1  ;;  %v7969_v40 = vld [vmem:[%s9935_s3 + $0x94] ss:$8 sps:$4 sm:$0xff]   ;;  %v7971_v51 = vld [vmem:[%s9935_s3 + $0x90] ss:$8 sps:$4 sm:$0xff]  }
 0x16d   : > { %v1872_v63 = vmax.f32 %v1818_v38, 0.0  ;;  %v1821_v39 = vadd.f32 %v8502_v21, %v1820_v5  ;;  %6596 = vmatprep.subr.bf16.mxu0 %v8877_v35  ;;  %6636 = vmatprep.subr.bf16.mxu1 %v8877_v35  ;;  %v7972_v44 = vld [vmem:[%s9935_s3 + $0xa4] ss:$8 sps:$4 sm:$0xff]   ;;  %v7974_v38 = vld [vmem:[%s9935_s3 + $0xa0] ss:$8 sps:$4 sm:$0xff]  }
 0x16e   : > { %v1906_v26 = vmax.f32 %v8799_v47, %v1874_v54  ;;  %v1875_v62 = vmax.f32 %v1829_v58, 0.0  ;;  %6597 = vmatpush3.bf16.msra.mxu0 %v8790_v28  ;;  %6637 = vmatpush3.bf16.msra.mxu1 %v8790_v28  ;;  %v7978_v24 = vld [vmem:[%s9935_s3 + $0xb4] ss:$8 sps:$4 sm:$0xff]   ;;  %v7980_v54 = vld [vmem:[%s9935_s3 + $0xb0] ss:$8 sps:$4 sm:$0xff]  }
 0x16f   : > { %v1904_v46 = vmax.f32 %v8803_v60, %v1872_v63  ;;  %v1873_v42 = vmax.f32 %v1821_v39, 0.0  ;;  %6598 = vmatprep.subr.bf16.mxu0 %v8872_v32  ;;  %6638 = vmatprep.subr.bf16.mxu1 %v8872_v32  ;;  %v7986_v58 = vld [vmem:[%s9935_s3 + $0xc4] ss:$8 sps:$4 sm:$0xff]   ;;  %v7984_v5 = vld [vmem:[%s9935_s3 + $0xc0] ss:$8 sps:$4 sm:$0xff]  }
 0x170   : > { %v1907_v17 = vmax.f32 %v8807_v61, %v1875_v62  ;;  %v7987_v63 = vld [vmem:[%s9935_s3 + $0xd4] ss:$8 sps:$4 sm:$0xff]   ;;  %v8035_v39 = vld [vmem:[%s9936_s4 + $0x40] sm:$0xff]   ;;  %v8036_v62 = vld [vmem:[%s9936_s4 + $0x48] sm:$0xff]  }
 0x171   : > { %v1905_v11 = vmax.f32 %v8811_v30, %v1873_v42  ;;  %v7325_v55 = vpop.f32.mrb[68].mxu1  ;;  %v8037_v42 = vld [vmem:[%s9936_s4 + $0x50] sm:$0xff]  }
 0x172   : > { %v8892_v13 = vpack.c.bf16 %v1907_v17, %v1906_v26  ;;  %v1842_v47 = vadd.f32 %v7325_v55, %v8502_v21  ;;  %v1833_v57 = vpop.f32.mrb[69].mxu1  ;;  %6599 = vmatpush3.bf16.msra.mxu0 %v8786_v18  ;;  %6639 = vmatpush3.bf16.msra.mxu1 %v8786_v18  ;;  %v7989_v26 = vld [vmem:[%s9935_s3 + $0xd0] ss:$8 sps:$4 sm:$0xff]   ;;  %v7992_v17 = vld [vmem:[%s9935_s3 + $0xe0] ss:$8 sps:$4 sm:$0xff]  }
 0x173   : > { %v8897_v60 = vpack.c.bf16 %v1905_v11, %v1904_v46  ;;  %v1834_v1 = vadd.f32 %v8502_v21, %v1833_v57  ;;  %v7326_v10 = vpop.f32.mrb[70].mxu1  ;;  %v7990_v46 = vld [vmem:[%s9935_s3 + $0xe4] ss:$8 sps:$4 sm:$0xff]   ;;  %v8038_v11 = vld [vmem:[%s9936_s4 + $0x58] sm:$0xff]  }
 0x174   : > { %v1878_v48 = vmax.f32 %v1842_v47, 0.0  ;;  %v1845_v61 = vadd.f32 %v7326_v10, %v8502_v21  ;;  %v1836_v2 = vpop.f32.mrb[71].mxu1  ;;  %v7993_v55 = vld [vmem:[%s9935_s3 + $0xf4] ss:$8 sps:$4 sm:$0xff]   ;;  %v8039_v47 = vld [vmem:[%s9936_s4 + $0x60] sm:$0xff]  }
 0x175   : > { %v1876_v30 = vmax.f32 %v1834_v1, 0.0  ;;  %v1837_v53 = vadd.f32 %v8502_v21, %v1836_v2  ;;  %6600 = vmatprep.subr.bf16.mxu0 %v8897_v60  ;;  %6640 = vmatprep.subr.bf16.mxu1 %v8897_v60  ;;  %v7995_v57 = vld [vmem:[%s9935_s3 + $0xf0] ss:$8 sps:$4 sm:$0xff]   ;;  %v8040_v1 = vld [vmem:[%s9936_s4 + $0x68] sm:$0xff]  }
 0x176   : > { %v1910_v4 = vmax.f32 %v8827_v20, %v1878_v48  ;;  %v1879_v56 = vmax.f32 %v1845_v61, 0.0  ;;  %6601 = vmatpush3.bf16.msra.mxu0 %v8818_v8  ;;  %6641 = vmatpush3.bf16.msra.mxu1 %v8818_v8  ;;  %v7998_v10 = vld [vmem:[%s9935_s3 + $0x104] ss:$8 sps:$4 sm:$0xff]   ;;  %v8041_v48 = vld [vmem:[%s9936_s4 + $0x70] sm:$0xff]   ;;  %v7996_v61 = vld [vmem:[%s9935_s3 + $0x100] ss:$8 sps:$4 sm:$0xff]  }
 0x177   : > { %v1908_v27 = vmax.f32 %v8831_v45, %v1876_v30  ;;  %v1877_v59 = vmax.f32 %v1837_v53, 0.0  ;;  %6602 = vmatprep.subr.bf16.mxu0 %v8892_v13  ;;  %6642 = vmatprep.subr.bf16.mxu1 %v8892_v13  ;;  %v7948_v45 = vld [vmem:[%s9935_s3 + $0x40] ss:$8 sps:$4 sm:$0xff]   ;;  %v8042_v2 = vld [vmem:[%s9936_s4 + $0x78] sm:$0xff]  }
 0x178   : > { %v1911_v21 = vmax.f32 %v8835_v9, %v1879_v56  ;;  %v7960_v9 = vld [vmem:[%s9935_s3] ss:$8 sps:$4 sm:$0xff]   ;;  %v7999_v30 = vld [vmem:[%s9935_s3 + $0x114] ss:$8 sps:$4 sm:$0xff]   ;;  %v8002_v56 = vld [vmem:[%s9935_s3 + $0x124] ss:$8 sps:$4 sm:$0xff]  }
 0x179   : > { %v1909_v16 = vmax.f32 %v8839_v14, %v1877_v59  ;;  %v7951_v14 = vld [vmem:[%s9935_s3 + $0x54] ss:$8 sps:$4 sm:$0xff]   ;;  %v9101_v53 = vld [vmem:[%s9936_s4] sm:$0xff]  }
 0x17a   : > { %v8912_v23 = vpack.c.bf16 %v1911_v21, %v1910_v4  ;;  %6603 = vmatpush3.bf16.msra.mxu0 %v8814_v15  ;;  %6643 = vmatpush3.bf16.msra.mxu1 %v8814_v15  ;;  %v8001_v4 = vld [vmem:[%s9935_s3 + $0x110] ss:$8 sps:$4 sm:$0xff]   ;;  %v8005_v59 = vld [vmem:[%s9935_s3 + $0x134] ss:$8 sps:$4 sm:$0xff]  }
 0x17b   : > { %v8916_v20 = vpack.c.bf16 %v1909_v16, %v1908_v27  ;;  %v8004_v27 = vld [vmem:[%s9935_s3 + $0x120] ss:$8 sps:$4 sm:$0xff]   ;;  %v8007_v21 = vld [vmem:[%s9935_s3 + $0x130] ss:$8 sps:$4 sm:$0xff]   ;;  %v8010_v16 = vld [vmem:[%s9935_s3 + $0x144] ss:$8 sps:$4 sm:$0xff]  }
 0x17d   : > { %6604 = vmatprep.subr.bf16.mxu0 %v8916_v20  ;;  %6644 = vmatprep.subr.bf16.mxu1 %v8916_v20 }
 0x17e   : > { %6605 = vmatpush3.bf16.msra.mxu0 %v8845_v31  ;;  %6645 = vmatpush3.bf16.msra.mxu1 %v8845_v31 }
 0x17f   : > { %6606 = vmatprep.subr.bf16.mxu0 %v8912_v23  ;;  %6646 = vmatprep.subr.bf16.mxu1 %v8912_v23 }
 0x182   : > { %6607 = vmatpush3.bf16.msra.mxu0 %v8842_v49  ;;  %6647 = vmatpush3.bf16.msra.mxu1 %v8842_v49 }
 0x183   : > { %6696 = vmatprep.subr.bf16.mxu1 %v8857_v19  ;;  %7327 = vmatprep.subr.bf16.mxu0 %v8035_v39 }
 0x185   : > { %2142 = vmatmul.mubr.bf16.vlgmr.msra.gmra.mrb[72].mxu1 %v7948_v45  ;;  %2009 = vmatmul.mubr.bf16.vlgmr.msra.gmra.mrb[56].mxu0 %v7960_v9  ;;  %v8008_v45 = vld [vmem:[%s9935_s3 + $0x140] ss:$8 sps:$4 sm:$0xff]   ;;  %v8011_v9 = vld [vmem:[%s9935_s3 + $0x154] ss:$8 sps:$4 sm:$0xff]  }
 0x186   : > { %6697 = vmatpush3.bf16.msra.mxu1 %v8762_v37  ;;  %2149 = vmatprep.mubr.bf16.mxu1 %v7951_v14  ;;  %v8013_v14 = vld [vmem:[%s9935_s3 + $0x150] ss:$8 sps:$4 sm:$0xff]  }
 0x187   : > { %6698 = vmatprep.subr.bf16.mxu1 %v8854_v12  ;;  %2016 = vmatprep.mubr.bf16.mxu0 %v7966_v0  ;;  %v8014_v0 = vld [vmem:[%s9935_s3 + $0x164] ss:$8 sps:$4 sm:$0xff]  }
 0x188   : > { %7328 = vmatpush3.bf16.msra.mxu0 %v8035_v39 }
 0x189   : > { %7329 = vmatprep.subr.bf16.mxu0 %v8036_v62 }
 0x18a   : > { %6699 = vmatpush3.bf16.msra.mxu1 %v8758_v50 }
 0x18b   : > { %6700 = vmatprep.subr.bf16.mxu1 %v8877_v35 }
 0x18c   : > { %7330 = vmatpush3.bf16.msra.mxu0 %v8036_v62 }
 0x18d   : > { %2150 = vmatmul.mubr.bf16.gmra.mrb[76].mxu1 %v7953_v25  ;;  %2017 = vmatmul.mubr.bf16.gmra.mrb[60].mxu0 %v7968_v36  ;;  %v8016_v25 = vld [vmem:[%s9935_s3 + $0x160] ss:$8 sps:$4 sm:$0xff]   ;;  %v8017_v36 = vld [vmem:[%s9935_s3 + $0x174] ss:$8 sps:$4 sm:$0xff]  }
 0x18e   : > { %6701 = vmatpush3.bf16.msra.mxu1 %v8790_v28  ;;  %2157 = vmatprep.mubr.bf16.mxu1 %v7954_v6  ;;  %v8019_v6 = vld [vmem:[%s9935_s3 + $0x170] ss:$8 sps:$4 sm:$0xff]  }
 0x18f   : > { %6702 = vmatprep.subr.bf16.mxu1 %v8872_v32  ;;  %2024 = vmatprep.mubr.bf16.mxu0 %v7975_v52  ;;  %v8022_v52 = vld [vmem:[%s9935_s3 + $0x184] ss:$8 sps:$4 sm:$0xff]  }
 0x190   : > { %7331 = vmatprep.subr.bf16.mxu0 %v8037_v42 }
 0x191   : > { %7332 = vmatpush3.bf16.msra.mxu0 %v8037_v42 }
 0x192   : > { %6703 = vmatpush3.bf16.msra.mxu1 %v8786_v18  ;;  %7333 = vmatprep.subr.bf16.mxu0 %v8038_v11 }
 0x193   : > { %6704 = vmatprep.subr.bf16.mxu1 %v8897_v60 }
 0x195   : > { %2158 = vmatmul.mubr.bf16.gmra.mrb[80].mxu1 %v7956_v22  ;;  %2025 = vmatmul.mubr.bf16.gmra.mrb[64].mxu0 %v7977_v43  ;;  %v8020_v22 = vld [vmem:[%s9935_s3 + $0x180] ss:$8 sps:$4 sm:$0xff]   ;;  %v8023_v43 = vld [vmem:[%s9935_s3 + $0x194] ss:$8 sps:$4 sm:$0xff]  }
 0x196   : > { %6705 = vmatpush3.bf16.msra.mxu1 %v8818_v8  ;;  %2165 = vmatprep.mubr.bf16.mxu1 %v7957_v3  ;;  %v8025_v3 = vld [vmem:[%s9935_s3 + $0x190] ss:$8 sps:$4 sm:$0xff]  }
 0x197   : > { %6706 = vmatprep.subr.bf16.mxu1 %v8892_v13  ;;  %2032 = vmatprep.mubr.bf16.mxu0 %v7981_v34  ;;  %v8026_v34 = vld [vmem:[%s9935_s3 + $0x1a4] ss:$8 sps:$4 sm:$0xff]  }
 0x198   : > { %7334 = vmatpush3.bf16.msra.mxu0 %v8038_v11 }
 0x199   : > { %7335 = vmatprep.subr.bf16.mxu0 %v8039_v47 }
 0x19a   : > { %6707 = vmatpush3.bf16.msra.mxu1 %v8814_v15 }
 0x19b   : > { %6708 = vmatprep.subr.bf16.mxu1 %v8916_v20 }
 0x19c   : > { %7336 = vmatpush3.bf16.msra.mxu0 %v8039_v47 }
 0x19d   : > { %2166 = vmatmul.mubr.bf16.gmra.mrb[84].mxu1 %v7959_v33  ;;  %2033 = vmatmul.mubr.bf16.gmra.mrb[68].mxu0 %v7983_v7  ;;  %v8028_v33 = vld [vmem:[%s9935_s3 + $0x1a0] ss:$8 sps:$4 sm:$0xff]   ;;  %v8029_v7 = vld [vmem:[%s9935_s3 + $0x1b4] ss:$8 sps:$4 sm:$0xff]  }
 0x19e   : > { %6709 = vmatpush3.bf16.msra.mxu1 %v8845_v31  ;;  %2501 = vmatprep.mubr.bf16.mxu1 %v7965_v41  ;;  %v8031_v41 = vld [vmem:[%s9935_s3 + $0x1b0] ss:$8 sps:$4 sm:$0xff]  }
 0x19f   : > { %6710 = vmatprep.subr.bf16.mxu1 %v8912_v23  ;;  %7337 = vmatprep.subr.bf16.mxu0 %v8040_v1 }
 0x1a0   : > { %7338 = vmatpush3.bf16.msra.mxu0 %v8040_v1 }
 0x1a1   : > { %7339 = vmatprep.subr.bf16.mxu0 %v8041_v48 }
 0x1a2   : > { %6711 = vmatpush3.bf16.msra.mxu1 %v8842_v49 }
 0x1a3   : > { %6748 = vmatprep.subr.bf16.mxu1 %v8857_v19 }
 0x1a4   : > { %7340 = vmatpush3.bf16.msra.mxu0 %v8041_v48 }
 0x1a5   : > { %2502 = vmatmul.mubr.bf16.vlgmr.msra.gmra.mrb[88].mxu1 %v7963_v29  ;;  %7341 = vmatprep.subr.bf16.mxu0 %v8042_v2  ;;  %v8034_v29 = vld [vmem:[%s9935_s3 + $0x1c4] ss:$8 sps:$4 sm:$0xff]  }
 0x1a6   : > { %6749 = vmatpush3.bf16.msra.mxu1 %v8762_v37  ;;  %2509 = vmatprep.mubr.bf16.mxu1 %v7969_v40  ;;  %v8032_v40 = vld [vmem:[%s9935_s3 + $0x1c0] ss:$8 sps:$4 sm:$0xff]  }
 0x1a7   : > { %6750 = vmatprep.subr.bf16.mxu1 %v8854_v12 }
 0x1a8   : > { %7342 = vmatpush3.bf16.msra.mxu0 %v8042_v2 }
 0x1a9   : > { %7351 = vmatprep.subr.bf16.mxu0 %v9101_v53 }
 0x1aa   : > { %6751 = vmatpush3.bf16.msra.mxu1 %v8758_v50 }
 0x1ab   : > { %6752 = vmatprep.subr.bf16.mxu1 %v8877_v35 }
 0x1ad   : > { %2510 = vmatmul.mubr.bf16.gmra.mrb[92].mxu1 %v7971_v51  ;;  %v8043_v51 = vld [vmem:[%s9935_s3 + $0x1d4] ss:$8 sps:$4 sm:$0xff]  }
 0x1ae   : > { %6753 = vmatpush3.bf16.msra.mxu1 %v8790_v28  ;;  %2517 = vmatprep.mubr.bf16.mxu1 %v7972_v44  ;;  %v8045_v44 = vld [vmem:[%s9935_s3 + $0x1d0] ss:$8 sps:$4 sm:$0xff]  }
 0x1af   : > { %6754 = vmatprep.subr.bf16.mxu1 %v8872_v32 }
 0x1b2   : > { %6755 = vmatpush3.bf16.msra.mxu1 %v8786_v18 }
 0x1b3   : > { %6756 = vmatprep.subr.bf16.mxu1 %v8897_v60 }
 0x1b5   : > { %2518 = vmatmul.mubr.bf16.gmra.mrb[96].mxu1 %v7974_v38  ;;  %v8048_v38 = vld [vmem:[%s9935_s3 + $0x1e4] ss:$8 sps:$4 sm:$0xff]  }
 0x1b6   : > { %6757 = vmatpush3.bf16.msra.mxu1 %v8818_v8  ;;  %2525 = vmatprep.mubr.bf16.mxu1 %v7978_v24 }
 0x1b7   : > { %6758 = vmatprep.subr.bf16.mxu1 %v8892_v13 }
 0x1ba   : > { %6759 = vmatpush3.bf16.msra.mxu1 %v8814_v15 }
 0x1bb   : > { %6760 = vmatprep.subr.bf16.mxu1 %v8916_v20 }
 0x1bd   : > { %2526 = vmatmul.mubr.bf16.gmra.mrb[100].mxu1 %v7980_v54 }
 0x1be   : > { %6761 = vmatpush3.bf16.msra.mxu1 %v8845_v31  ;;  %2756 = vmatprep.mubr.bf16.mxu1 %v7986_v58 }
 0x1bf   : > { %6762 = vmatprep.subr.bf16.mxu1 %v8912_v23 }
 0x1c2   : > { %6763 = vmatpush3.bf16.msra.mxu1 %v8842_v49 }
 0x1c3   : > { %6800 = vmatprep.subr.bf16.mxu1 %v8857_v19 }
 0x1c5   : > { %2757 = vmatmul.mubr.bf16.vlgmr.msra.gmra.mrb[104].mxu1 %v7984_v5 }
 0x1c6   : > { %6801 = vmatpush3.bf16.msra.mxu1 %v8762_v37  ;;  %2764 = vmatprep.mubr.bf16.mxu1 %v7987_v63 }
 0x1c7   : > { %6802 = vmatprep.subr.bf16.mxu1 %v8854_v12 }
 0x1ca   : > { %6803 = vmatpush3.bf16.msra.mxu1 %v8758_v50 }
 0x1cb   : > { %6804 = vmatprep.subr.bf16.mxu1 %v8877_v35 }
 0x1cd   : > { %2765 = vmatmul.mubr.bf16.gmra.mrb[108].mxu1 %v7989_v26 }
 0x1ce   : > { %6805 = vmatpush3.bf16.msra.mxu1 %v8790_v28  ;;  %2772 = vmatprep.mubr.bf16.mxu1 %v7990_v46 }
 0x1cf   : > { %6806 = vmatprep.subr.bf16.mxu1 %v8872_v32 }
 0x1d2   : > { %6807 = vmatpush3.bf16.msra.mxu1 %v8786_v18 }
 0x1d3   : > { %6808 = vmatprep.subr.bf16.mxu1 %v8897_v60 }
 0x1d5   : > { %2773 = vmatmul.mubr.bf16.gmra.mrb[112].mxu1 %v7992_v17 }
 0x1d6   : > { %6809 = vmatpush3.bf16.msra.mxu1 %v8818_v8  ;;  %2780 = vmatprep.mubr.bf16.mxu1 %v7993_v55 }
 0x1d7   : > { %6810 = vmatprep.subr.bf16.mxu1 %v8892_v13 }
 0x1da   : > { %6811 = vmatpush3.bf16.msra.mxu1 %v8814_v15 }
 0x1db   : > { %6812 = vmatprep.subr.bf16.mxu1 %v8916_v20 }
 0x1dd   : > { %2781 = vmatmul.mubr.bf16.gmra.mrb[116].mxu1 %v7995_v57 }
 0x1de   : > { %6813 = vmatpush3.bf16.msra.mxu1 %v8845_v31  ;;  %3011 = vmatprep.mubr.bf16.mxu1 %v7998_v10 }
 0x1df   : > { %6814 = vmatprep.subr.bf16.mxu1 %v8912_v23 }
 0x1e2   : > { %6815 = vmatpush3.bf16.msra.mxu1 %v8842_v49 }
 0x1e3   : > { %6852 = vmatprep.subr.bf16.mxu1 %v8857_v19 }
 0x1e5   : > { %3012 = vmatmul.mubr.bf16.vlgmr.msra.gmra.mrb[120].mxu1 %v7996_v61  ;;  %v8047_v61 = vld [vmem:[%s9936_s4 + $0x8] sm:$0xff]  }
 0x1e6   : > { %6853 = vmatpush3.bf16.msra.mxu1 %v8762_v37  ;;  %3019 = vmatprep.mubr.bf16.mxu1 %v7999_v30 }
 0x1e7   : > { %6854 = vmatprep.subr.bf16.mxu1 %v8854_v12 }
 0x1ea   : > { %6855 = vmatpush3.bf16.msra.mxu1 %v8758_v50 }
 0x1eb   : > { %6856 = vmatprep.subr.bf16.mxu1 %v8877_v35 }
 0x1ed   : > { %3020 = vmatmul.mubr.bf16.gmra.mrb[124].mxu1 %v8001_v4 }
 0x1ee   : > { %6857 = vmatpush3.bf16.msra.mxu1 %v8790_v28  ;;  %3027 = vmatprep.mubr.bf16.mxu1 %v8002_v56  ;;  %v8065_v56 = vld [vmem:[%s9935_s3 + $0x210] ss:$8 sps:$4 sm:$0xff]  }
 0x1ef   : > { %6858 = vmatprep.subr.bf16.mxu1 %v8872_v32 }
 0x1f2   : > { %6859 = vmatpush3.bf16.msra.mxu1 %v8786_v18 }
 0x1f3   : > { %6860 = vmatprep.subr.bf16.mxu1 %v8897_v60 }
 0x1f5   : > { %3028 = vmatmul.mubr.bf16.gmra.mrb[128].mxu1 %v8004_v27 }
 0x1f6   : > { %6861 = vmatpush3.bf16.msra.mxu1 %v8818_v8  ;;  %3035 = vmatprep.mubr.bf16.mxu1 %v8005_v59  ;;  %v8051_v59 = vld [vmem:[%s9936_s4 + $0x10] sm:$0xff]  }
 0x1f7   : > { %6862 = vmatprep.subr.bf16.mxu1 %v8892_v13 }
 0x1fa   : > { %6863 = vmatpush3.bf16.msra.mxu1 %v8814_v15 }
 0x1fb   : > { %6864 = vmatprep.subr.bf16.mxu1 %v8916_v20 }
 0x1fd   : > { %3036 = vmatmul.mubr.bf16.gmra.mrb[132].mxu1 %v8007_v21 }
 0x1fe   : > { %6865 = vmatpush3.bf16.msra.mxu1 %v8845_v31  ;;  %3266 = vmatprep.mubr.bf16.mxu1 %v8010_v16 }
 0x1ff   : > { %6866 = vmatprep.subr.bf16.mxu1 %v8912_v23 }
 0x202   : > { %6867 = vmatpush3.bf16.msra.mxu1 %v8842_v49 }
 0x203   : > { %6904 = vmatprep.subr.bf16.mxu1 %v8857_v19 }
 0x205   : > { %3267 = vmatmul.mubr.bf16.vlgmr.msra.gmra.mrb[136].mxu1 %v8008_v45  ;;  %v8068_v45 = vld [vmem:[%s9935_s3 + $0x224] ss:$8 sps:$4 sm:$0xff]  }
 0x206   : > { %6905 = vmatpush3.bf16.msra.mxu1 %v8762_v37  ;;  %3274 = vmatprep.mubr.bf16.mxu1 %v8011_v9 }
 0x207   : > { %6906 = vmatprep.subr.bf16.mxu1 %v8854_v12 }
 0x20a   : > { %6907 = vmatpush3.bf16.msra.mxu1 %v8758_v50 }
 0x20b   : > { %6908 = vmatprep.subr.bf16.mxu1 %v8877_v35 }
 0x20d   : > { %3275 = vmatmul.mubr.bf16.gmra.mrb[140].mxu1 %v8013_v14 }
 0x20e   : > { %6909 = vmatpush3.bf16.msra.mxu1 %v8790_v28  ;;  %3282 = vmatprep.mubr.bf16.mxu1 %v8014_v0 }
 0x20f   : > { %6910 = vmatprep.subr.bf16.mxu1 %v8872_v32 }
 0x212   : > { %6911 = vmatpush3.bf16.msra.mxu1 %v8786_v18 }
 0x213   : > { %6912 = vmatprep.subr.bf16.mxu1 %v8897_v60 }
 0x215   : > { %3283 = vmatmul.mubr.bf16.gmra.mrb[144].mxu1 %v8016_v25 }
 0x216   : > { %6913 = vmatpush3.bf16.msra.mxu1 %v8818_v8  ;;  %3290 = vmatprep.mubr.bf16.mxu1 %v8017_v36 }
 0x217   : > { %6914 = vmatprep.subr.bf16.mxu1 %v8892_v13 }
 0x21a   : > { %6915 = vmatpush3.bf16.msra.mxu1 %v8814_v15 }
 0x21b   : > { %6916 = vmatprep.subr.bf16.mxu1 %v8916_v20 }
 0x21d   : > { %3291 = vmatmul.mubr.bf16.gmra.mrb[148].mxu1 %v8019_v6  ;;  %v8052_v6 = vld [vmem:[%s9936_s4 + $0x18] sm:$0xff]  }
 0x21e   : > { %6917 = vmatpush3.bf16.msra.mxu1 %v8845_v31  ;;  %3521 = vmatprep.mubr.bf16.mxu1 %v8022_v52 }
 0x21f   : > { %6918 = vmatprep.subr.bf16.mxu1 %v8912_v23 }
 0x222   : > { %6919 = vmatpush3.bf16.msra.mxu1 %v8842_v49 }
 0x223   : > { %6956 = vmatprep.subr.bf16.mxu1 %v8857_v19 }
 0x225   : > { %3522 = vmatmul.mubr.bf16.vlgmr.msra.gmra.mrb[152].mxu1 %v8020_v22 }
 0x226   : > { %6957 = vmatpush3.bf16.msra.mxu1 %v8762_v37  ;;  %3529 = vmatprep.mubr.bf16.mxu1 %v8023_v43 }
 0x227   : > { %6958 = vmatprep.subr.bf16.mxu1 %v8854_v12 }
 0x22a   : > { %6959 = vmatpush3.bf16.msra.mxu1 %v8758_v50 }
 0x22b   : > { %6960 = vmatprep.subr.bf16.mxu1 %v8877_v35 }
 0x22d   : > { %3530 = vmatmul.mubr.bf16.gmra.mrb[156].mxu1 %v8025_v3 }
 0x22e   : > { %6961 = vmatpush3.bf16.msra.mxu1 %v8790_v28  ;;  %3537 = vmatprep.mubr.bf16.mxu1 %v8026_v34 }
 0x22f   : > { %6962 = vmatprep.subr.bf16.mxu1 %v8872_v32 }
 0x232   : > { %6963 = vmatpush3.bf16.msra.mxu1 %v8786_v18 }
 0x233   : > { %6964 = vmatprep.subr.bf16.mxu1 %v8897_v60 }
 0x235   : > { %3538 = vmatmul.mubr.bf16.gmra.mrb[160].mxu1 %v8028_v33  ;;  %v8070_v33 = vld [vmem:[%s9935_s3 + $0x220] ss:$8 sps:$4 sm:$0xff]  }
 0x236   : > { %6965 = vmatpush3.bf16.msra.mxu1 %v8818_v8  ;;  %3545 = vmatprep.mubr.bf16.mxu1 %v8029_v7 }
 0x237   : > { %6966 = vmatprep.subr.bf16.mxu1 %v8892_v13 }
 0x23a   : > { %6967 = vmatpush3.bf16.msra.mxu1 %v8814_v15 }
 0x23b   : > { %6968 = vmatprep.subr.bf16.mxu1 %v8916_v20 }
 0x23d   : > { %3546 = vmatmul.mubr.bf16.gmra.mrb[164].mxu1 %v8031_v41  ;;  %v8056_v41 = vld [vmem:[%s9936_s4 + $0x20] sm:$0xff]  }
 0x23e   : > { %6969 = vmatpush3.bf16.msra.mxu1 %v8845_v31  ;;  %3776 = vmatprep.mubr.bf16.mxu1 %v8034_v29 }
 0x23f   : > { %6970 = vmatprep.subr.bf16.mxu1 %v8912_v23 }
 0x242   : > { %6971 = vmatpush3.bf16.msra.mxu1 %v8842_v49 }
 0x243   : > { %7008 = vmatprep.subr.bf16.mxu1 %v8857_v19 }
 0x245   : > { %3777 = vmatmul.mubr.bf16.vlgmr.msra.gmra.mrb[168].mxu1 %v8032_v40 }
 0x246   : > { %7009 = vmatpush3.bf16.msra.mxu1 %v8762_v37  ;;  %3784 = vmatprep.mubr.bf16.mxu1 %v8043_v51  ;;  %v8050_v37 = vld [vmem:[%s9935_s3 + $0x1e0] ss:$8 sps:$4 sm:$0xff]   ;;  %v8073_v51 = vld [vmem:[%s9935_s3 + $0x234] ss:$8 sps:$4 sm:$0xff]  }
 0x247   : > { %7010 = vmatprep.subr.bf16.mxu1 %v8854_v12 }
 0x24a   : > { %7011 = vmatpush3.bf16.msra.mxu1 %v8758_v50  ;;  %v8053_v50 = vld [vmem:[%s9935_s3 + $0x1f4] ss:$8 sps:$4 sm:$0xff]  }
 0x24b   : > { %7012 = vmatprep.subr.bf16.mxu1 %v8877_v35 }
 0x24d   : > { %3785 = vmatmul.mubr.bf16.gmra.mrb[172].mxu1 %v8045_v44 }
 0x24e   : > { %7013 = vmatpush3.bf16.msra.mxu1 %v8790_v28  ;;  %3792 = vmatprep.mubr.bf16.mxu1 %v8048_v38 }
 0x24f   : > { %7014 = vmatprep.subr.bf16.mxu1 %v8872_v32  ;;  %v8055_v32 = vld [vmem:[%s9935_s3 + $0x1f0] ss:$8 sps:$4 sm:$0xff]  }
 0x252   : > { %7015 = vmatpush3.bf16.msra.mxu1 %v8786_v18 }
 0x253   : > { %7016 = vmatprep.subr.bf16.mxu1 %v8897_v60  ;;  %v8060_v60 = vld [vmem:[%s9935_s3 + $0x204] ss:$8 sps:$4 sm:$0xff]  }
 0x255   : > { %3793 = vmatmul.mubr.bf16.gmra.mrb[176].mxu1 %v8050_v37 }
 0x256   : > { %7017 = vmatpush3.bf16.msra.mxu1 %v8818_v8  ;;  %3800 = vmatprep.mubr.bf16.mxu1 %v8053_v50 }
 0x257   : > { %7018 = vmatprep.subr.bf16.mxu1 %v8892_v13 }
 0x258   : > { %v6648_v28 = vpop.f32.mrb[72].mxu1  ;;  %v6608_v12 = vpop.f32.mrb[56].mxu0 }
 0x259   : > { %v6649_v19 = vpop.f32.mrb[73].mxu1  ;;  %v6609_v18 = vpop.f32.mrb[57].mxu0 }
 0x25a   : > { %7019 = vmatpush3.bf16.msra.mxu1 %v8814_v15  ;;  %v6650_v35 = vadd.f32 %v6649_v19, %v6648_v28  ;;  %v6651_v24 = vpop.f32.mrb[74].mxu1  ;;  %v9253_v8 = vadd.f32 %v6609_v18, %v6608_v12  ;;  %v6611_v54 = vpop.f32.mrb[58].mxu0 }
 0x25b   : > { %7020 = vmatprep.subr.bf16.mxu1 %v8916_v20  ;;  %v6652_v13 = vpop.f32.mrb[75].mxu1  ;;  %v6612_v58 = vpop.f32.mrb[59].mxu0  ;;  %v8058_v20 = vld [vmem:[%s9935_s3 + $0x200] ss:$8 sps:$4 sm:$0xff]  }
 0x25c   : > { %v6653_v5 = vadd.f32 %v6652_v13, %v6651_v24  ;;  %v9256_v63 = vadd.f32 %v6612_v58, %v6611_v54  ;;  %v8075_v24 = vld [vmem:[%s9935_s3 + $0x230] ss:$8 sps:$4 sm:$0xff]  }
 0x25d   : > { %3801 = vmatmul.mubr.bf16.gmra.mrb[180].mxu1 %v8055_v32  ;;  %v8057_v32 = vld [vmem:[%s9936_s4 + $0x28] sm:$0xff]   ;;  %v8061_v54 = vld [vmem:[%s9936_s4 + $0x30] sm:$0xff]  }
 0x25e   : > { %7021 = vmatpush3.bf16.msra.mxu1 %v8845_v31  ;;  %v2174_v15 = vpack.c.bf16 %v6653_v5, %v6650_v35  ;;  %4031 = vmatprep.mubr.bf16.mxu1 %v8060_v60  ;;  %v2041_v39 = vpack.c.bf16 %v9256_v63, %v9253_v8  ;;  %v8062_v8 = vld [vmem:[%s9936_s4 + $0x38] sm:$0xff]  }
 0x25f   : > { %7022 = vmatprep.subr.bf16.mxu1 %v8912_v23  ;;  %v8063_v23 = vld [vmem:[%s9935_s3 + $0x214] ss:$8 sps:$4 sm:$0xff]  }
 0x260   : > { %v6654_v26 = vpop.f32.mrb[76].mxu1  ;;  %7343 = vmatprep.mubr.bf16.mxu0 %v2174_v15  ;;  %v6614_v62 = vpop.f32.mrb[60].mxu0 }
 0x261   : > { %v6655_v46 = vpop.f32.mrb[77].mxu1  ;;  %v6615_v42 = vpop.f32.mrb[61].mxu0 }
 0x262   : > { %v6656_v17 = vadd.f32 %v6655_v46, %v6654_v26  ;;  %v6657_v11 = vpop.f32.mrb[78].mxu1  ;;  %7023 = vmatpush3.bf16.msra.mxu1 %v8842_v49  ;;  %v9266_v31 = vadd.f32 %v6615_v42, %v6614_v62  ;;  %v6617_v55 = vpop.f32.mrb[62].mxu0  ;;  %v8066_v62 = vld [vmem:[%s9936_s4 + $0x80] sm:$0xff]  }
 0x263   : > { %v6658_v47 = vpop.f32.mrb[79].mxu1  ;;  %v6618_v57 = vpop.f32.mrb[63].mxu0 }
 0x264   : > { %v6659_v1 = vadd.f32 %v6658_v47, %v6657_v11  ;;  %v9271_v10 = vadd.f32 %v6618_v57, %v6617_v55  ;;  %v8067_v11 = vld [vmem:[%s9936_s4 + $0x88] sm:$0xff]   ;;  %v8071_v57 = vld [vmem:[%s9936_s4 + $0x90] sm:$0xff]  }
 0x265   : > { %4032 = vmatmul.mubr.bf16.vlgmr.msra.gmra.mrb[184].mxu1 %v8058_v20 }
 0x266   : > { %v2175_v48 = vpack.c.bf16 %v6659_v1, %v6656_v17  ;;  %v2042_v49 = vpack.c.bf16 %v9271_v10, %v9266_v31  ;;  %4039 = vmatprep.mubr.bf16.mxu1 %v8063_v23  ;;  %v8072_v31 = vld [vmem:[%s9936_s4 + $0x98] sm:$0xff]  }
 0x268   : > { %7344 = vmatmul.mubr.bf16.vlgmr.msra.gmra.mrb[72].mxu0 %v2175_v48  ;;  %v6660_v2 = vpop.f32.mrb[80].mxu1  ;;  %v6620_v30 = vpop.f32.mrb[64].mxu0 }
 0x269   : > { %7352 = vmatpush3.bf16.msra.mxu0 %v9101_v53  ;;  %v6661_v4 = vpop.f32.mrb[81].mxu1  ;;  %v6621_v27 = vpop.f32.mrb[65].mxu0 }
 0x26a   : > { %7353 = vmatprep.subr.bf16.mxu0 %v8047_v61  ;;  %v6662_v21 = vadd.f32 %v6661_v4, %v6660_v2  ;;  %v6663_v16 = vpop.f32.mrb[82].mxu1  ;;  %v9288_v9 = vadd.f32 %v6621_v27, %v6620_v30  ;;  %v6623_v53 = vpop.f32.mrb[66].mxu0  ;;  %v8076_v4 = vld [vmem:[%s9936_s4 + $0xa0] sm:$0xff]  }
 0x26b   : > { %v6664_v14 = vpop.f32.mrb[83].mxu1  ;;  %v6624_v0 = vpop.f32.mrb[67].mxu0 }
 0x26c   : > { %v6665_v25 = vadd.f32 %v6664_v14, %v6663_v16  ;;  %v9290_v36 = vadd.f32 %v6624_v0, %v6623_v53  ;;  %v8077_v16 = vld [vmem:[%s9936_s4 + $0xa8] sm:$0xff]   ;;  %v8078_v14 = vld [vmem:[%s9936_s4 + $0xb0] sm:$0xff]  }
 0x26d   : > { %7354 = vmatpush3.bf16.msra.mxu0 %v8047_v61  ;;  %4040 = vmatmul.mubr.bf16.gmra.mrb[188].mxu1 %v8065_v56 }
 0x26e   : > { %7355 = vmatprep.subr.bf16.mxu0 %v8051_v59  ;;  %v2176_v52 = vpack.c.bf16 %v6665_v25, %v6662_v21  ;;  %4047 = vmatprep.mubr.bf16.mxu1 %v8068_v45  ;;  %v2043_v22 = vpack.c.bf16 %v9290_v36, %v9288_v9 }
 0x270   : > { %v6666_v43 = vpop.f32.mrb[84].mxu1  ;;  %7347 = vmatprep.mubr.bf16.mxu0 %v2176_v52  ;;  %v6626_v3 = vpop.f32.mrb[68].mxu0  ;;  %v8079_v52 = vld [vmem:[%s9936_s4 + $0xb8] sm:$0xff]  }
 0x271   : > { %7356 = vmatpush3.bf16.msra.mxu0 %v8051_v59  ;;  %v6667_v34 = vpop.f32.mrb[85].mxu1  ;;  %v6627_v7 = vpop.f32.mrb[69].mxu0 }
 0x272   : > { %7357 = vmatprep.subr.bf16.mxu0 %v8052_v6  ;;  %v6668_v29 = vadd.f32 %v6667_v34, %v6666_v43  ;;  %v6669_v40 = vpop.f32.mrb[86].mxu1  ;;  %v6628_v44 = vadd.f32 %v6627_v7, %v6626_v3  ;;  %v6629_v38 = vpop.f32.mrb[70].mxu0  ;;  %v8080_v34 = vld [vmem:[%s9936_s4 + $0xc0] sm:$0xff]  }
 0x273   : > { %v6670_v37 = vpop.f32.mrb[87].mxu1  ;;  %v6630_v50 = vpop.f32.mrb[71].mxu0 }
 0x274   : > { %v6671_v28 = vadd.f32 %v6670_v37, %v6669_v40  ;;  %v6631_v12 = vadd.f32 %v6630_v50, %v6629_v38  ;;  %v8081_v40 = vld [vmem:[%s9936_s4 + $0xc8] sm:$0xff]   ;;  %v8082_v37 = vld [vmem:[%s9936_s4 + $0xd0] sm:$0xff]  }
 0x275   : > { %7358 = vmatpush3.bf16.msra.mxu0 %v8052_v6  ;;  %4048 = vmatmul.mubr.bf16.gmra.mrb[192].mxu1 %v8070_v33 }
 0x276   : > { %7359 = vmatprep.subr.bf16.mxu0 %v8056_v41  ;;  %v2177_v19 = vpack.c.bf16 %v6671_v28, %v6668_v29  ;;  %4055 = vmatprep.mubr.bf16.mxu1 %v8073_v51  ;;  %v2044_v18 = vpack.c.bf16 %v6631_v12, %v6628_v44 }
 0x278   : > { %7348 = vmatmul.mubr.bf16.gmra.mrb[76].mxu0 %v2177_v19  ;;  %v6712_v35 = vpop.f32.mrb[88].mxu1 }
 0x279   : > { %7360 = vmatpush3.bf16.msra.mxu0 %v8056_v41  ;;  %7367 = vmatprep.mubr.bf16.mxu0 %v2041_v39  ;;  %v6713_v60 = vpop.f32.mrb[89].mxu1 }
 0x27a   : > { %7361 = vmatprep.subr.bf16.mxu0 %v8057_v32  ;;  %v6714_v13 = vadd.f32 %v6713_v60, %v6712_v35  ;;  %v6715_v58 = vpop.f32.mrb[90].mxu1  ;;  %v8084_v60 = vld [vmem:[%s9936_s4 + $0xe0] sm:$0xff]  }
 0x27b   : > { %v6716_v5 = vpop.f32.mrb[91].mxu1 }
 0x27c   : > { %v6717_v15 = vadd.f32 %v6716_v5, %v6715_v58 }
 0x27d   : > { %7362 = vmatpush3.bf16.msra.mxu0 %v8057_v32  ;;  %4056 = vmatmul.mubr.bf16.gmra.mrb[196].mxu1 %v8075_v24  ;;  %v8083_v32 = vld [vmem:[%s9936_s4 + $0xd8] sm:$0xff]  }
 0x27e   : > { %7363 = vmatprep.subr.bf16.mxu0 %v8061_v54  ;;  %v2534_v63 = vpack.c.bf16 %v6717_v15, %v6714_v13  ;;  %v8085_v15 = vld [vmem:[%s9936_s4 + $0xe8] sm:$0xff]  }
 0x280   : > { %v6718_v39 = vpop.f32.mrb[92].mxu1 }
 0x281   : > { %7364 = vmatpush3.bf16.msra.mxu0 %v8061_v54  ;;  %v6719_v26 = vpop.f32.mrb[93].mxu1 }
 0x282   : > { %7365 = vmatprep.subr.bf16.mxu0 %v8062_v8  ;;  %v9324_v46 = vadd.f32 %v6719_v26, %v6718_v39  ;;  %v6721_v20 = vpop.f32.mrb[94].mxu1  ;;  %v8086_v26 = vld [vmem:[%s9936_s4 + $0xf0] sm:$0xff]  }
 0x283   : > { %v6722_v42 = vpop.f32.mrb[95].mxu1 }
 0x284   : > { %v6723_v17 = vadd.f32 %v6722_v42, %v6721_v20 }
 0x285   : > { %7366 = vmatpush3.bf16.msra.mxu0 %v8062_v8 }
 0x286   : > { %7375 = vmatprep.subr.bf16.mxu0 %v8066_v62  ;;  %v2535_v55 = vpack.c.bf16 %v6723_v17, %v9324_v46  ;;  %v8087_v17 = vld [vmem:[%s9936_s4 + $0xf8] sm:$0xff]  }
 0x288   : > { %7368 = vmatmul.mubr.bf16.vlgmr.msra.gmra.mrb[72].mxu0 %v2042_v49  ;;  %v6724_v23 = vpop.f32.mrb[96].mxu1 }
 0x289   : > { %7376 = vmatpush3.bf16.msra.mxu0 %v8066_v62  ;;  %7371 = vmatprep.mubr.bf16.mxu0 %v2043_v22  ;;  %v6725_v47 = vpop.f32.mrb[97].mxu1 }
 0x28a   : > { %7377 = vmatprep.subr.bf16.mxu0 %v8067_v11  ;;  %v6726_v1 = vadd.f32 %v6725_v47, %v6724_v23  ;;  %v6727_v48 = vpop.f32.mrb[98].mxu1  ;;  %v8088_v47 = vld [vmem:[%s9936_s4 + $0x100] sm:$0xff]  }
 0x28b   : > { %v6728_v61 = vpop.f32.mrb[99].mxu1 }
 0x28c   : > { %v6729_v2 = vadd.f32 %v6728_v61, %v6727_v48 }
 0x28d   : > { %7378 = vmatpush3.bf16.msra.mxu0 %v8067_v11 }
 0x28e   : > { %7379 = vmatprep.subr.bf16.mxu0 %v8071_v57  ;;  %v2536_v10 = vpack.c.bf16 %v6729_v2, %v6726_v1  ;;  %v8089_v2 = vld [vmem:[%s9936_s4 + $0x108] sm:$0xff]  }
 0x290   : > { %7372 = vmatmul.mubr.bf16.gmra.mrb[76].mxu0 %v2044_v18  ;;  %v6730_v49 = vpop.f32.mrb[100].mxu1 }
 0x291   : > { %7380 = vmatpush3.bf16.msra.mxu0 %v8071_v57  ;;  %7391 = vmatprep.mubr.bf16.mxu0 %v2534_v63  ;;  %v6731_v30 = vpop.f32.mrb[101].mxu1 }
 0x292   : > { %7381 = vmatprep.subr.bf16.mxu0 %v8072_v31  ;;  %v6732_v56 = vadd.f32 %v6731_v30, %v6730_v49  ;;  %v6733_v27 = vpop.f32.mrb[102].mxu1  ;;  %v8090_v30 = vld [vmem:[%s9936_s4 + $0x110] sm:$0xff]  }
 0x293   : > { %v6734_v59 = vpop.f32.mrb[103].mxu1 }
 0x294   : > { %v6735_v21 = vadd.f32 %v6734_v59, %v6733_v27 }
 0x295   : > { %7382 = vmatpush3.bf16.msra.mxu0 %v8072_v31 }
 0x296   : > { %7383 = vmatprep.subr.bf16.mxu0 %v8076_v4  ;;  %v2537_v45 = vpack.c.bf16 %v6735_v21, %v6732_v56  ;;  %v8091_v21 = vld [vmem:[%s9936_s4 + $0x118] sm:$0xff]  }
 0x298   : > { %v6764_v9 = vpop.f32.mrb[104].mxu1 }
 0x299   : > { %7384 = vmatpush3.bf16.msra.mxu0 %v8076_v4  ;;  %v6765_v53 = vpop.f32.mrb[105].mxu1 }
 0x29a   : > { %7385 = vmatprep.subr.bf16.mxu0 %v8077_v16  ;;  %v6766_v0 = vadd.f32 %v6765_v53, %v6764_v9  ;;  %v6767_v25 = vpop.f32.mrb[106].mxu1  ;;  %v8092_v53 = vld [vmem:[%s9936_s4 + $0x120] sm:$0xff]  }
 0x29b   : > { %v6768_v36 = vpop.f32.mrb[107].mxu1 }
 0x29c   : > { %v6769_v6 = vadd.f32 %v6768_v36, %v6767_v25 }
 0x29d   : > { %7386 = vmatpush3.bf16.msra.mxu0 %v8077_v16 }
 0x29e   : > { %7387 = vmatprep.subr.bf16.mxu0 %v8078_v14  ;;  %v2789_v22 = vpack.c.bf16 %v6769_v6, %v6766_v0  ;;  %v8093_v6 = vld [vmem:[%s9936_s4 + $0x128] sm:$0xff]  }
 0x2a0   : > { %v6770_v43 = vpop.f32.mrb[108].mxu1 }
 0x2a1   : > { %7388 = vmatpush3.bf16.msra.mxu0 %v8078_v14  ;;  %v6771_v3 = vpop.f32.mrb[109].mxu1 }
 0x2a2   : > { %7389 = vmatprep.subr.bf16.mxu0 %v8079_v52  ;;  %v9354_v33 = vadd.f32 %v6771_v3, %v6770_v43  ;;  %v6773_v7 = vpop.f32.mrb[110].mxu1  ;;  %v8094_v3 = vld [vmem:[%s9936_s4 + $0x130] sm:$0xff]  }
 0x2a3   : > { %v6774_v41 = vpop.f32.mrb[111].mxu1 }
 0x2a4   : > { %v6775_v29 = vadd.f32 %v6774_v41, %v6773_v7 }
 0x2a5   : > { %7390 = vmatpush3.bf16.msra.mxu0 %v8079_v52 }
 0x2a6   : > { %7399 = vmatprep.subr.bf16.mxu0 %v8080_v34  ;;  %v2790_v51 = vpack.c.bf16 %v6775_v29, %v9354_v33  ;;  %v8095_v29 = vld [vmem:[%s9936_s4 + $0x138] sm:$0xff]  }
 0x2a8   : > { %7392 = vmatmul.mubr.bf16.vlgmr.msra.gmra.mrb[72].mxu0 %v2535_v55  ;;  %v6776_v44 = vpop.f32.mrb[112].mxu1 }
 0x2a9   : > { %7400 = vmatpush3.bf16.msra.mxu0 %v8080_v34  ;;  %7395 = vmatprep.mubr.bf16.mxu0 %v2536_v10  ;;  %v6777_v38 = vpop.f32.mrb[113].mxu1 }
 0x2aa   : > { %7401 = vmatprep.subr.bf16.mxu0 %v8081_v40  ;;  %v6778_v50 = vadd.f32 %v6777_v38, %v6776_v44  ;;  %v6779_v28 = vpop.f32.mrb[114].mxu1  ;;  %v8096_v38 = vld [vmem:[%s9936_s4 + $0x140] sm:$0xff]  }
 0x2ab   : > { %v6780_v12 = vpop.f32.mrb[115].mxu1 }
 0x2ac   : > { %v6781_v19 = vadd.f32 %v6780_v12, %v6779_v28 }
 0x2ad   : > { %7402 = vmatpush3.bf16.msra.mxu0 %v8081_v40 }
 0x2ae   : > { %7403 = vmatprep.subr.bf16.mxu0 %v8082_v37  ;;  %v2791_v18 = vpack.c.bf16 %v6781_v19, %v6778_v50  ;;  %v8097_v19 = vld [vmem:[%s9936_s4 + $0x148] sm:$0xff]  }
 0x2b0   : > { %7396 = vmatmul.mubr.bf16.gmra.mrb[76].mxu0 %v2537_v45  ;;  %v6782_v35 = vpop.f32.mrb[116].mxu1 }
 0x2b1   : > { %7404 = vmatpush3.bf16.msra.mxu0 %v8082_v37  ;;  %7415 = vmatprep.mubr.bf16.mxu0 %v2789_v22  ;;  %v6783_v24 = vpop.f32.mrb[117].mxu1 }
 0x2b2   : > { %7405 = vmatprep.subr.bf16.mxu0 %v8083_v32  ;;  %v6784_v54 = vadd.f32 %v6783_v24, %v6782_v35  ;;  %v6785_v13 = vpop.f32.mrb[118].mxu1  ;;  %v8098_v24 = vld [vmem:[%s9936_s4 + $0x150] sm:$0xff]  }
 0x2b3   : > { %v6786_v58 = vpop.f32.mrb[119].mxu1 }
 0x2b4   : > { %v6787_v5 = vadd.f32 %v6786_v58, %v6785_v13 }
 0x2b5   : > { %7406 = vmatpush3.bf16.msra.mxu0 %v8083_v32 }
 0x2b6   : > { %7407 = vmatprep.subr.bf16.mxu0 %v8084_v60  ;;  %v2792_v8 = vpack.c.bf16 %v6787_v5, %v6784_v54  ;;  %v8099_v5 = vld [vmem:[%s9936_s4 + $0x158] sm:$0xff]  }
 0x2b8   : > { %v6816_v63 = vpop.f32.mrb[120].mxu1 }
 0x2b9   : > { %7408 = vmatpush3.bf16.msra.mxu0 %v8084_v60  ;;  %v6817_v39 = vpop.f32.mrb[121].mxu1 }
 0x2ba   : > { %7409 = vmatprep.subr.bf16.mxu0 %v8085_v15  ;;  %v6818_v62 = vadd.f32 %v6817_v39, %v6816_v63  ;;  %v6819_v46 = vpop.f32.mrb[122].mxu1  ;;  %v8100_v39 = vld [vmem:[%s9936_s4 + $0x160] sm:$0xff]  }
 0x2bb   : > { %v6820_v20 = vpop.f32.mrb[123].mxu1 }
 0x2bc   : > { %v6821_v42 = vadd.f32 %v6820_v20, %v6819_v46 }
 0x2bd   : > { %7410 = vmatpush3.bf16.msra.mxu0 %v8085_v15 }
 0x2be   : > { %7411 = vmatprep.subr.bf16.mxu0 %v8086_v26  ;;  %v3044_v11 = vpack.c.bf16 %v6821_v42, %v6818_v62  ;;  %v8101_v42 = vld [vmem:[%s9936_s4 + $0x168] sm:$0xff]  }
 0x2c0   : > { %v6822_v55 = vpop.f32.mrb[124].mxu1 }
 0x2c1   : > { %7412 = vmatpush3.bf16.msra.mxu0 %v8086_v26  ;;  %v6823_v23 = vpop.f32.mrb[125].mxu1 }
 0x2c2   : > { %7413 = vmatprep.subr.bf16.mxu0 %v8087_v17  ;;  %v9381_v57 = vadd.f32 %v6823_v23, %v6822_v55  ;;  %v6825_v1 = vpop.f32.mrb[126].mxu1  ;;  %v8102_v23 = vld [vmem:[%s9936_s4 + $0x170] sm:$0xff]  }
 0x2c3   : > { %v6826_v48 = vpop.f32.mrb[127].mxu1 }
 0x2c4   : > { %v6827_v61 = vadd.f32 %v6826_v48, %v6825_v1 }
 0x2c5   : > { %7414 = vmatpush3.bf16.msra.mxu0 %v8087_v17 }
 0x2c6   : > { %7423 = vmatprep.subr.bf16.mxu0 %v8088_v47  ;;  %v3045_v31 = vpack.c.bf16 %v6827_v61, %v9381_v57  ;;  %v8103_v61 = vld [vmem:[%s9936_s4 + $0x178] sm:$0xff]  }
 0x2c8   : > { %7416 = vmatmul.mubr.bf16.vlgmr.msra.gmra.mrb[72].mxu0 %v2790_v51  ;;  %v6828_v10 = vpop.f32.mrb[128].mxu1 }
 0x2c9   : > { %7424 = vmatpush3.bf16.msra.mxu0 %v8088_v47  ;;  %7419 = vmatprep.mubr.bf16.mxu0 %v2791_v18  ;;  %v6829_v49 = vpop.f32.mrb[129].mxu1 }
 0x2ca   : > { %7425 = vmatprep.subr.bf16.mxu0 %v8089_v2  ;;  %v6830_v4 = vadd.f32 %v6829_v49, %v6828_v10  ;;  %v6831_v56 = vpop.f32.mrb[130].mxu1  ;;  %v8104_v49 = vld [vmem:[%s9936_s4 + $0x180] sm:$0xff]  }
 0x2cb   : > { %v6832_v27 = vpop.f32.mrb[131].mxu1 }
 0x2cc   : > { %v6833_v59 = vadd.f32 %v6832_v27, %v6831_v56 }
 0x2cd   : > { %7426 = vmatpush3.bf16.msra.mxu0 %v8089_v2 }
 0x2ce   : > { %7427 = vmatprep.subr.bf16.mxu0 %v8090_v30  ;;  %v3046_v16 = vpack.c.bf16 %v6833_v59, %v6830_v4  ;;  %v8105_v59 = vld [vmem:[%s9936_s4 + $0x188] sm:$0xff]  }
 0x2d0   : > { %7420 = vmatmul.mubr.bf16.gmra.mrb[76].mxu0 %v2792_v8  ;;  %v6834_v45 = vpop.f32.mrb[132].mxu1 }
 0x2d1   : > { %7428 = vmatpush3.bf16.msra.mxu0 %v8090_v30  ;;  %7439 = vmatprep.mubr.bf16.mxu0 %v3044_v11  ;;  %v6835_v9 = vpop.f32.mrb[133].mxu1 }
 0x2d2   : > { %7429 = vmatprep.subr.bf16.mxu0 %v8091_v21  ;;  %v6836_v14 = vadd.f32 %v6835_v9, %v6834_v45  ;;  %v6837_v0 = vpop.f32.mrb[134].mxu1  ;;  %v8106_v9 = vld [vmem:[%s9936_s4 + $0x190] sm:$0xff]  }
 0x2d3   : > { %v6838_v25 = vpop.f32.mrb[135].mxu1 }
 0x2d4   : > { %v6839_v36 = vadd.f32 %v6838_v25, %v6837_v0 }
 0x2d5   : > { %7430 = vmatpush3.bf16.msra.mxu0 %v8091_v21 }
 0x2d6   : > { %7431 = vmatprep.subr.bf16.mxu0 %v8092_v53  ;;  %v3047_v52 = vpack.c.bf16 %v6839_v36, %v6836_v14  ;;  %v8107_v36 = vld [vmem:[%s9936_s4 + $0x198] sm:$0xff]  }
 0x2d8   : > { %v6868_v22 = vpop.f32.mrb[136].mxu1 }
 0x2d9   : > { %7432 = vmatpush3.bf16.msra.mxu0 %v8092_v53  ;;  %v6869_v43 = vpop.f32.mrb[137].mxu1 }
 0x2da   : > { %7433 = vmatprep.subr.bf16.mxu0 %v8093_v6  ;;  %v6870_v34 = vadd.f32 %v6869_v43, %v6868_v22  ;;  %v6871_v33 = vpop.f32.mrb[138].mxu1  ;;  %v8108_v43 = vld [vmem:[%s9936_s4 + $0x1a0] sm:$0xff]  }
 0x2db   : > { %v6872_v7 = vpop.f32.mrb[139].mxu1 }
 0x2dc   : > { %v6873_v41 = vadd.f32 %v6872_v7, %v6871_v33 }
 0x2dd   : > { %7434 = vmatpush3.bf16.msra.mxu0 %v8093_v6 }
 0x2de   : > { %7435 = vmatprep.subr.bf16.mxu0 %v8094_v3  ;;  %v3299_v40 = vpack.c.bf16 %v6873_v41, %v6870_v34  ;;  %v8109_v41 = vld [vmem:[%s9936_s4 + $0x1a8] sm:$0xff]  }
 0x2e0   : > { %v6874_v51 = vpop.f32.mrb[140].mxu1 }
 0x2e1   : > { %7436 = vmatpush3.bf16.msra.mxu0 %v8094_v3  ;;  %v6875_v44 = vpop.f32.mrb[141].mxu1 }
 0x2e2   : > { %7437 = vmatprep.subr.bf16.mxu0 %v8095_v29  ;;  %v9408_v37 = vadd.f32 %v6875_v44, %v6874_v51  ;;  %v6877_v50 = vpop.f32.mrb[142].mxu1  ;;  %v8110_v44 = vld [vmem:[%s9936_s4 + $0x1b0] sm:$0xff]  }
 0x2e3   : > { %v6878_v28 = vpop.f32.mrb[143].mxu1 }
 0x2e4   : > { %v6879_v12 = vadd.f32 %v6878_v28, %v6877_v50 }
 0x2e5   : > { %7438 = vmatpush3.bf16.msra.mxu0 %v8095_v29 }
 0x2e6   : > { %7447 = vmatprep.subr.bf16.mxu0 %v8096_v38  ;;  %v3300_v32 = vpack.c.bf16 %v6879_v12, %v9408_v37  ;;  %v8111_v12 = vld [vmem:[%s9936_s4 + $0x1b8] sm:$0xff]  }
 0x2e8   : > { %7440 = vmatmul.mubr.bf16.vlgmr.msra.gmra.mrb[72].mxu0 %v3045_v31  ;;  %v6880_v18 = vpop.f32.mrb[144].mxu1 }
 0x2e9   : > { %7448 = vmatpush3.bf16.msra.mxu0 %v8096_v38  ;;  %7443 = vmatprep.mubr.bf16.mxu0 %v3046_v16  ;;  %v6881_v35 = vpop.f32.mrb[145].mxu1 }
 0x2ea   : > { %7449 = vmatprep.subr.bf16.mxu0 %v8097_v19  ;;  %v6882_v60 = vadd.f32 %v6881_v35, %v6880_v18  ;;  %v6883_v54 = vpop.f32.mrb[146].mxu1  ;;  %v8112_v35 = vld [vmem:[%s9936_s4 + $0x1c0] sm:$0xff]  }
 0x2eb   : > { %v6884_v13 = vpop.f32.mrb[147].mxu1 }
 0x2ec   : > { %v6885_v58 = vadd.f32 %v6884_v13, %v6883_v54 }
 0x2ed   : > { %7450 = vmatpush3.bf16.msra.mxu0 %v8097_v19 }
 0x2ee   : > { %7451 = vmatprep.subr.bf16.mxu0 %v8098_v24  ;;  %v3301_v15 = vpack.c.bf16 %v6885_v58, %v6882_v60  ;;  %v8113_v58 = vld [vmem:[%s9936_s4 + $0x1c8] sm:$0xff]  }
 0x2f0   : > { %7444 = vmatmul.mubr.bf16.gmra.mrb[76].mxu0 %v3047_v52  ;;  %v6886_v8 = vpop.f32.mrb[148].mxu1 }
 0x2f1   : > { %7452 = vmatpush3.bf16.msra.mxu0 %v8098_v24  ;;  %7463 = vmatprep.mubr.bf16.mxu0 %v3299_v40  ;;  %v6887_v63 = vpop.f32.mrb[149].mxu1 }
 0x2f2   : > { %7453 = vmatprep.subr.bf16.mxu0 %v8099_v5  ;;  %v6888_v26 = vadd.f32 %v6887_v63, %v6886_v8  ;;  %v6889_v62 = vpop.f32.mrb[150].mxu1  ;;  %v8114_v63 = vld [vmem:[%s9936_s4 + $0x1d0] sm:$0xff]  }
 0x2f3   : > { %v6890_v46 = vpop.f32.mrb[151].mxu1 }
 0x2f4   : > { %v6891_v20 = vadd.f32 %v6890_v46, %v6889_v62 }
 0x2f5   : > { %7454 = vmatpush3.bf16.msra.mxu0 %v8099_v5 }
 0x2f6   : > { %7455 = vmatprep.subr.bf16.mxu0 %v8100_v39  ;;  %v3302_v17 = vpack.c.bf16 %v6891_v20, %v6888_v26  ;;  %v8115_v20 = vld [vmem:[%s9936_s4 + $0x1d8] sm:$0xff]  }
 0x2f8   : > { %v6920_v11 = vpop.f32.mrb[152].mxu1 }
 0x2f9   : > { %7456 = vmatpush3.bf16.msra.mxu0 %v8100_v39  ;;  %v6921_v55 = vpop.f32.mrb[153].mxu1 }
 0x2fa   : > { %7457 = vmatprep.subr.bf16.mxu0 %v8101_v42  ;;  %v6922_v47 = vadd.f32 %v6921_v55, %v6920_v11  ;;  %v6923_v57 = vpop.f32.mrb[154].mxu1  ;;  %v8116_v55 = vld [vmem:[%s9936_s4 + $0x1e0] sm:$0xff]  }
 0x2fb   : > { %v6924_v1 = vpop.f32.mrb[155].mxu1 }
 0x2fc   : > { %v6925_v48 = vadd.f32 %v6924_v1, %v6923_v57 }
 0x2fd   : > { %7458 = vmatpush3.bf16.msra.mxu0 %v8101_v42 }
 0x2fe   : > { %7459 = vmatprep.subr.bf16.mxu0 %v8102_v23  ;;  %v3554_v2 = vpack.c.bf16 %v6925_v48, %v6922_v47  ;;  %v8117_v48 = vld [vmem:[%s9936_s4 + $0x1e8] sm:$0xff]  }
 0x300   : > { %v6926_v31 = vpop.f32.mrb[156].mxu1 }
 0x301   : > { %7460 = vmatpush3.bf16.msra.mxu0 %v8102_v23  ;;  %v6927_v10 = vpop.f32.mrb[157].mxu1 }
 0x302   : > { %7461 = vmatprep.subr.bf16.mxu0 %v8103_v61  ;;  %v9435_v30 = vadd.f32 %v6927_v10, %v6926_v31  ;;  %v6929_v4 = vpop.f32.mrb[158].mxu1  ;;  %v8118_v10 = vld [vmem:[%s9936_s4 + $0x1f0] sm:$0xff]  }
 0x303   : > { %v6930_v56 = vpop.f32.mrb[159].mxu1 }
 0x304   : > { %v6931_v27 = vadd.f32 %v6930_v56, %v6929_v4 }
 0x305   : > { %7462 = vmatpush3.bf16.msra.mxu0 %v8103_v61 }
 0x306   : > { %7471 = vmatprep.subr.bf16.mxu0 %v8104_v49  ;;  %v3555_v21 = vpack.c.bf16 %v6931_v27, %v9435_v30  ;;  %v8119_v27 = vld [vmem:[%s9936_s4 + $0x1f8] sm:$0xff]  }
 0x308   : > { %7464 = vmatmul.mubr.bf16.vlgmr.msra.gmra.mrb[72].mxu0 %v3300_v32  ;;  %v6932_v16 = vpop.f32.mrb[160].mxu1 }
 0x309   : > { %7472 = vmatpush3.bf16.msra.mxu0 %v8104_v49  ;;  %7467 = vmatprep.mubr.bf16.mxu0 %v3301_v15  ;;  %v6933_v45 = vpop.f32.mrb[161].mxu1 }
 0x30a   : > { %7473 = vmatprep.subr.bf16.mxu0 %v8105_v59  ;;  %v6934_v53 = vadd.f32 %v6933_v45, %v6932_v16  ;;  %v6935_v14 = vpop.f32.mrb[162].mxu1  ;;  %v8120_v45 = vld [vmem:[%s9936_s4 + $0x200] sm:$0xff]  }
 0x30b   : > { %v6936_v0 = vpop.f32.mrb[163].mxu1 }
 0x30c   : > { %v6937_v25 = vadd.f32 %v6936_v0, %v6935_v14 }
 0x30d   : > { %7474 = vmatpush3.bf16.msra.mxu0 %v8105_v59 }
 0x30e   : > { %7475 = vmatprep.subr.bf16.mxu0 %v8106_v9  ;;  %v3556_v6 = vpack.c.bf16 %v6937_v25, %v6934_v53  ;;  %v8121_v25 = vld [vmem:[%s9936_s4 + $0x208] sm:$0xff]  }
 0x310   : > { %7468 = vmatmul.mubr.bf16.gmra.mrb[76].mxu0 %v3302_v17  ;;  %v6938_v52 = vpop.f32.mrb[164].mxu1 }
 0x311   : > { %7476 = vmatpush3.bf16.msra.mxu0 %v8106_v9  ;;  %7487 = vmatprep.mubr.bf16.mxu0 %v3554_v2  ;;  %v6939_v22 = vpop.f32.mrb[165].mxu1 }
 0x312   : > { %7477 = vmatprep.subr.bf16.mxu0 %v8107_v36  ;;  %v6940_v3 = vadd.f32 %v6939_v22, %v6938_v52  ;;  %v6941_v34 = vpop.f32.mrb[166].mxu1  ;;  %v8122_v22 = vld [vmem:[%s9936_s4 + $0x210] sm:$0xff]  }
 0x313   : > { %v6942_v33 = vpop.f32.mrb[167].mxu1 }
 0x314   : > { %v6943_v7 = vadd.f32 %v6942_v33, %v6941_v34 }
 0x315   : > { %7478 = vmatpush3.bf16.msra.mxu0 %v8107_v36 }
 0x316   : > { %7479 = vmatprep.subr.bf16.mxu0 %v8108_v43  ;;  %v3557_v29 = vpack.c.bf16 %v6943_v7, %v6940_v3  ;;  %v8123_v7 = vld [vmem:[%s9936_s4 + $0x218] sm:$0xff]  }
 0x318   : > { %v6972_v40 = vpop.f32.mrb[168].mxu1 }
 0x319   : > { %7480 = vmatpush3.bf16.msra.mxu0 %v8108_v43  ;;  %v6973_v51 = vpop.f32.mrb[169].mxu1 }
 0x31a   : > { %7481 = vmatprep.subr.bf16.mxu0 %v8109_v41  ;;  %v6974_v38 = vadd.f32 %v6973_v51, %v6972_v40  ;;  %v6975_v37 = vpop.f32.mrb[170].mxu1  ;;  %v8124_v51 = vld [vmem:[%s9936_s4 + $0x220] sm:$0xff]  }
 0x31b   : > { %v6976_v50 = vpop.f32.mrb[171].mxu1 }
 0x31c   : > { %v6977_v28 = vadd.f32 %v6976_v50, %v6975_v37 }
 0x31d   : > { %7482 = vmatpush3.bf16.msra.mxu0 %v8109_v41 }
 0x31e   : > { %7483 = vmatprep.subr.bf16.mxu0 %v8110_v44  ;;  %v3809_v19 = vpack.c.bf16 %v6977_v28, %v6974_v38  ;;  %v8125_v28 = vld [vmem:[%s9936_s4 + $0x228] sm:$0xff]  }
 0x320   : > { %v6978_v32 = vpop.f32.mrb[172].mxu1 }
 0x321   : > { %7484 = vmatpush3.bf16.msra.mxu0 %v8110_v44  ;;  %v6979_v18 = vpop.f32.mrb[173].mxu1 }
 0x322   : > { %7485 = vmatprep.subr.bf16.mxu0 %v8111_v12  ;;  %v9462_v24 = vadd.f32 %v6979_v18, %v6978_v32  ;;  %v6981_v60 = vpop.f32.mrb[174].mxu1  ;;  %v8127_v32 = vld [vmem:[%s9936_s4 + $0x238] sm:$0xff]   ;;  %v8128_v18 = vld [vmem:[%s9938_s6] sm:$0xff]  }
 0x323   : > { %v6982_v54 = vpop.f32.mrb[175].mxu1  ;;  %7551 = vmatprep.mubr.msk.bf16.mxu1 %vm4261_vm2, %v8128_v18  ;;  %v8141_v18 = vld [vmem:[%s9940_s8 + $0x70] sm:$0xff]  }
 0x324   : > { %v6983_v13 = vadd.f32 %v6982_v54, %v6981_v60 }
 0x325   : > { %7486 = vmatpush3.bf16.msra.mxu0 %v8111_v12 }
 0x326   : > { %7495 = vmatprep.subr.bf16.mxu0 %v8112_v35  ;;  %v3810_v5 = vpack.c.bf16 %v6983_v13, %v9462_v24 }
 0x328   : > { %7488 = vmatmul.mubr.bf16.vlgmr.msra.gmra.mrb[72].mxu0 %v3555_v21  ;;  %v6984_v15 = vpop.f32.mrb[176].mxu1 }
 0x329   : > { %7496 = vmatpush3.bf16.msra.mxu0 %v8112_v35  ;;  %7491 = vmatprep.mubr.bf16.mxu0 %v3556_v6  ;;  %v6985_v8 = vpop.f32.mrb[177].mxu1  ;;  %v6273_v35 = vld [vmem:[%s9937_s5] ss:$0 sm:$0xff] }
 0x32a   : > { %7497 = vmatprep.subr.bf16.mxu0 %v8113_v58  ;;  %v6986_v39 = vadd.f32 %v6985_v8, %v6984_v15  ;;  %v6987_v26 = vpop.f32.mrb[178].mxu1 }
 0x32b   : > { %v6988_v62 = vpop.f32.mrb[179].mxu1 }
 0x32c   : > { %v6989_v46 = vadd.f32 %v6988_v62, %v6987_v26 }
 0x32d   : > { %7498 = vmatpush3.bf16.msra.mxu0 %v8113_v58 }
 0x32e   : > { %7499 = vmatprep.subr.bf16.mxu0 %v8114_v63  ;;  %v3811_v42 = vpack.c.bf16 %v6989_v46, %v6986_v39 }
 0x330   : > { %7492 = vmatmul.mubr.bf16.gmra.mrb[76].mxu0 %v3557_v29  ;;  %v6990_v17 = vpop.f32.mrb[180].mxu1 }
 0x331   : > { %7500 = vmatpush3.bf16.msra.mxu0 %v8114_v63  ;;  %7511 = vmatprep.mubr.bf16.mxu0 %v3809_v19  ;;  %v6991_v11 = vpop.f32.mrb[181].mxu1  ;;  %v8126_v19 = vld [vmem:[%s9936_s4 + $0x230] sm:$0xff]  }
 0x332   : > { %7501 = vmatprep.subr.bf16.mxu0 %v8115_v20  ;;  %v6992_v23 = vadd.f32 %v6991_v11, %v6990_v17  ;;  %v6993_v47 = vpop.f32.mrb[182].mxu1 }
 0x333   : > { %v6994_v57 = vpop.f32.mrb[183].mxu1 }
 0x334   : > { %v6995_v1 = vadd.f32 %v6994_v57, %v6993_v47 }
 0x335   : > { %7502 = vmatpush3.bf16.msra.mxu0 %v8115_v20 }
 0x336   : > { %7503 = vmatprep.subr.bf16.mxu0 %v8116_v55  ;;  %v3812_v61 = vpack.c.bf16 %v6995_v1, %v6992_v23 }
 0x338   : > { %v7024_v2 = vpop.f32.mrb[184].mxu1 }
 0x339   : > { %7504 = vmatpush3.bf16.msra.mxu0 %v8116_v55  ;;  %v7025_v31 = vpop.f32.mrb[185].mxu1 }
 0x33a   : > { %7505 = vmatprep.subr.bf16.mxu0 %v8117_v48  ;;  %v7026_v49 = vadd.f32 %v7025_v31, %v7024_v2  ;;  %v7027_v30 = vpop.f32.mrb[186].mxu1 }
 0x33b   : > { %v7028_v4 = vpop.f32.mrb[187].mxu1 }
 0x33c   : > { %v7029_v56 = vadd.f32 %v7028_v4, %v7027_v30  ;;  %v8129_v30 = vld [vmem:[%s9938_s6 + $0x8] sm:$0xff]   ;;  %v8130_v4 = vld [vmem:[%s9938_s6 + $0x10] sm:$0xff]  }
 0x33d   : > { %7506 = vmatpush3.bf16.msra.mxu0 %v8117_v48 }
 0x33e   : > { %7507 = vmatprep.subr.bf16.mxu0 %v8118_v10  ;;  %v4064_v59 = vpack.c.bf16 %v7029_v56, %v7026_v49  ;;  %v8131_v56 = vld [vmem:[%s9938_s6 + $0x18] sm:$0xff]  }
 0x340   : > { %v7030_v21 = vpop.f32.mrb[188].mxu1 }
 0x341   : > { %7508 = vmatpush3.bf16.msra.mxu0 %v8118_v10  ;;  %v7031_v16 = vpop.f32.mrb[189].mxu1 }
 0x342   : > { %7509 = vmatprep.subr.bf16.mxu0 %v8119_v27  ;;  %v7032_v9 = vadd.f32 %v7031_v16, %v7030_v21  ;;  %v7033_v53 = vpop.f32.mrb[190].mxu1 }
 0x343   : > { %v7034_v14 = vpop.f32.mrb[191].mxu1 }
 0x344   : > { %v7035_v0 = vadd.f32 %v7034_v14, %v7033_v53 }
 0x345   : > { %7510 = vmatpush3.bf16.msra.mxu0 %v8119_v27  ;;  %v8221_v27 = vmov 0.0  }
 0x346   : > { %7519 = vmatprep.subr.bf16.mxu0 %v8120_v45  ;;  %v4065_v36 = vpack.c.bf16 %v7035_v0, %v7032_v9 }
 0x348   : > { %7512 = vmatmul.mubr.bf16.vlgmr.msra.gmra.mrb[72].mxu0 %v3810_v5  ;;  %v7036_v6 = vpop.f32.mrb[192].mxu1 }
 0x349   : > { %7520 = vmatpush3.bf16.msra.mxu0 %v8120_v45  ;;  %7515 = vmatprep.mubr.bf16.mxu0 %v3811_v42  ;;  %v7037_v52 = vpop.f32.mrb[193].mxu1 }
 0x34a   : > { %7521 = vmatprep.subr.bf16.mxu0 %v8121_v25  ;;  %v7038_v43 = vadd.f32 %v7037_v52, %v7036_v6  ;;  %v7039_v3 = vpop.f32.mrb[194].mxu1 }
 0x34b   : > { %v7040_v34 = vpop.f32.mrb[195].mxu1 }
 0x34c   : > { %v7041_v33 = vadd.f32 %v7040_v34, %v7039_v3 }
 0x34d   : > { %7522 = vmatpush3.bf16.msra.mxu0 %v8121_v25 }
 0x34e   : > { %7523 = vmatprep.subr.bf16.mxu0 %v8122_v22  ;;  %v4066_v41 = vpack.c.bf16 %v7041_v33, %v7038_v43  ;;  %v8132_v33 = vld [vmem:[%s9939_s7] sm:$0xff]  }
 0x350   : > { %7516 = vmatmul.mubr.bf16.gmra.mrb[76].mxu0 %v3812_v61  ;;  %v7042_v29 = vpop.f32.mrb[196].mxu1 }
 0x351   : > { %7524 = vmatpush3.bf16.msra.mxu0 %v8122_v22  ;;  %7535 = vmatprep.mubr.bf16.mxu0 %v4064_v59  ;;  %v7043_v40 = vpop.f32.mrb[197].mxu1  ;;  %v8140_v59 = vld [vmem:[%s9940_s8] sm:$0xff]  }
 0x352   : > { %7525 = vmatprep.subr.bf16.mxu0 %v8123_v7  ;;  %v7044_v44 = vadd.f32 %v7043_v40, %v7042_v29  ;;  %v7045_v38 = vpop.f32.mrb[198].mxu1  ;;  %v8135_v29 = vld [vmem:[%s9940_s8 + $0x48] sm:$0xff]   ;;  %v8136_v40 = vld [vmem:[%s9940_s8 + $0x50] sm:$0xff]  }
 0x353   : > { %v7046_v37 = vpop.f32.mrb[199].mxu1 }
 0x354   : > { %v7047_v50 = vadd.f32 %v7046_v37, %v7045_v38  ;;  %v8139_v38 = vld [vmem:[%s9940_s8 + $0x68] sm:$0xff]  }
 0x355   : > { %7526 = vmatpush3.bf16.msra.mxu0 %v8123_v7  ;;  %v8133_v7 = vld [vmem:[%s9939_s7 + $0x8] sm:$0xff]  }
 0x356   : > { %7527 = vmatprep.subr.bf16.mxu0 %v8124_v51  ;;  %v4067_v12 = vpack.c.bf16 %v7047_v50, %v7044_v44  ;;  %v8138_v44 = vld [vmem:[%s9940_s8 + $0x60] sm:$0xff]   ;;  %v8142_v37 = vld [vmem:[%s9940_s8 + $0x8] sm:$0xff]   ;;  %v8144_v50 = vld [vmem:[%s9940_s8 + $0x10] sm:$0xff]  }
 0x359   : > { %7528 = vmatpush3.bf16.msra.mxu0 %v8124_v51  ;;  %v8137_v51 = vld [vmem:[%s9940_s8 + $0x58] sm:$0xff]  }
 0x35a   : > { %7529 = vmatprep.subr.bf16.mxu0 %v8125_v28 }
 0x35d   : > { %7530 = vmatpush3.bf16.msra.mxu0 %v8125_v28  ;;  %v8145_v28 = vld [vmem:[%s9940_s8 + $0x18] sm:$0xff]  }
 0x35e   : > { %7531 = vmatprep.subr.bf16.mxu0 %v8126_v19 }
 0x361   : > { %7532 = vmatpush3.bf16.msra.mxu0 %v8126_v19  ;;  %v8148_v19 = vld [vmem:[%s9940_s8 + $0x28] sm:$0xff]  }
 0x362   : > { %7533 = vmatprep.subr.bf16.mxu0 %v8127_v32 }
 0x365   : > { %7534 = vmatpush3.bf16.msra.mxu0 %v8127_v32  ;;  %v8149_v32 = vld [vmem:[%s9940_s8 + $0x30] sm:$0xff]  }
 0x366   : > { %7591 = vmatprep.subr.bf16.mxu0 %v8221_v27 }
 0x368   : > { %7536 = vmatmul.mubr.bf16.vlgmr.msra.gmra.mrb[72].mxu0 %v4065_v36 }
 0x369   : > { %7539 = vmatprep.mubr.bf16.mxu0 %v4066_v41  ;;  %7592 = vmatpush3.bf16.msra.mxu0 %v8140_v59  ;;  %v8134_v41 = vld [vmem:[%s9940_s8 + $0x40] sm:$0xff]  }
 0x36a   : > { %7593 = vmatprep.subr.bf16.mxu0 %v8221_v27 }
 0x36d   : > { %7594 = vmatpush3.bf16.msra.mxu0 %v8142_v37  ;;  %v8172_v37 = vld [vmem:[%s9940_s8 + $0x110] sm:$0xff]  }
 0x36e   : > { %7595 = vmatprep.subr.bf16.mxu0 %v8221_v27 }
 0x370   : > { %7540 = vmatmul.mubr.bf16.gmra.mrb[76].mxu0 %v4067_v12  ;;  %v8146_v12 = vld [vmem:[%s9940_s8 + $0x20] sm:$0xff]  }
 0x371   : > { %7607 = vmatprep.mubr.msk.bf16.mxu0 %vm8222_vm3, %v8221_v27  ;;  %7596 = vmatpush3.bf16.msra.mxu0 %v8144_v50  ;;  %v8175_v50 = vld [vmem:[%s9940_s8 + $0x148] sm:$0xff]  }
 0x372   : > { %7597 = vmatprep.subr.bf16.mxu0 %v8221_v27 }
 0x375   : > { %7598 = vmatpush3.bf16.msra.mxu0 %v8145_v28  ;;  %v8174_v28 = vld [vmem:[%s9940_s8 + $0x118] sm:$0xff]  }
 0x376   : > { %7599 = vmatprep.subr.bf16.mxu0 %v8221_v27 }
 0x379   : > { %7600 = vmatpush3.bf16.msra.mxu0 %v8146_v12  ;;  %v8177_v12 = vld [vmem:[%s9940_s8 + $0x150] sm:$0xff]  }
 0x37a   : > { %7601 = vmatprep.subr.bf16.mxu0 %v8221_v27 }
 0x37d   : > { %7602 = vmatpush3.bf16.msra.mxu0 %v8148_v19  ;;  %v8176_v19 = vld [vmem:[%s9940_s8 + $0x120] sm:$0xff]  }
 0x37e   : > { %7603 = vmatprep.subr.bf16.mxu0 %v8221_v27 }
 0x381   : > { %7604 = vmatpush3.bf16.msra.mxu0 %v8149_v32  ;;  %v8178_v32 = vld [vmem:[%s9940_s8 + $0x128] sm:$0xff]  }
 0x382   : > { %7605 = vmatprep.subr.bf16.mxu0 %v8221_v27 }
 0x43b   : > { %v7537_v24 = vpop.f32.mrb[72].mxu0 }
 0x43c   : > { %v4215_v60 = vadd.f32 %v7537_v24, %v6273_v35  ;;  %v4167_v54 = vpop.f32.mrb[73].mxu0  ;;  %v8143_v24 = vld [vmem:[%s9940_s8 + $0x78] sm:$0xff]  }
 0x43d   : > { %v4213_v13 = vadd.f32 %v6273_v35, %v4167_v54  ;;  %v7538_v58 = vpop.f32.mrb[74].mxu0 }
 0x43e   : > { %v4216_v5 = vadd.f32 %v7538_v58, %v6273_v35  ;;  %v4170_v15 = vpop.f32.mrb[75].mxu0  ;;  %v4223_v63 = vmax.f32 %v4215_v60, 0.0  ;;  %v8152_v58 = vld [vmem:[%s9940_s8 + $0x80] sm:$0xff]  }
 0x43f   : > { %v4214_v8 = vadd.f32 %v6273_v35, %v4170_v15  ;;  %v4221_v26 = vmax.f32 %v4213_v13, 0.0 }
 0x440   : > { %v4224_v39 = vmax.f32 %v4216_v5, 0.0 }
 0x441   : > { %v4222_v62 = vmax.f32 %v4214_v8, 0.0  ;;  %v8153_v8 = vld [vmem:[%s9940_s8 + $0x88] sm:$0xff]  }
 0x442   : > { %v4230_v46 = vpack.c.bf16 %v4224_v39, %v4223_v63 }
 0x443   : > { %v4229_v20 = vpack.c.bf16 %v4222_v62, %v4221_v26  ;;  %v7541_v42 = vpop.f32.mrb[76].mxu0 }
 0x444   : > { %v4219_v17 = vadd.f32 %v7541_v42, %v6273_v35  ;;  %v4183_v11 = vpop.f32.mrb[77].mxu0  ;;  %v8156_v42 = vld [vmem:[%s9940_s8 + $0x98] sm:$0xff]  }
 0x445   : > { %v4217_v55 = vadd.f32 %v6273_v35, %v4183_v11  ;;  %v7542_v23 = vpop.f32.mrb[78].mxu0  ;;  %7543 = vmatprep.subr.bf16.mxu1 %v4229_v20  ;;  %v8158_v11 = vld [vmem:[%s9940_s8 + $0xa0] sm:$0xff]  }
 0x446   : > { %v4220_v47 = vadd.f32 %v7542_v23, %v6273_v35  ;;  %v4186_v57 = vpop.f32.mrb[79].mxu0  ;;  %7544 = vmatpush3.bf16.msra.mxu1 %v4229_v20  ;;  %v4227_v48 = vmax.f32 %v4219_v17, 0.0  ;;  %v8154_v20 = vld [vmem:[%s9940_s8 + $0x90] sm:$0xff]   ;;  %v8150_v23 = vld [vmem:[%s9939_s7 + $0x18] sm:$0xff]  }
 0x447   : > { %v4218_v1 = vadd.f32 %v6273_v35, %v4186_v57  ;;  %7545 = vmatprep.subr.bf16.mxu1 %v4230_v46  ;;  %v4225_v2 = vmax.f32 %v4217_v55, 0.0  ;;  %v8151_v35 = vld [vmem:[%s9940_s8 + $0x38] sm:$0xff]   ;;  %v8147_v17 = vld [vmem:[%s9939_s7 + $0x10] sm:$0xff]   ;;  %v8160_v55 = vld [vmem:[%s9940_s8 + $0xa8] sm:$0xff]  }
 0x448   : > { %v4228_v61 = vmax.f32 %v4220_v47, 0.0  ;;  %7606 = vmatpush3.bf16.msra.mxu0 %v8151_v35  ;;  %v8155_v47 = vld [vmem:[%s9940_s8 + $0xc0] sm:$0xff]   ;;  %v8157_v57 = vld [vmem:[%s9940_s8 + $0xc8] sm:$0xff]   ;;  %v8180_v35 = vld [vmem:[%s9940_s8 + $0x130] sm:$0xff]  }
 0x449   : > { %v4226_v31 = vmax.f32 %v4218_v1, 0.0  ;;  %7617 = vmatprep.subr.bf16.mxu0 %v8221_v27  ;;  %v8159_v1 = vld [vmem:[%s9940_s8 + $0xd0] sm:$0xff]  }
 0x44a   : > { %v4232_v10 = vpack.c.bf16 %v4228_v61, %v4227_v48  ;;  %7546 = vmatpush3.bf16.msra.mxu1 %v4230_v46  ;;  %v8161_v48 = vld [vmem:[%s9940_s8 + $0xd8] sm:$0xff]   ;;  %v8162_v61 = vld [vmem:[%s9940_s8 + $0xb0] sm:$0xff]  }
 0x44b   : > { %v4231_v49 = vpack.c.bf16 %v4226_v31, %v4225_v2  ;;  %v8163_v2 = vld [vmem:[%s9940_s8 + $0xe0] sm:$0xff]   ;;  %v8164_v31 = vld [vmem:[%s9940_s8 + $0xb8] sm:$0xff]  }
 0x44d   : > { %7547 = vmatprep.subr.bf16.mxu1 %v4231_v49 }
 0x44e   : > { %7548 = vmatpush3.bf16.msra.mxu1 %v4231_v49  ;;  %v8166_v49 = vld [vmem:[%s9940_s8 + $0xf0] sm:$0xff]  }
 0x44f   : > { %7549 = vmatprep.subr.bf16.mxu1 %v4232_v10 }
 0x452   : > { %7550 = vmatpush3.bf16.msra.mxu1 %v4232_v10  ;;  %v8165_v10 = vld [vmem:[%s9940_s8 + $0xe8] sm:$0xff]  }
 0x453   : > { %7559 = vmatprep.subr.bf16.mxu1 %v8221_v27 }
 0x455   : > { %7552 = vmatmul.mubr.msk.bf16.vlgmr.msra.gmra.mrb[200].mxu1 %vm4261_vm2, %v8129_v30  ;;  %v8167_v30 = vld [vmem:[%s9940_s8 + $0xf8] sm:$0xff]  }
 0x456   : > { %7555 = vmatprep.mubr.msk.bf16.mxu1 %vm4261_vm2, %v8130_v4 }
 0x45d   : > { %7556 = vmatmul.mubr.msk.bf16.gmra.mrb[204].mxu1 %vm4261_vm2, %v8131_v56 }
 0x45e   : > { %7561 = vmatprep.mubr.msk.bf16.mxu1 %vm8222_vm3, %v8221_v27 }
 0x528   : > { %v7553_v21 = vpop.f32.mrb[200].mxu1 }
 0x529   : > { %v4308_v16 = vpop.f32.mrb[201].mxu1 }
 0x52a   : > { %v4339_v45 = vmax.f32 %v4308_v16, %v7553_v21  ;;  %v7554_v9 = vpop.f32.mrb[202].mxu1 }
 0x52b   : > { %v4311_v53 = vpop.f32.mrb[203].mxu1 }
 0x52c   : > { %v4340_v14 = vmax.f32 %v4311_v53, %v7554_v9 }
 0x530   : > { %v7557_v0 = vpop.f32.mrb[204].mxu1 }
 0x531   : > { %v4324_v25 = vpop.f32.mrb[205].mxu1 }
 0x532   : > { %v4341_v36 = vmax.f32 %v4324_v25, %v7557_v0  ;;  %v7558_v6 = vpop.f32.mrb[206].mxu1 }
 0x533   : > { %v4327_v52 = vpop.f32.mrb[207].mxu1 }
 0x534   : > { %v4343_v22 = vmax.f32 %v4339_v45, %v4341_v36  ;;  %v4342_v43 = vmax.f32 %v4327_v52, %v7558_v6 }
 0x536   : > { %v4344_v3 = vmax.f32 %v4340_v14, %v4342_v43 }
 0x538   : > { %v9539_v34 = vpack.c.bf16 %v4344_v3, %v4343_v22 }
 0x53a   : > { %7560 = vmatpush3.bf16.msra.mxu1 %v9539_v34 }
 0x53b   : > { %7565 = vmatprep.subr.bf16.mxu1 %v8221_v27 }
 0x53d   : > { %7562 = vmatmul.mubr.msk.bf16.vlgmr.msra.gmra.mrb[208].mxu1 %vm4353_vm4, %v8132_v33  ;;  %v8168_v33 = vld [vmem:[%s9939_s7 + $0x20] sm:$0xff]  }
 0x53e   : > { %7566 = vmatpush3.bf16.msra.mxu1 %v9539_v34  ;;  %7567 = vmatprep.mubr.msk.bf16.mxu1 %vm8222_vm3, %v8221_v27 }
 0x53f   : > { %7571 = vmatprep.subr.bf16.mxu1 %v8221_v27 }
 0x545   : > { %7568 = vmatmul.mubr.msk.bf16.vlgmr.msra.gmra.mrb[212].mxu1 %vm4353_vm4, %v8133_v7 }
 0x546   : > { %7572 = vmatpush3.bf16.msra.mxu1 %v8134_v41  ;;  %7587 = vmatprep.mubr.msk.bf16.mxu1 %vm8222_vm3, %v8221_v27 }
 0x547   : > { %7573 = vmatprep.subr.bf16.mxu1 %v8221_v27 }
 0x54a   : > { %7574 = vmatpush3.bf16.msra.mxu1 %v8135_v29  ;;  %v8170_v29 = vld [vmem:[%s9940_s8 + $0x100] sm:$0xff]  }
 0x54b   : > { %7575 = vmatprep.subr.bf16.mxu1 %v8221_v27 }
 0x54e   : > { %7576 = vmatpush3.bf16.msra.mxu1 %v8136_v40 }
 0x54f   : > { %7577 = vmatprep.subr.bf16.mxu1 %v8221_v27 }
 0x552   : > { %7578 = vmatpush3.bf16.msra.mxu1 %v8137_v51  ;;  %v8171_v51 = vld [vmem:[%s9940_s8 + $0x108] sm:$0xff]  }
 0x553   : > { %7579 = vmatprep.subr.bf16.mxu1 %v8221_v27 }
 0x556   : > { %7580 = vmatpush3.bf16.msra.mxu1 %v8138_v44  ;;  %v8169_v44 = vld [vmem:[%s9939_s7 + $0x28] sm:$0xff]  }
 0x557   : > { %7581 = vmatprep.subr.bf16.mxu1 %v8221_v27 }
 0x55a   : > { %7582 = vmatpush3.bf16.msra.mxu1 %v8139_v38  ;;  %v8173_v38 = vld [vmem:[%s9940_s8 + $0x140] sm:$0xff]  }
 0x55b   : > { %7583 = vmatprep.subr.bf16.mxu1 %v8221_v27 }
 0x55e   : > { %7584 = vmatpush3.bf16.msra.mxu1 %v8141_v18  ;;  %v8179_v18 = vld [vmem:[%s9940_s8 + $0x158] sm:$0xff]  }
 0x55f   : > { %7585 = vmatprep.subr.bf16.mxu1 %v8221_v27 }
 0x562   : > { %7586 = vmatpush3.bf16.msra.mxu1 %v8143_v24  ;;  %v8181_v24 = vld [vmem:[%s9940_s8 + $0x160] sm:$0xff]  }
 0x563   : > { %7611 = vmatprep.subr.bf16.mxu1 %v8221_v27 }
 0x610   : > { %v4391_v60 = vpop.f32.mrb[208].mxu1 }
 0x611   : > { %v7563_v54 = vpop.f32.mrb[209].mxu1 }
 0x612   : > { %v4394_v13 = vpop.f32.mrb[210].mxu1  ;;  %v8183_v54 = vld [vmem:[%s9940_s8 + $0x168] sm:$0xff]  }
 0x613   : > { %v4398_v5 = vpack.c.bf16 %v4394_v13, %v4391_v60  ;;  %v7564_v15 = vpop.f32.mrb[211].mxu1  ;;  %v8182_v60 = vld [vmem:[%s9940_s8 + $0x138] sm:$0xff]   ;;  %v8184_v13 = vld [vmem:[%s9940_s8 + $0x170] sm:$0xff]  }
 0x615   : > { %7608 = vmatmul.mubr.bf16.vlgmr.msra.gmra.mrb[80].mxu0 %v4398_v5 }
 0x616   : > { %7618 = vmatpush3.bf16.msra.mxu0 %v8152_v58  ;;  %7633 = vmatprep.mubr.msk.bf16.mxu0 %vm8222_vm3, %v8221_v27  ;;  %v8185_v58 = vld [vmem:[%s9940_s8 + $0x178] sm:$0xff]  }
 0x617   : > { %7619 = vmatprep.subr.bf16.mxu0 %v8221_v27 }
 0x618   : > { %v4459_v63 = vpop.f32.mrb[212].mxu1 }
 0x619   : > { %v7569_v39 = vpop.f32.mrb[213].mxu1 }
 0x61a   : > { %v4462_v26 = vpop.f32.mrb[214].mxu1  ;;  %7620 = vmatpush3.bf16.msra.mxu0 %v8153_v8 }
 0x61b   : > { %v4466_v62 = vpack.c.bf16 %v4462_v26, %v4459_v63  ;;  %v7570_v46 = vpop.f32.mrb[215].mxu1  ;;  %7621 = vmatprep.subr.bf16.mxu0 %v8221_v27 }
 0x61d   : > { %7588 = vmatmul.mubr.bf16.vlgmr.msra.gmra.mrb[216].mxu1 %v4466_v62 }
 0x61e   : > { %7612 = vmatpush3.bf16.msra.mxu1 %v9539_v34  ;;  %7613 = vmatprep.mubr.msk.bf16.mxu1 %vm8222_vm3, %v8221_v27 }
 0x61f   : > { %7637 = vmatprep.subr.bf16.mxu1 %v8221_v27  ;;  %7622 = vmatpush3.bf16.msra.mxu0 %v8154_v20 }
 0x620   : > { %7623 = vmatprep.subr.bf16.mxu0 %v8221_v27 }
 0x623   : > { %7624 = vmatpush3.bf16.msra.mxu0 %v8156_v42 }
 0x624   : > { %7625 = vmatprep.subr.bf16.mxu0 %v8221_v27 }
 0x625   : > { %7614 = vmatmul.mubr.msk.bf16.vlgmr.msra.gmra.mrb[220].mxu1 %vm4353_vm4, %v8147_v17 }
 0x626   : > { %7638 = vmatpush3.bf16.msra.mxu1 %v9539_v34  ;;  %7639 = vmatprep.mubr.msk.bf16.mxu1 %vm8222_vm3, %v8221_v27 }
 0x627   : > { %7643 = vmatprep.subr.bf16.mxu1 %v8221_v27  ;;  %7626 = vmatpush3.bf16.msra.mxu0 %v8158_v11 }
 0x628   : > { %7627 = vmatprep.subr.bf16.mxu0 %v8221_v27 }
 0x62b   : > { %7628 = vmatpush3.bf16.msra.mxu0 %v8160_v55 }
 0x62c   : > { %7629 = vmatprep.subr.bf16.mxu0 %v8221_v27 }
 0x62d   : > { %7640 = vmatmul.mubr.msk.bf16.vlgmr.msra.gmra.mrb[224].mxu1 %vm4353_vm4, %v8150_v23 }
 0x62e   : > { %7644 = vmatpush3.bf16.msra.mxu1 %v8155_v47  ;;  %7659 = vmatprep.mubr.msk.bf16.mxu1 %vm8222_vm3, %v8221_v27 }
 0x62f   : > { %7645 = vmatprep.subr.bf16.mxu1 %v8221_v27  ;;  %7630 = vmatpush3.bf16.msra.mxu0 %v8162_v61 }
 0x630   : > { %7631 = vmatprep.subr.bf16.mxu0 %v8221_v27 }
 0x632   : > { %7646 = vmatpush3.bf16.msra.mxu1 %v8157_v57 }
 0x633   : > { %7647 = vmatprep.subr.bf16.mxu1 %v8221_v27  ;;  %7632 = vmatpush3.bf16.msra.mxu0 %v8164_v31 }
 0x634   : > { %7663 = vmatprep.subr.bf16.mxu0 %v8221_v27 }
 0x636   : > { %7648 = vmatpush3.bf16.msra.mxu1 %v8159_v1 }
 0x637   : > { %7649 = vmatprep.subr.bf16.mxu1 %v8221_v27 }
 0x63a   : > { %7650 = vmatpush3.bf16.msra.mxu1 %v8161_v48 }
 0x63b   : > { %7651 = vmatprep.subr.bf16.mxu1 %v8221_v27 }
 0x63e   : > { %7652 = vmatpush3.bf16.msra.mxu1 %v8163_v2  ;;  %v8186_v2 = vld [vmem:[%s9939_s7 + $0x30] sm:$0xff]  }
 0x63f   : > { %7653 = vmatprep.subr.bf16.mxu1 %v8221_v27 }
 0x642   : > { %7654 = vmatpush3.bf16.msra.mxu1 %v8165_v10 }
 0x643   : > { %7655 = vmatprep.subr.bf16.mxu1 %v8221_v27 }
 0x646   : > { %7656 = vmatpush3.bf16.msra.mxu1 %v8166_v49  ;;  %v8188_v49 = vld [vmem:[%s9940_s8 + $0x180] sm:$0xff]  }
 0x647   : > { %7657 = vmatprep.subr.bf16.mxu1 %v8221_v27 }
 0x64a   : > { %7658 = vmatpush3.bf16.msra.mxu1 %v8167_v30 }
 0x64b   : > { %7689 = vmatprep.subr.bf16.mxu1 %v8221_v27 }
 0x6e8   : > { %v4655_v4 = vpop.f32.mrb[80].mxu0 }
 0x6e9   : > { %v7609_v56 = vpop.f32.mrb[81].mxu0 }
 0x6ea   : > { %v4658_v59 = vpop.f32.mrb[82].mxu0  ;;  %v8187_v56 = vld [vmem:[%s9939_s7 + $0x38] sm:$0xff]  }
 0x6eb   : > { %v7610_v21 = vpop.f32.mrb[83].mxu0 }
 0x6ec   : > { %v8190_v21 = vld [vmem:[%s9940_s8 + $0x190] sm:$0xff]  }
 0x6f0   : > { %v4566_v16 = vpop.f32.mrb[216].mxu1 }
 0x6f1   : > { %v7589_v45 = vpop.f32.mrb[217].mxu1  ;;  %v9701_v9 = vadd.f32 %v4655_v4, %v4566_v16  ;;  %v8189_v4 = vld [vmem:[%s9940_s8 + $0x188] sm:$0xff]  }
 0x6f2   : > { %v4569_v53 = vpop.f32.mrb[218].mxu1  ;;  %v8193_v16 = vld [vmem:[%s9940_s8 + $0x1c8] sm:$0xff]   ;;  %v8192_v45 = vld [vmem:[%s9940_s8 + $0x198] sm:$0xff]  }
 0x6f3   : > { %v7590_v14 = vpop.f32.mrb[219].mxu1  ;;  %v9703_v0 = vadd.f32 %v4658_v59, %v4569_v53  ;;  %v8191_v59 = vld [vmem:[%s9940_s8 + $0x1c0] sm:$0xff]  }
 0x6f4   : > { %v8194_v53 = vld [vmem:[%s9940_s8 + $0x1a0] sm:$0xff]   ;;  %v8196_v14 = vld [vmem:[%s9940_s8 + $0x1a8] sm:$0xff]  }
 0x6f8   : > { %v4706_v25 = vpop.f32.mrb[220].mxu1 }
 0x6f9   : > { %v7615_v36 = vpop.f32.mrb[221].mxu1 }
 0x6fa   : > { %v4709_v6 = vpop.f32.mrb[222].mxu1  ;;  %v8199_v36 = vld [vmem:[%s9940_s8 + $0x1e0] sm:$0xff]  }
 0x6fb   : > { %v4713_v52 = vpack.c.bf16 %v4709_v6, %v4706_v25  ;;  %v7616_v22 = vpop.f32.mrb[223].mxu1  ;;  %v8198_v25 = vld [vmem:[%s9940_s8 + $0x1b0] sm:$0xff]   ;;  %v8200_v6 = vld [vmem:[%s9940_s8 + $0x1b8] sm:$0xff]  }
 0x6fc   : > { %v8202_v22 = vld [vmem:[%s9940_s8 + $0x1f0] sm:$0xff]  }
 0x6fd   : > { %7634 = vmatmul.mubr.bf16.vlgmr.msra.gmra.mrb[84].mxu0 %v4713_v52  ;;  %v8201_v52 = vld [vmem:[%s9940_s8 + $0x1e8] sm:$0xff]  }
 0x6fe   : > { %7664 = vmatpush3.bf16.msra.mxu0 %v9539_v34  ;;  %7665 = vmatprep.mubr.msk.bf16.mxu0 %vm8222_vm3, %v8221_v27 }
 0x6ff   : > { %7669 = vmatprep.subr.bf16.mxu0 %v8221_v27 }
 0x700   : > { %v4866_v43 = vpop.f32.mrb[224].mxu1 }
 0x701   : > { %v7641_v3 = vpop.f32.mrb[225].mxu1 }
 0x702   : > { %v4869_v7 = vpop.f32.mrb[226].mxu1 }
 0x703   : > { %v4873_v41 = vpack.c.bf16 %v4869_v7, %v4866_v43  ;;  %v7642_v40 = vpop.f32.mrb[227].mxu1  ;;  %v8203_v43 = vld [vmem:[%s9940_s8 + $0x1f8] sm:$0xff]  }
 0x705   : > { %7660 = vmatmul.mubr.bf16.vlgmr.msra.gmra.mrb[228].mxu1 %v4873_v41  ;;  %7666 = vmatmul.mubr.msk.bf16.vlgmr.msra.gmra.mrb[88].mxu0 %vm4353_vm4, %v8168_v33 }
 0x706   : > { %7690 = vmatpush3.bf16.msra.mxu1 %v9539_v34  ;;  %7691 = vmatprep.mubr.msk.bf16.mxu1 %vm8222_vm3, %v8221_v27 }
 0x707   : > { %7670 = vmatpush3.bf16.msra.mxu0 %v8170_v29  ;;  %7695 = vmatprep.subr.bf16.mxu1 %v8221_v27 }
 0x708   : > { %7671 = vmatprep.subr.bf16.mxu0 %v8221_v27  ;;  %7685 = vmatprep.mubr.msk.bf16.mxu0 %vm8222_vm3, %v8221_v27 }
 0x70b   : > { %7672 = vmatpush3.bf16.msra.mxu0 %v8171_v51 }
 0x70c   : > { %7673 = vmatprep.subr.bf16.mxu0 %v8221_v27 }
 0x70d   : > { %7692 = vmatmul.mubr.msk.bf16.vlgmr.msra.gmra.mrb[232].mxu1 %vm4353_vm4, %v8169_v44 }
 0x70e   : > { %7696 = vmatpush3.bf16.msra.mxu1 %v8173_v38  ;;  %7711 = vmatprep.mubr.msk.bf16.mxu1 %vm8222_vm3, %v8221_v27 }
 0x70f   : > { %7674 = vmatpush3.bf16.msra.mxu0 %v8172_v37  ;;  %7697 = vmatprep.subr.bf16.mxu1 %v8221_v27 }
 0x710   : > { %7675 = vmatprep.subr.bf16.mxu0 %v8221_v27 }
 0x712   : > { %7698 = vmatpush3.bf16.msra.mxu1 %v8175_v50 }
 0x713   : > { %7676 = vmatpush3.bf16.msra.mxu0 %v8174_v28  ;;  %7699 = vmatprep.subr.bf16.mxu1 %v8221_v27 }
 0x714   : > { %7677 = vmatprep.subr.bf16.mxu0 %v8221_v27 }
 0x716   : > { %7700 = vmatpush3.bf16.msra.mxu1 %v8177_v12 }
 0x717   : > { %7678 = vmatpush3.bf16.msra.mxu0 %v8176_v19  ;;  %7701 = vmatprep.subr.bf16.mxu1 %v8221_v27 }
 0x718   : > { %7679 = vmatprep.subr.bf16.mxu0 %v8221_v27 }
 0x71a   : > { %7702 = vmatpush3.bf16.msra.mxu1 %v8179_v18 }
 0x71b   : > { %7680 = vmatpush3.bf16.msra.mxu0 %v8178_v32  ;;  %7703 = vmatprep.subr.bf16.mxu1 %v8221_v27 }
 0x71c   : > { %7681 = vmatprep.subr.bf16.mxu0 %v8221_v27 }
 0x71e   : > { %7704 = vmatpush3.bf16.msra.mxu1 %v8181_v24 }
 0x71f   : > { %7682 = vmatpush3.bf16.msra.mxu0 %v8180_v35  ;;  %7705 = vmatprep.subr.bf16.mxu1 %v8221_v27 }
 0x720   : > { %7683 = vmatprep.subr.bf16.mxu0 %v8221_v27 }
 0x722   : > { %7706 = vmatpush3.bf16.msra.mxu1 %v8183_v54  ;;  %v8204_v54 = vld [vmem:[%s9939_s7 + $0x40] sm:$0xff]  }
 0x723   : > { %7684 = vmatpush3.bf16.msra.mxu0 %v8182_v60  ;;  %7707 = vmatprep.subr.bf16.mxu1 %v8221_v27 }
 0x724   : > { %7715 = vmatprep.subr.bf16.mxu0 %v8221_v27 }
 0x726   : > { %7708 = vmatpush3.bf16.msra.mxu1 %v8184_v13 }
 0x727   : > { %7709 = vmatprep.subr.bf16.mxu1 %v8221_v27 }
 0x72a   : > { %7710 = vmatpush3.bf16.msra.mxu1 %v8185_v58  ;;  %v8205_v58 = vld [vmem:[%s9940_s8 + $0x200] sm:$0xff]  }
 0x72b   : > { %7741 = vmatprep.subr.bf16.mxu1 %v8221_v27 }
 0x7d0   : > { %v4813_v5 = vpop.f32.mrb[84].mxu0 }
 0x7d1   : > { %v4820_v15 = vadd.f32 %v4813_v5, %v9701_v9  ;;  %v7635_v8 = vpop.f32.mrb[85].mxu0  ;;  %v8195_v9 = vld [vmem:[%s9940_s8 + $0x1d0] sm:$0xff]  }
 0x7d2   : > { %v4816_v63 = vpop.f32.mrb[86].mxu0  ;;  %v8207_v8 = vld [vmem:[%s9940_s8 + $0x210] sm:$0xff]  }
 0x7d3   : > { %v4821_v39 = vadd.f32 %v4816_v63, %v9703_v0  ;;  %v7636_v26 = vpop.f32.mrb[87].mxu0  ;;  %v8197_v0 = vld [vmem:[%s9940_s8 + $0x1d8] sm:$0xff]  }
 0x7d4   : > { %v8208_v63 = vld [vmem:[%s9940_s8 + $0x218] sm:$0xff]   ;;  %v8210_v26 = vld [vmem:[%s9940_s8 + $0x228] sm:$0xff]  }
 0x7d8   : > { %v4973_v62 = vpop.f32.mrb[228].mxu1  ;;  %v5026_v46 = vpop.f32.mrb[88].mxu0 }
 0x7d9   : > { %v9791_v20 = vadd.f32 %v4973_v62, %v4820_v15  ;;  %v7661_v42 = vpop.f32.mrb[229].mxu1  ;;  %v7667_v17 = vpop.f32.mrb[89].mxu0  ;;  %v8211_v62 = vld [vmem:[%s9940_s8 + $0x230] sm:$0xff]  }
 0x7da   : > { %v4976_v11 = vpop.f32.mrb[230].mxu1  ;;  %v5029_v55 = vpop.f32.mrb[90].mxu0 }
 0x7db   : > { %v9793_v23 = vadd.f32 %v4976_v11, %v4821_v39  ;;  %v5033_v47 = vpack.c.bf16 %v5029_v55, %v5026_v46  ;;  %v7662_v57 = vpop.f32.mrb[231].mxu1  ;;  %v7668_v1 = vpop.f32.mrb[91].mxu0  ;;  %v8209_v39 = vld [vmem:[%s9940_s8 + $0x220] sm:$0xff]   ;;  %v8212_v46 = vld [vmem:[%s9940_s8 + $0x238] sm:$0xff]  }
 0x7dd   : > { %7686 = vmatmul.mubr.bf16.vlgmr.msra.gmra.mrb[92].mxu0 %v5033_v47 }
 0x7de   : > { %7716 = vmatpush3.bf16.msra.mxu0 %v9539_v34  ;;  %7717 = vmatprep.mubr.msk.bf16.mxu0 %vm8222_vm3, %v8221_v27 }
 0x7df   : > { %7721 = vmatprep.subr.bf16.mxu0 %v8221_v27 }
 0x7e0   : > { %v5186_v48 = vpop.f32.mrb[232].mxu1 }
 0x7e1   : > { %v7693_v61 = vpop.f32.mrb[233].mxu1 }
 0x7e2   : > { %v5189_v31 = vpop.f32.mrb[234].mxu1 }
 0x7e3   : > { %v5193_v10 = vpack.c.bf16 %v5189_v31, %v5186_v48  ;;  %v7694_v30 = vpop.f32.mrb[235].mxu1 }
 0x7e5   : > { %7712 = vmatmul.mubr.bf16.vlgmr.msra.gmra.mrb[236].mxu1 %v5193_v10  ;;  %7718 = vmatmul.mubr.msk.bf16.vlgmr.msra.gmra.mrb[96].mxu0 %vm4353_vm4, %v8186_v2 }
 0x7e6   : > { %7742 = vmatpush3.bf16.msra.mxu1 %v9539_v34  ;;  %7743 = vmatprep.mubr.msk.bf16.mxu1 %vm8222_vm3, %v8221_v27 }
 0x7e7   : > { %7722 = vmatpush3.bf16.msra.mxu0 %v8188_v49  ;;  %7747 = vmatprep.subr.bf16.mxu1 %v8221_v27 }
 0x7e8   : > { %7723 = vmatprep.subr.bf16.mxu0 %v8221_v27  ;;  %7737 = vmatprep.mubr.msk.bf16.mxu0 %vm8222_vm3, %v8221_v27 }
 0x7eb   : > { %7724 = vmatpush3.bf16.msra.mxu0 %v8189_v4 }
 0x7ec   : > { %7725 = vmatprep.subr.bf16.mxu0 %v8221_v27 }
 0x7ed   : > { %7744 = vmatmul.mubr.msk.bf16.vlgmr.msra.gmra.mrb[240].mxu1 %vm4353_vm4, %v8187_v56  ;;  %v6500_v56 = vld [vmem:[%s9941_s9] ss:$0 sm:$0xff] }
 0x7ee   : > { %7748 = vmatpush3.bf16.msra.mxu1 %v8191_v59  ;;  %7763 = vmatprep.mubr.msk.bf16.mxu1 %vm8222_vm3, %v8221_v27 }
 0x7ef   : > { %7726 = vmatpush3.bf16.msra.mxu0 %v8190_v21  ;;  %7749 = vmatprep.subr.bf16.mxu1 %v8221_v27 }
 0x7f0   : > { %7727 = vmatprep.subr.bf16.mxu0 %v8221_v27 }
 0x7f2   : > { %7750 = vmatpush3.bf16.msra.mxu1 %v8193_v16 }
 0x7f3   : > { %7728 = vmatpush3.bf16.msra.mxu0 %v8192_v45  ;;  %7751 = vmatprep.subr.bf16.mxu1 %v8221_v27 }
 0x7f4   : > { %7729 = vmatprep.subr.bf16.mxu0 %v8221_v27 }
 0x7f6   : > { %7752 = vmatpush3.bf16.msra.mxu1 %v8195_v9 }
 0x7f7   : > { %7730 = vmatpush3.bf16.msra.mxu0 %v8194_v53  ;;  %7753 = vmatprep.subr.bf16.mxu1 %v8221_v27 }
 0x7f8   : > { %7731 = vmatprep.subr.bf16.mxu0 %v8221_v27 }
 0x7fa   : > { %7754 = vmatpush3.bf16.msra.mxu1 %v8197_v0 }
 0x7fb   : > { %7732 = vmatpush3.bf16.msra.mxu0 %v8196_v14  ;;  %7755 = vmatprep.subr.bf16.mxu1 %v8221_v27 }
 0x7fc   : > { %7733 = vmatprep.subr.bf16.mxu0 %v8221_v27 }
 0x7fe   : > { %7756 = vmatpush3.bf16.msra.mxu1 %v8199_v36 }
 0x7ff   : > { %7734 = vmatpush3.bf16.msra.mxu0 %v8198_v25  ;;  %7757 = vmatprep.subr.bf16.mxu1 %v8221_v27 }
 0x800   : > { %7735 = vmatprep.subr.bf16.mxu0 %v8221_v27 }
 0x802   : > { %7758 = vmatpush3.bf16.msra.mxu1 %v8201_v52 }
 0x803   : > { %7736 = vmatpush3.bf16.msra.mxu0 %v8200_v6  ;;  %7759 = vmatprep.subr.bf16.mxu1 %v8221_v27 }
 0x804   : > { %7767 = vmatprep.subr.bf16.mxu0 %v8221_v27 }
 0x806   : > { %7760 = vmatpush3.bf16.msra.mxu1 %v8202_v22 }
 0x807   : > { %7761 = vmatprep.subr.bf16.mxu1 %v8221_v27 }
 0x80a   : > { %7762 = vmatpush3.bf16.msra.mxu1 %v8203_v43 }
 0x8b0   : > { %v5133_v3 = vpop.f32.mrb[92].mxu0 }
 0x8b1   : > { %v5140_v33 = vadd.f32 %v5133_v3, %v9791_v20  ;;  %v7687_v7 = vpop.f32.mrb[93].mxu0 }
 0x8b2   : > { %v5136_v41 = vpop.f32.mrb[94].mxu0 }
 0x8b3   : > { %v5141_v29 = vadd.f32 %v5136_v41, %v9793_v23  ;;  %v7688_v40 = vpop.f32.mrb[95].mxu0 }
 0x8b8   : > { %v5293_v51 = vpop.f32.mrb[236].mxu1  ;;  %v5346_v44 = vpop.f32.mrb[96].mxu0 }
 0x8b9   : > { %v5300_v38 = vadd.f32 %v5293_v51, %v5140_v33  ;;  %v7713_v37 = vpop.f32.mrb[237].mxu1  ;;  %v7719_v50 = vpop.f32.mrb[97].mxu0 }
 0x8ba   : > { %v5296_v28 = vpop.f32.mrb[238].mxu1  ;;  %v5349_v12 = vpop.f32.mrb[98].mxu0 }
 0x8bb   : > { %v5301_v19 = vadd.f32 %v5296_v28, %v5141_v29  ;;  %v5353_v32 = vpack.c.bf16 %v5349_v12, %v5346_v44  ;;  %v7714_v18 = vpop.f32.mrb[239].mxu1  ;;  %v7720_v35 = vpop.f32.mrb[99].mxu0 }
 0x8bd   : > { %7738 = vmatmul.mubr.bf16.vlgmr.msra.gmra.mrb[100].mxu0 %v5353_v32 }
 0x8be   : > { %7768 = vmatpush3.bf16.msra.mxu0 %v9539_v34  ;;  %7769 = vmatprep.mubr.msk.bf16.mxu0 %vm8222_vm3, %v8221_v27  ;;  %v8206_v34 = vld [vmem:[%s9940_s8 + $0x208] sm:$0xff]  }
 0x8bf   : > { %7773 = vmatprep.subr.bf16.mxu0 %v8221_v27 }
 0x8c0   : > { %v5506_v24 = vpop.f32.mrb[240].mxu1 }
 0x8c1   : > { %v7745_v60 = vpop.f32.mrb[241].mxu1 }
 0x8c2   : > { %v5509_v13 = vpop.f32.mrb[242].mxu1 }
 0x8c3   : > { %v5513_v5 = vpack.c.bf16 %v5509_v13, %v5506_v24  ;;  %v7746_v15 = vpop.f32.mrb[243].mxu1 }
 0x8c5   : > { %7764 = vmatmul.mubr.bf16.vlgmr.msra.gmra.mrb[244].mxu1 %v5513_v5  ;;  %7770 = vmatmul.mubr.msk.bf16.vlgmr.msra.gmra.mrb[104].mxu0 %vm4353_vm4, %v8204_v54 }
 0x8c6   : > { %7774 = vmatpush3.bf16.msra.mxu0 %v8205_v58  ;;  %7789 = vmatprep.mubr.msk.bf16.mxu0 %vm8222_vm3, %v8221_v27 }
 0x8c7   : > { %7775 = vmatprep.subr.bf16.mxu0 %v8221_v27 }
 0x8ca   : > { %7776 = vmatpush3.bf16.msra.mxu0 %v8206_v34 }
 0x8cb   : > { %7777 = vmatprep.subr.bf16.mxu0 %v8221_v27 }
 0x8ce   : > { %7778 = vmatpush3.bf16.msra.mxu0 %v8207_v8 }
 0x8cf   : > { %7779 = vmatprep.subr.bf16.mxu0 %v8221_v27 }
 0x8d2   : > { %7780 = vmatpush3.bf16.msra.mxu0 %v8208_v63 }
 0x8d3   : > { %7781 = vmatprep.subr.bf16.mxu0 %v8221_v27 }
 0x8d6   : > { %7782 = vmatpush3.bf16.msra.mxu0 %v8209_v39 }
 0x8d7   : > { %7783 = vmatprep.subr.bf16.mxu0 %v8221_v27 }
 0x8da   : > { %7784 = vmatpush3.bf16.msra.mxu0 %v8210_v26 }
 0x8db   : > { %7785 = vmatprep.subr.bf16.mxu0 %v8221_v27 }
 0x8de   : > { %7786 = vmatpush3.bf16.msra.mxu0 %v8211_v62 }
 0x8df   : > { %7787 = vmatprep.subr.bf16.mxu0 %v8221_v27 }
 0x8e2   : > { %7788 = vmatpush3.bf16.msra.mxu0 %v8212_v46 }
 0x990   : > { %v5453_v20 = vpop.f32.mrb[100].mxu0 }
 0x991   : > { %v5460_v42 = vadd.f32 %v5453_v20, %v5300_v38  ;;  %v7739_v17 = vpop.f32.mrb[101].mxu0 }
 0x992   : > { %v5456_v11 = vpop.f32.mrb[102].mxu0 }
 0x993   : > { %v5461_v55 = vadd.f32 %v5456_v11, %v5301_v19  ;;  %v7740_v23 = vpop.f32.mrb[103].mxu0 }
 0x998   : > { %v5613_v47 = vpop.f32.mrb[244].mxu1  ;;  %v5666_v57 = vpop.f32.mrb[104].mxu0 }
 0x999   : > { %v5620_v1 = vadd.f32 %v5613_v47, %v5460_v42  ;;  %v7765_v48 = vpop.f32.mrb[245].mxu1  ;;  %v7771_v61 = vpop.f32.mrb[105].mxu0 }
 0x99a   : > { %v5616_v2 = vpop.f32.mrb[246].mxu1  ;;  %v5669_v31 = vpop.f32.mrb[106].mxu0 }
 0x99b   : > { %v5621_v27 = vadd.f32 %v5616_v2, %v5461_v55  ;;  %v5673_v10 = vpack.c.bf16 %v5669_v31, %v5666_v57  ;;  %v7772_v49 = vpop.f32.mrb[107].mxu0  ;;  %v7766_v30 = vpop.f32.mrb[247].mxu1 }
 0x99d   : > { %7790 = vmatmul.mubr.bf16.vlgmr.msra.gmra.mrb[108].mxu0 %v5673_v10 }
 0xa70   : > { %v5773_v4 = vpop.f32.mrb[108].mxu0 }
 0xa71   : > { %v5780_v59 = vadd.f32 %v5773_v4, %v5620_v1  ;;  %v7791_v21 = vpop.f32.mrb[109].mxu0 }
 0xa72   : > { %v5776_v16 = vpop.f32.mrb[110].mxu0 }
 0xa73   : > { %v5789_v45 = vadd.f32 %v6500_v56, %v5780_v59  ;;  %v5781_v9 = vadd.f32 %v5776_v16, %v5621_v27  ;;  %v7792_v53 = vpop.f32.mrb[111].mxu0 }
 0xa75   : > { %v5790_v14 = vadd.f32 %v6500_v56, %v5781_v9  ;;  %v5791_v0 = vmax.f32 %v5789_v45, 0.0 }
 0xa77   : > { %v5792_v25 = vmax.f32 %v5790_v14, 0.0 }
 0xa79   : > { %v6510_v36 = vpack.c.bf16 %v5792_v25, %v5791_v0 }
 0xa7b   : > { %6511 = vst [vmem:[%s361_s14] sm:$0xff] %v6510_v36  }
 0xa7c PF: > { %s20_s13 = sadd.s32 1, %s8219_s13  }
 0xa7d   : > { %p17_p5 = scmp.ge.s32.totalorder %s20_s13, 4  }
 0xa7f   :  { %19 = sbr.rel (!%p17_p5) target bundleno = 1 (0x1), region = 106 }

</bundles_post_ra>
